<compile_context>
chip_gen: v6e
topology: v6e:2x2x1
jax: 0.10.0
libtpu: 0.0.40
codegen_flags: <defaults>
</compile_context>

<pallas_src>
import jax
import jax.numpy as jnp
from jax.experimental import pallas as pl
from jax.experimental.pallas import tpu as pltpu

LANE = 128          # pad output lane dim to a full vreg lane width
NEG_BIG = -1.0e30   # bias value for padded logit lanes (exp() underflows to 0)


def _round_up(x, m):
    return pl.cdiv(x, m) * m


def rnn_kernel(x_ref, wih_ref, whh_ref, who_ref, bho_ref, out_ref, xw_s):
    # x_ref:   (seq, TB, input_size + 1)  time-major, ones column folds bias
    # wih_ref: (input_size + 1, hidden)   bias-augmented input projection
    # whh_ref: (hidden, hidden)
    # who_ref: (hidden, LANE)             lane-padded h2o weights
    # bho_ref: (1, LANE)                  lane-padded h2o bias (-1e30 pads)
    # out_ref: (TB, LANE)
    # xw_s:    (seq, TB, hidden)          VMEM scratch for hoisted projection

    # ---- hoisted input projection: one MXU op for every row x timestep,
    # off the serial critical path.  Staged into VMEM scratch so the
    # recurrence reads rows with a plain vld (load slots are plentiful). ----
    xw_s[...] = jnp.einsum('sbi,ih->sbh', x_ref[...], wih_ref[...],
                           preferred_element_type=jnp.float32)

    whh = whh_ref[...]                                    # (hidden, hidden)
    seq, tb, hidden = xw_s.shape

    # ---- recurrence: fully unrolled (seq small & static).  Only the
    # (TB,H)@(H,H) MXU dot + tanh sit on the serial chain. ----
    h = jnp.zeros((tb, hidden), jnp.float32)
    for i in range(seq):
        h = jnp.tanh(xw_s[i]
                     + jnp.dot(h, whh, preferred_element_type=jnp.float32))

    # ---- final output: h2o + log_softmax (padded lanes carry -1e30 bias,
    # so they contribute exp(...) == 0 to the normalizer) ----
    logits = (jnp.dot(h, who_ref[...], preferred_element_type=jnp.float32)
              + bho_ref[...])                             # (TB, LANE)
    m = jnp.max(logits, axis=-1, keepdims=True)
    shifted = logits - m
    lse = jnp.log(jnp.sum(jnp.exp(shifted), axis=-1, keepdims=True))
    out_ref[...] = shifted - lse                          # log_softmax over dim=1


def rnn_forward_batched(lines, params, *, batch_tile=128):
    """lines: (B, seq, input_size) f32 — B independent character lines.

    Returns (B, n_labels) log-probs; each row equals running the PyTorch
    forward on that single line.
    """
    B, seq, input_size = lines.shape
    w_ih, b_ih, w_hh, b_hh, w_ho, b_ho = params
    hidden = w_ih.shape[1]
    n_labels = w_ho.shape[1]

    # Batch tile: sublane-aligned, capped at batch_tile (128 fills the v5e
    # MXU; pass 256 on v6e/v7x if desired — MXU pads K/N internally).
    tb = int(min(batch_tile, _round_up(B, 8)))
    b_pad = int(_round_up(B, tb))

    # ---- host-side (free) parameter / layout plumbing ----
    # Fold b_ih + b_hh into W_ih via an appended ones column: one fewer
    # kernel operand + DMA, no broadcast add in the kernel.
    b_comb = (b_ih + b_hh).reshape(1, hidden)
    w_ih_aug = jnp.concatenate([w_ih, b_comb], axis=0)            # (in+1, H)

    # Time-major, bias-column-augmented, batch-padded input.
    x = jnp.transpose(lines, (1, 0, 2))                           # (seq, B, in)
    x = jnp.concatenate([x, jnp.ones((seq, B, 1), jnp.float32)], axis=-1)
    x = jnp.pad(x, ((0, 0), (0, b_pad - B), (0, 0)))              # (seq, Bp, in+1)
    in_aug = input_size + 1

    # Lane-pad W_ho / b_ho to 128 so the output store is an unmasked,
    # lane-dense vst; padded bias lanes get -1e30 so log_softmax is
    # numerically unchanged.
    pad = LANE - n_labels
    w_ho_p = jnp.pad(w_ho, ((0, 0), (0, pad)))                    # (hidden, LANE)
    b_ho_p = jnp.pad(b_ho.reshape(1, n_labels), ((0, 0), (0, pad)),
                     constant_values=NEG_BIG)                     # (1, LANE)

    grid = (b_pad // tb,)

    out = pl.pallas_call(
        rnn_kernel,
        out_shape=jax.ShapeDtypeStruct((b_pad, LANE), jnp.float32),
        grid_spec=pltpu.PrefetchScalarGridSpec(
            num_scalar_prefetch=0,
            grid=grid,
            in_specs=[
                # Per-tile batch slab of the input.
                pl.BlockSpec((seq, tb, in_aug), lambda b: (0, b, 0)),
                # Weights: constant block index across the grid axis ->
                # DMA'd once, kept resident in VMEM.
                pl.BlockSpec((in_aug, hidden), lambda b: (0, 0)),
                pl.BlockSpec((hidden, hidden), lambda b: (0, 0)),
                pl.BlockSpec((hidden, LANE), lambda b: (0, 0)),
                pl.BlockSpec((1, LANE), lambda b: (0, 0)),
            ],
            out_specs=pl.BlockSpec((tb, LANE), lambda b: (b, 0)),
            scratch_shapes=[pltpu.VMEM((seq, tb, hidden), jnp.float32)],
        ),
        compiler_params=pltpu.CompilerParams(
            # Batch blocks are independent -> shard across TCs on v7x.
            dimension_semantics=("parallel",),
        ),
    )(x, w_ih_aug, w_hh, w_ho_p, b_ho_p)

    return out[:B, :n_labels]


def rnn_forward(line_tensor, params):
    """Single-line forward, matching the PyTorch module's signature.

    line_tensor: (seq, input_size) f32.  Returns (1, n_labels) log-probs.
    """
    return rnn_forward_batched(line_tensor[None], params, batch_tile=8)


def init_params(key, input_size, hidden_size, n_labels):
    """Deterministic synthetic parameters (shapes match the nn.Linear layers)."""
    ks = jax.random.split(key, 6)
    # Stored pre-transposed: (in_features, out_features).
    w_ih = jax.random.normal(ks[0], (input_size, hidden_size), jnp.float32) * 0.1
    b_ih = jax.random.normal(ks[1], (1, hidden_size), jnp.float32) * 0.1
    w_hh = jax.random.normal(ks[2], (hidden_size, hidden_size), jnp.float32) * 0.1
    b_hh = jax.random.normal(ks[3], (1, hidden_size), jnp.float32) * 0.1
    w_ho = jax.random.normal(ks[4], (hidden_size, n_labels), jnp.float32) * 0.1
    b_ho = jax.random.normal(ks[5], (1, n_labels), jnp.float32) * 0.1
    return (w_ih, b_ih, w_hh, b_hh, w_ho, b_ho)


def rnn_forward_ref(line_tensor, params):
    """Pure-JAX reference of the PyTorch forward, for a sanity check."""
    w_ih, b_ih, w_hh, b_hh, w_ho, b_ho = params
    h = jnp.zeros((1, w_ih.shape[1]), jnp.float32)
    for i in range(line_tensor.shape[0]):
        x = line_tensor[i:i + 1]
        h = jnp.tanh(x @ w_ih + b_ih + h @ w_hh + b_hh)
    logits = h @ w_ho + b_ho
    return jax.nn.log_softmax(logits, axis=1)


if __name__ == "__main__":
    # Small shapes consistent with the char-RNN forward:
    #   seq=8 characters, input_size=26 (one-hot alphabet), hidden=32, 8 labels.
    seq, input_size, hidden_size, n_labels = 8, 26, 32, 8
    batch = 256   # batched throughput path: 2 grid steps of 128 rows

    key = jax.random.PRNGKey(0)
    k_params, k_x = jax.random.split(key)
    params = init_params(k_params, input_size, hidden_size, n_labels)

    # One-hot "line tensors" (batch, seq, input_size), like the tutorial's
    # char encoding.
    char_ids = jax.random.randint(k_x, (batch, seq), 0, input_size)
    lines = jax.nn.one_hot(char_ids, input_size, dtype=jnp.float32)

    # Batched kernel (primary path) + single-line API (module-exact signature).
    out_b = jax.block_until_ready(rnn_forward_batched(lines, params))
    out_1 = jax.block_until_ready(rnn_forward(lines[0], params))

    ref_b = jax.vmap(lambda x: rnn_forward_ref(x, params)[0])(lines)
    assert out_b.shape == (batch, n_labels)
    assert out_1.shape == (1, n_labels)
    assert jnp.allclose(out_b, ref_b, atol=1e-5, rtol=1e-5)
    assert jnp.allclose(out_1, ref_b[0:1], atol=1e-5, rtol=1e-5)

    # TODO(synk): `learn` (SGD training loop) and `label_from_output` (topk on
    # host) are host-side utilities, not part of the forward kernel.

    print("KERNEL_OK")
</pallas_src>

<mosaic_0001>
module attributes {stable_mosaic.version = 11 : i64} {
  func.func @rnn_kernel(%arg0: i32, %arg1: memref<8x128x27xf32, #tpu.memory_space<vmem>>, %arg2: memref<27x32xf32, #tpu.memory_space<vmem>>, %arg3: memref<32x32xf32, #tpu.memory_space<vmem>>, %arg4: memref<32x128xf32, #tpu.memory_space<vmem>>, %arg5: memref<1x128xf32, #tpu.memory_space<vmem>>, %arg6: memref<128x128xf32, #tpu.memory_space<vmem>>, %arg7: memref<8x128x32xf32, #tpu.memory_space<vmem>>) attributes {dimension_semantics = [#tpu.dimension_semantics<parallel>], iteration_bounds = array<i64: 2>, scalar_prefetch = 0 : i64, scratch_operands = 1 : i64, tpu.core_type = #tpu.core_type<tc>, window_params = [{transform_indices = @transform_0, window_bounds = array<i64: 8, 128, 27>}, {pipeline_mode = #tpu.pipeline_mode<synchronous>, transform_indices = @transform_1, window_bounds = array<i64: 27, 32>}, {pipeline_mode = #tpu.pipeline_mode<synchronous>, transform_indices = @transform_2, window_bounds = array<i64: 32, 32>}, {pipeline_mode = #tpu.pipeline_mode<synchronous>, transform_indices = @transform_3, window_bounds = array<i64: 32, 128>}, {pipeline_mode = #tpu.pipeline_mode<synchronous>, transform_indices = @transform_4, window_bounds = array<i64: 1, 128>}, {transform_indices = @transform_5, window_bounds = array<i64: 128, 128>}]} {
    %c0 = arith.constant 0 : index
    %c0_0 = arith.constant 0 : index
    %c0_1 = arith.constant 0 : index
    %0 = vector.load %arg1[%c0, %c0_0, %c0_1] : memref<8x128x27xf32, #tpu.memory_space<vmem>>, vector<8x128x27xf32>
    %c0_2 = arith.constant 0 : index
    %c0_3 = arith.constant 0 : index
    %1 = vector.load %arg2[%c0_2, %c0_3] : memref<27x32xf32, #tpu.memory_space<vmem>>, vector<27x32xf32>
    "tpu.trace_start"() <{level = 10 : i32, message = "sbi,ih->sbh"}> : () -> ()
    %cst = arith.constant dense<0.000000e+00> : vector<8x128x32xf32>
    %2 = tpu.matmul %0, %1, %cst {dimension_numbers = #tpu.dot_dimension_numbers<[2], [0], [0, 1], [1], [0, 0, 0, 1, 1, 1], [], []>} : vector<8x128x27xf32>, vector<27x32xf32>, vector<8x128x32xf32> -> vector<8x128x32xf32>
    "tpu.trace_stop"() : () -> ()
    %c0_4 = arith.constant 0 : index
    %c0_5 = arith.constant 0 : index
    %c0_6 = arith.constant 0 : index
    %3 = vector.load %arg7[%c0_4, %c0_5, %c0_6] : memref<8x128x32xf32, #tpu.memory_space<vmem>>, vector<8x128x32xf32>
    tpu.vector_store %arg7[%c0_4, %c0_5, %c0_6], %2 {strides = array<i32>} : memref<8x128x32xf32, #tpu.memory_space<vmem>>, vector<8x128x32xf32>,
    %c0_7 = arith.constant 0 : index
    %c0_8 = arith.constant 0 : index
    %4 = vector.load %arg3[%c0_7, %c0_8] : memref<32x32xf32, #tpu.memory_space<vmem>>, vector<32x32xf32>
    %cst_9 = arith.constant 0.000000e+00 : f32
    %5 = vector.broadcast %cst_9 : f32 to vector<128x32xf32>
    %c0_10 = arith.constant 0 : index
    %c0_11 = arith.constant 0 : index
    %c0_12 = arith.constant 0 : index
    %6 = vector.load %arg7[%c0_10, %c0_11, %c0_12] : memref<8x128x32xf32, #tpu.memory_space<vmem>>, vector<1x128x32xf32>
    %7 = vector.shape_cast %6 : vector<1x128x32xf32> to vector<128x32xf32>
    %cst_13 = arith.constant dense<0.000000e+00> : vector<128x32xf32>
    %8 = tpu.matmul %5, %4, %cst_13 {dimension_numbers = #tpu.dot_dimension_numbers<[1], [0], [0], [1], [0, 0, 1, 1], [], []>} : vector<128x32xf32>, vector<32x32xf32>, vector<128x32xf32> -> vector<128x32xf32>
    %9 = arith.addf %7, %8 : vector<128x32xf32>
    %10 = math.tanh %9 : vector<128x32xf32>
    %c1 = arith.constant 1 : index
    %c0_14 = arith.constant 0 : index
    %c0_15 = arith.constant 0 : index
    %11 = vector.load %arg7[%c1, %c0_14, %c0_15] : memref<8x128x32xf32, #tpu.memory_space<vmem>>, vector<1x128x32xf32>
    %12 = vector.shape_cast %11 : vector<1x128x32xf32> to vector<128x32xf32>
    %cst_16 = arith.constant dense<0.000000e+00> : vector<128x32xf32>
    %13 = tpu.matmul %10, %4, %cst_16 {dimension_numbers = #tpu.dot_dimension_numbers<[1], [0], [0], [1], [0, 0, 1, 1], [], []>} : vector<128x32xf32>, vector<32x32xf32>, vector<128x32xf32> -> vector<128x32xf32>
    %14 = arith.addf %12, %13 : vector<128x32xf32>
    %15 = math.tanh %14 : vector<128x32xf32>
    %c2 = arith.constant 2 : index
    %c0_17 = arith.constant 0 : index
    %c0_18 = arith.constant 0 : index
    %16 = vector.load %arg7[%c2, %c0_17, %c0_18] : memref<8x128x32xf32, #tpu.memory_space<vmem>>, vector<1x128x32xf32>
    %17 = vector.shape_cast %16 : vector<1x128x32xf32> to vector<128x32xf32>
    %cst_19 = arith.constant dense<0.000000e+00> : vector<128x32xf32>
    %18 = tpu.matmul %15, %4, %cst_19 {dimension_numbers = #tpu.dot_dimension_numbers<[1], [0], [0], [1], [0, 0, 1, 1], [], []>} : vector<128x32xf32>, vector<32x32xf32>, vector<128x32xf32> -> vector<128x32xf32>
    %19 = arith.addf %17, %18 : vector<128x32xf32>
    %20 = math.tanh %19 : vector<128x32xf32>
    %c3 = arith.constant 3 : index
    %c0_20 = arith.constant 0 : index
    %c0_21 = arith.constant 0 : index
    %21 = vector.load %arg7[%c3, %c0_20, %c0_21] : memref<8x128x32xf32, #tpu.memory_space<vmem>>, vector<1x128x32xf32>
    %22 = vector.shape_cast %21 : vector<1x128x32xf32> to vector<128x32xf32>
    %cst_22 = arith.constant dense<0.000000e+00> : vector<128x32xf32>
    %23 = tpu.matmul %20, %4, %cst_22 {dimension_numbers = #tpu.dot_dimension_numbers<[1], [0], [0], [1], [0, 0, 1, 1], [], []>} : vector<128x32xf32>, vector<32x32xf32>, vector<128x32xf32> -> vector<128x32xf32>
    %24 = arith.addf %22, %23 : vector<128x32xf32>
    %25 = math.tanh %24 : vector<128x32xf32>
    %c4 = arith.constant 4 : index
    %c0_23 = arith.constant 0 : index
    %c0_24 = arith.constant 0 : index
    %26 = vector.load %arg7[%c4, %c0_23, %c0_24] : memref<8x128x32xf32, #tpu.memory_space<vmem>>, vector<1x128x32xf32>
    %27 = vector.shape_cast %26 : vector<1x128x32xf32> to vector<128x32xf32>
    %cst_25 = arith.constant dense<0.000000e+00> : vector<128x32xf32>
    %28 = tpu.matmul %25, %4, %cst_25 {dimension_numbers = #tpu.dot_dimension_numbers<[1], [0], [0], [1], [0, 0, 1, 1], [], []>} : vector<128x32xf32>, vector<32x32xf32>, vector<128x32xf32> -> vector<128x32xf32>
    %29 = arith.addf %27, %28 : vector<128x32xf32>
    %30 = math.tanh %29 : vector<128x32xf32>
    %c5 = arith.constant 5 : index
    %c0_26 = arith.constant 0 : index
    %c0_27 = arith.constant 0 : index
    %31 = vector.load %arg7[%c5, %c0_26, %c0_27] : memref<8x128x32xf32, #tpu.memory_space<vmem>>, vector<1x128x32xf32>
    %32 = vector.shape_cast %31 : vector<1x128x32xf32> to vector<128x32xf32>
    %cst_28 = arith.constant dense<0.000000e+00> : vector<128x32xf32>
    %33 = tpu.matmul %30, %4, %cst_28 {dimension_numbers = #tpu.dot_dimension_numbers<[1], [0], [0], [1], [0, 0, 1, 1], [], []>} : vector<128x32xf32>, vector<32x32xf32>, vector<128x32xf32> -> vector<128x32xf32>
    %34 = arith.addf %32, %33 : vector<128x32xf32>
    %35 = math.tanh %34 : vector<128x32xf32>
    %c6 = arith.constant 6 : index
    %c0_29 = arith.constant 0 : index
    %c0_30 = arith.constant 0 : index
    %36 = vector.load %arg7[%c6, %c0_29, %c0_30] : memref<8x128x32xf32, #tpu.memory_space<vmem>>, vector<1x128x32xf32>
    %37 = vector.shape_cast %36 : vector<1x128x32xf32> to vector<128x32xf32>
    %cst_31 = arith.constant dense<0.000000e+00> : vector<128x32xf32>
    %38 = tpu.matmul %35, %4, %cst_31 {dimension_numbers = #tpu.dot_dimension_numbers<[1], [0], [0], [1], [0, 0, 1, 1], [], []>} : vector<128x32xf32>, vector<32x32xf32>, vector<128x32xf32> -> vector<128x32xf32>
    %39 = arith.addf %37, %38 : vector<128x32xf32>
    %40 = math.tanh %39 : vector<128x32xf32>
    %c7 = arith.constant 7 : index
    %c0_32 = arith.constant 0 : index
    %c0_33 = arith.constant 0 : index
    %41 = vector.load %arg7[%c7, %c0_32, %c0_33] : memref<8x128x32xf32, #tpu.memory_space<vmem>>, vector<1x128x32xf32>
    %42 = vector.shape_cast %41 : vector<1x128x32xf32> to vector<128x32xf32>
    %cst_34 = arith.constant dense<0.000000e+00> : vector<128x32xf32>
    %43 = tpu.matmul %40, %4, %cst_34 {dimension_numbers = #tpu.dot_dimension_numbers<[1], [0], [0], [1], [0, 0, 1, 1], [], []>} : vector<128x32xf32>, vector<32x32xf32>, vector<128x32xf32> -> vector<128x32xf32>
    %44 = arith.addf %42, %43 : vector<128x32xf32>
    %45 = math.tanh %44 : vector<128x32xf32>
    %c0_35 = arith.constant 0 : index
    %c0_36 = arith.constant 0 : index
    %46 = vector.load %arg4[%c0_35, %c0_36] : memref<32x128xf32, #tpu.memory_space<vmem>>, vector<32x128xf32>
    %cst_37 = arith.constant dense<0.000000e+00> : vector<128x128xf32>
    %47 = tpu.matmul %45, %46, %cst_37 {dimension_numbers = #tpu.dot_dimension_numbers<[1], [0], [0], [1], [0, 0, 1, 1], [], []>} : vector<128x32xf32>, vector<32x128xf32>, vector<128x128xf32> -> vector<128x128xf32>
    %c0_38 = arith.constant 0 : index
    %c0_39 = arith.constant 0 : index
    %48 = vector.load %arg5[%c0_38, %c0_39] : memref<1x128xf32, #tpu.memory_space<vmem>>, vector<1x128xf32>
    %49 = vector.broadcast %48 : vector<1x128xf32> to vector<128x128xf32>
    %50 = arith.addf %47, %49 : vector<128x128xf32>
    %cst_40 = arith.constant dense<0xFF800000> : vector<128xf32>
    %51 = vector.multi_reduction <maximumf>, %50, %cst_40 [1] : vector<128x128xf32> to vector<128xf32>
    %52 = vector.shape_cast %51 : vector<128xf32> to vector<128x1xf32>
    %53 = vector.broadcast %52 : vector<128x1xf32> to vector<128x128xf32>
    %54 = arith.subf %50, %53 : vector<128x128xf32>
    %55 = math.exp %54 : vector<128x128xf32>
    %cst_41 = arith.constant dense<0.000000e+00> : vector<128xf32>
    %56 = vector.multi_reduction <add>, %55, %cst_41 [1] : vector<128x128xf32> to vector<128xf32>
    %57 = vector.shape_cast %56 : vector<128xf32> to vector<128x1xf32>
    %58 = math.log %57 : vector<128x1xf32>
    %59 = vector.broadcast %58 : vector<128x1xf32> to vector<128x128xf32>
    %60 = arith.subf %54, %59 : vector<128x128xf32>
    %c0_42 = arith.constant 0 : index
    %c0_43 = arith.constant 0 : index
    %61 = vector.load %arg6[%c0_42, %c0_43] : memref<128x128xf32, #tpu.memory_space<vmem>>, vector<128x128xf32>
    tpu.vector_store %arg6[%c0_42, %c0_43], %60 {strides = array<i32>} : memref<128x128xf32, #tpu.memory_space<vmem>>, vector<128x128xf32>,
    return
  }
  func.func @transform_0(%arg0: i32) -> (i32, i32, i32) {
    %c0_i32 = arith.constant 0 : i32
    %c0_i32_0 = arith.constant 0 : i32
    %c0_i32_1 = arith.constant 0 : i32
    return %c0_i32, %arg0, %c0_i32_0 : i32, i32, i32
  }
  func.func @transform_1(%arg0: i32) -> (i32, i32) {
    %c0_i32 = arith.constant 0 : i32
    %c0_i32_0 = arith.constant 0 : i32
    %c0_i32_1 = arith.constant 0 : i32
    return %c0_i32, %c0_i32_0 : i32, i32
  }
  func.func @transform_2(%arg0: i32) -> (i32, i32) {
    %c0_i32 = arith.constant 0 : i32
    %c0_i32_0 = arith.constant 0 : i32
    %c0_i32_1 = arith.constant 0 : i32
    return %c0_i32, %c0_i32_0 : i32, i32
  }
  func.func @transform_3(%arg0: i32) -> (i32, i32) {
    %c0_i32 = arith.constant 0 : i32
    %c0_i32_0 = arith.constant 0 : i32
    %c0_i32_1 = arith.constant 0 : i32
    return %c0_i32, %c0_i32_0 : i32, i32
  }
  func.func @transform_4(%arg0: i32) -> (i32, i32) {
    %c0_i32 = arith.constant 0 : i32
    %c0_i32_0 = arith.constant 0 : i32
    %c0_i32_1 = arith.constant 0 : i32
    return %c0_i32, %c0_i32_0 : i32, i32
  }
  func.func @transform_5(%arg0: i32) -> (i32, i32) {
    %c0_i32 = arith.constant 0 : i32
    %c0_i32_0 = arith.constant 0 : i32
    return %arg0, %c0_i32 : i32, i32
  }
}

</mosaic_0001>

<bundles_post_ra>
// kernel: tpu_custom_call.1
= control target key start
LH: loop header
LB: loop body
LE: loop exit
PB: predicated region body
PF: predicated region fallthrough
CT: control target
= control target key end

     0   :  { %10 = vsyncpa [#allocation5], 0  ;;  %s7145_s0 = inlined_call_operand.vmem [shape: f32[8,256,27], index: 0, kind: input, shape index: {}]   ;;  %s7146_s1 = inlined_call_operand.vmem [shape: f32[27,32], index: 1, kind: input, shape index: {}]   ;;  %s7147_s2 = inlined_call_operand.vmem [shape: f32[32,32], index: 2, kind: input, shape index: {}]   ;;  %s7148_s3 = inlined_call_operand.vmem [shape: f32[32,128], index: 3, kind: input, shape index: {}]   ;;  %s7149_s4 = inlined_call_operand.vmem [shape: f32[1,128], index: 4, kind: input, shape index: {}]   ;;  %s7150_s5 = inlined_call_operand.hbm [shape: f32[256,128], index: 5, kind: output, shape index: {}]  }
   0x1   :  { %12 = vsyncpa [#allocation5 + $0x1], 0  ;;  %s6026_s18 = smov 0   ;;  %s6028_s19 = smov 0  }
   0x2   :  { %s6030_s20 = smov 0   ;;  %s6032_s21 = smov 0  }
   0x3 LB: > { %s4479_s22 = sadd.s32 4294967295, %s5990_s21   ;;  %s4480_s23 = sadd.s32 4294967294, %s5990_s21   ;;  %s5990_s21 = sphi %s6032_s21, %s7156_s21   ;;  %s5986_s20 = sphi %s6030_s20, %s7155_s20   ;;  %s5982_s19 = sphi %s6028_s19, %s7154_s19   ;;  %s5978_s18 = sphi %s6026_s18, %s7153_s18  }
   0x4   : > { %s6049_s24 = sadd.s32 1, %s5990_s21   ;;  %s25_s25 = sadd.s32 1, %s5986_s20 }
   0x5   : > { %s22_s26 = ssub.s32 %s5990_s21, %s6049_s24  ;;  %p32_p0 = scmp.ne.s32.totalorder %s5986_s20, %s5982_s19 }
   0x6   : > { %p23_p1 = scmp.eq.s32.totalorder %s22_s26, 0  ;;  %p33_p2 = scmp.eq.s32.totalorder %s5990_s21, 0 }
   0x7   : > { %p146_p3 = scmp.eq.s32.totalorder %s4479_s22, 1  ;;  %p151_p4 = scmp.ne.s32.totalorder %s5982_s19, %s5978_s18 }
   0x8   : > { %s6062_s27 = scalar_select %p23_p1, %s5986_s20, %s25_s25  }
   0x9   : > { %p34_p5 = por %p33_p2, %p32_p0  ;;  %p6064_p6 = por %p146_p3, %p32_p0 }
   0xa   : > { %p152_p7 = scmp.eq.s32.totalorder %s4480_s23, 1  ;;  %p4482_p9 = scmp.ge.s32.totalorder %s5990_s21, 2 }
   0xc   : > { %p6068_p8 = por %p152_p7, %p151_p4  ;;  %180 = sbr.rel (%p4482_p9) target bundleno = 85 (0x55), region = 32 }
  0x11   : > { %183 = sbr.rel (!%p34_p5) target bundleno = 85 (0x55), region = 36  ;;  %s185_s30 = sand.u32 (%p34_p5), 1, %s5986_s20  }
  0x12   : > { %s4752_s6 = sshll.u32 (%p34_p5), %s5990_s21, 7  ;;  %s4483_s7 = sshll.u32 (%p34_p5), %s185_s30, 10 }
  0x13   : > { %s6080_s10 = scalar_lea.vmem (%p34_p5), %s7145_s0, %s4752_s6  ;;  %s6085_s11 = scalar_lea.vmem (%p34_p5), [#allocation3], %s4483_s7 }
  0x14   : > { %v473_v0 = vld [vmem:[%s6080_s10] sm:$0xff] (%p34_p5)  ;;  %v475_v1 = vld [vmem:[%s6080_s10 + $0x8] sm:$0xff] (%p34_p5)  ;;  %v477_v2 = vld [vmem:[%s6080_s10 + $0x10] sm:$0xff] (%p34_p5) }
  0x15   : > { %474 = vst [vmem:[%s6085_s11] sm:$0xff] (%p34_p5), %v473_v0  ;;  %476 = vst [vmem:[%s6085_s11 + $0x8] sm:$0xff] (%p34_p5), %v475_v1  ;;  %v479_v3 = vld [vmem:[%s6080_s10 + $0x18] sm:$0xff] (%p34_p5)  ;;  %v481_v4 = vld [vmem:[%s6080_s10 + $0x20] sm:$0xff] (%p34_p5) }
  0x16   : > { %478 = vst [vmem:[%s6085_s11 + $0x10] sm:$0xff] %v477_v2  ;;  %v483_v5 = vld [vmem:[%s6080_s10 + $0x28] sm:$0xff]  ;;  %480 = vst [vmem:[%s6085_s11 + $0x18] sm:$0xff] %v479_v3  ;;  %v485_v6 = vld [vmem:[%s6080_s10 + $0x30] sm:$0xff] }
  0x17   : > { %482 = vst [vmem:[%s6085_s11 + $0x20] sm:$0xff] %v481_v4  ;;  %484 = vst [vmem:[%s6085_s11 + $0x28] sm:$0xff] %v483_v5  ;;  %v487_v7 = vld [vmem:[%s6080_s10 + $0x38] sm:$0xff]  ;;  %v489_v8 = vld [vmem:[%s6080_s10 + $0x40] sm:$0xff] }
  0x18   : > { %486 = vst [vmem:[%s6085_s11 + $0x30] sm:$0xff] %v485_v6  ;;  %488 = vst [vmem:[%s6085_s11 + $0x38] sm:$0xff] %v487_v7  ;;  %v491_v9 = vld [vmem:[%s6080_s10 + $0x48] sm:$0xff]  ;;  %v493_v10 = vld [vmem:[%s6080_s10 + $0x50] sm:$0xff] }
  0x19   : > { %490 = vst [vmem:[%s6085_s11 + $0x40] sm:$0xff] %v489_v8  ;;  %v495_v11 = vld [vmem:[%s6080_s10 + $0x58] sm:$0xff]  ;;  %492 = vst [vmem:[%s6085_s11 + $0x48] sm:$0xff] %v491_v9  ;;  %v497_v12 = vld [vmem:[%s6080_s10 + $0x60] sm:$0xff] }
  0x1a   : > { %494 = vst [vmem:[%s6085_s11 + $0x50] sm:$0xff] %v493_v10  ;;  %496 = vst [vmem:[%s6085_s11 + $0x58] sm:$0xff] %v495_v11  ;;  %v499_v13 = vld [vmem:[%s6080_s10 + $0x68] sm:$0xff]  ;;  %v501_v14 = vld [vmem:[%s6080_s10 + $0x70] sm:$0xff] }
  0x1b   : > { %498 = vst [vmem:[%s6085_s11 + $0x60] sm:$0xff] %v497_v12  ;;  %500 = vst [vmem:[%s6085_s11 + $0x68] sm:$0xff] %v499_v13  ;;  %v503_v15 = vld [vmem:[%s6080_s10 + $0x78] sm:$0xff]  ;;  %v505_v16 = vld [vmem:[%s6080_s10 + $0x100] sm:$0xff] }
  0x1c   : > { %502 = vst [vmem:[%s6085_s11 + $0x70] sm:$0xff] %v501_v14  ;;  %v507_v17 = vld [vmem:[%s6080_s10 + $0x108] sm:$0xff]  ;;  %504 = vst [vmem:[%s6085_s11 + $0x78] sm:$0xff] %v503_v15  ;;  %v509_v18 = vld [vmem:[%s6080_s10 + $0x110] sm:$0xff] }
  0x1d   : > { %506 = vst [vmem:[%s6085_s11 + $0x80] sm:$0xff] %v505_v16  ;;  %508 = vst [vmem:[%s6085_s11 + $0x88] sm:$0xff] %v507_v17  ;;  %v511_v19 = vld [vmem:[%s6080_s10 + $0x118] sm:$0xff]  ;;  %v513_v20 = vld [vmem:[%s6080_s10 + $0x120] sm:$0xff] }
  0x1e   : > { %510 = vst [vmem:[%s6085_s11 + $0x90] sm:$0xff] %v509_v18  ;;  %512 = vst [vmem:[%s6085_s11 + $0x98] sm:$0xff] %v511_v19  ;;  %v515_v21 = vld [vmem:[%s6080_s10 + $0x128] sm:$0xff]  ;;  %v517_v22 = vld [vmem:[%s6080_s10 + $0x130] sm:$0xff] }
  0x1f   : > { %514 = vst [vmem:[%s6085_s11 + $0xa0] sm:$0xff] %v513_v20  ;;  %v519_v23 = vld [vmem:[%s6080_s10 + $0x138] sm:$0xff]  ;;  %516 = vst [vmem:[%s6085_s11 + $0xa8] sm:$0xff] %v515_v21  ;;  %v521_v24 = vld [vmem:[%s6080_s10 + $0x140] sm:$0xff] }
  0x20   : > { %518 = vst [vmem:[%s6085_s11 + $0xb0] sm:$0xff] %v517_v22  ;;  %520 = vst [vmem:[%s6085_s11 + $0xb8] sm:$0xff] %v519_v23  ;;  %v523_v25 = vld [vmem:[%s6080_s10 + $0x148] sm:$0xff]  ;;  %v525_v26 = vld [vmem:[%s6080_s10 + $0x150] sm:$0xff] }
  0x21   : > { %522 = vst [vmem:[%s6085_s11 + $0xc0] sm:$0xff] %v521_v24  ;;  %524 = vst [vmem:[%s6085_s11 + $0xc8] sm:$0xff] %v523_v25  ;;  %v527_v27 = vld [vmem:[%s6080_s10 + $0x158] sm:$0xff]  ;;  %v529_v28 = vld [vmem:[%s6080_s10 + $0x160] sm:$0xff] }
  0x22   : > { %526 = vst [vmem:[%s6085_s11 + $0xd0] sm:$0xff] %v525_v26  ;;  %v531_v29 = vld [vmem:[%s6080_s10 + $0x168] sm:$0xff]  ;;  %528 = vst [vmem:[%s6085_s11 + $0xd8] sm:$0xff] %v527_v27  ;;  %v533_v30 = vld [vmem:[%s6080_s10 + $0x170] sm:$0xff] }
  0x23   : > { %530 = vst [vmem:[%s6085_s11 + $0xe0] sm:$0xff] %v529_v28  ;;  %532 = vst [vmem:[%s6085_s11 + $0xe8] sm:$0xff] %v531_v29  ;;  %v535_v31 = vld [vmem:[%s6080_s10 + $0x178] sm:$0xff]  ;;  %v537_v32 = vld [vmem:[%s6080_s10 + $0x200] sm:$0xff] }
  0x24   : > { %534 = vst [vmem:[%s6085_s11 + $0xf0] sm:$0xff] %v533_v30  ;;  %536 = vst [vmem:[%s6085_s11 + $0xf8] sm:$0xff] %v535_v31  ;;  %v539_v33 = vld [vmem:[%s6080_s10 + $0x208] sm:$0xff]  ;;  %v541_v34 = vld [vmem:[%s6080_s10 + $0x210] sm:$0xff] }
  0x25   : > { %538 = vst [vmem:[%s6085_s11 + $0x100] sm:$0xff] %v537_v32  ;;  %v543_v35 = vld [vmem:[%s6080_s10 + $0x218] sm:$0xff]  ;;  %540 = vst [vmem:[%s6085_s11 + $0x108] sm:$0xff] %v539_v33  ;;  %v545_v36 = vld [vmem:[%s6080_s10 + $0x220] sm:$0xff] }
  0x26   : > { %542 = vst [vmem:[%s6085_s11 + $0x110] sm:$0xff] %v541_v34  ;;  %544 = vst [vmem:[%s6085_s11 + $0x118] sm:$0xff] %v543_v35  ;;  %v547_v37 = vld [vmem:[%s6080_s10 + $0x228] sm:$0xff]  ;;  %v549_v38 = vld [vmem:[%s6080_s10 + $0x230] sm:$0xff] }
  0x27   : > { %546 = vst [vmem:[%s6085_s11 + $0x120] sm:$0xff] %v545_v36  ;;  %548 = vst [vmem:[%s6085_s11 + $0x128] sm:$0xff] %v547_v37  ;;  %v551_v39 = vld [vmem:[%s6080_s10 + $0x238] sm:$0xff]  ;;  %v553_v40 = vld [vmem:[%s6080_s10 + $0x240] sm:$0xff] }
  0x28   : > { %550 = vst [vmem:[%s6085_s11 + $0x130] sm:$0xff] %v549_v38  ;;  %v555_v41 = vld [vmem:[%s6080_s10 + $0x248] sm:$0xff]  ;;  %552 = vst [vmem:[%s6085_s11 + $0x138] sm:$0xff] %v551_v39  ;;  %v557_v42 = vld [vmem:[%s6080_s10 + $0x250] sm:$0xff] }
  0x29   : > { %554 = vst [vmem:[%s6085_s11 + $0x140] sm:$0xff] %v553_v40  ;;  %556 = vst [vmem:[%s6085_s11 + $0x148] sm:$0xff] %v555_v41  ;;  %v559_v43 = vld [vmem:[%s6080_s10 + $0x258] sm:$0xff]  ;;  %v561_v44 = vld [vmem:[%s6080_s10 + $0x260] sm:$0xff] }
  0x2a   : > { %558 = vst [vmem:[%s6085_s11 + $0x150] sm:$0xff] %v557_v42  ;;  %560 = vst [vmem:[%s6085_s11 + $0x158] sm:$0xff] %v559_v43  ;;  %v563_v45 = vld [vmem:[%s6080_s10 + $0x268] sm:$0xff]  ;;  %v565_v46 = vld [vmem:[%s6080_s10 + $0x270] sm:$0xff] }
  0x2b   : > { %562 = vst [vmem:[%s6085_s11 + $0x160] sm:$0xff] %v561_v44  ;;  %v567_v47 = vld [vmem:[%s6080_s10 + $0x278] sm:$0xff]  ;;  %564 = vst [vmem:[%s6085_s11 + $0x168] sm:$0xff] %v563_v45  ;;  %v569_v48 = vld [vmem:[%s6080_s10 + $0x300] sm:$0xff] }
  0x2c   : > { %566 = vst [vmem:[%s6085_s11 + $0x170] sm:$0xff] %v565_v46  ;;  %568 = vst [vmem:[%s6085_s11 + $0x178] sm:$0xff] %v567_v47  ;;  %v571_v49 = vld [vmem:[%s6080_s10 + $0x308] sm:$0xff]  ;;  %v573_v50 = vld [vmem:[%s6080_s10 + $0x310] sm:$0xff] }
  0x2d   : > { %570 = vst [vmem:[%s6085_s11 + $0x180] sm:$0xff] %v569_v48  ;;  %572 = vst [vmem:[%s6085_s11 + $0x188] sm:$0xff] %v571_v49  ;;  %v575_v51 = vld [vmem:[%s6080_s10 + $0x318] sm:$0xff]  ;;  %v577_v52 = vld [vmem:[%s6080_s10 + $0x320] sm:$0xff] }
  0x2e   : > { %574 = vst [vmem:[%s6085_s11 + $0x190] sm:$0xff] %v573_v50  ;;  %v579_v53 = vld [vmem:[%s6080_s10 + $0x328] sm:$0xff]  ;;  %576 = vst [vmem:[%s6085_s11 + $0x198] sm:$0xff] %v575_v51  ;;  %v581_v54 = vld [vmem:[%s6080_s10 + $0x330] sm:$0xff] }
  0x2f   : > { %578 = vst [vmem:[%s6085_s11 + $0x1a0] sm:$0xff] %v577_v52  ;;  %580 = vst [vmem:[%s6085_s11 + $0x1a8] sm:$0xff] %v579_v53  ;;  %v583_v55 = vld [vmem:[%s6080_s10 + $0x338] sm:$0xff]  ;;  %v585_v56 = vld [vmem:[%s6080_s10 + $0x340] sm:$0xff] }
  0x30   : > { %582 = vst [vmem:[%s6085_s11 + $0x1b0] sm:$0xff] %v581_v54  ;;  %584 = vst [vmem:[%s6085_s11 + $0x1b8] sm:$0xff] %v583_v55  ;;  %v587_v57 = vld [vmem:[%s6080_s10 + $0x348] sm:$0xff]  ;;  %v589_v58 = vld [vmem:[%s6080_s10 + $0x350] sm:$0xff] }
  0x31   : > { %586 = vst [vmem:[%s6085_s11 + $0x1c0] sm:$0xff] %v585_v56  ;;  %v591_v59 = vld [vmem:[%s6080_s10 + $0x358] sm:$0xff]  ;;  %588 = vst [vmem:[%s6085_s11 + $0x1c8] sm:$0xff] %v587_v57  ;;  %v593_v60 = vld [vmem:[%s6080_s10 + $0x360] sm:$0xff] }
  0x32   : > { %590 = vst [vmem:[%s6085_s11 + $0x1d0] sm:$0xff] %v589_v58  ;;  %592 = vst [vmem:[%s6085_s11 + $0x1d8] sm:$0xff] %v591_v59  ;;  %v595_v61 = vld [vmem:[%s6080_s10 + $0x368] sm:$0xff]  ;;  %v597_v62 = vld [vmem:[%s6080_s10 + $0x370] sm:$0xff] }
  0x33   : > { %594 = vst [vmem:[%s6085_s11 + $0x1e0] sm:$0xff] %v593_v60  ;;  %596 = vst [vmem:[%s6085_s11 + $0x1e8] sm:$0xff] %v595_v61  ;;  %v599_v63 = vld [vmem:[%s6080_s10 + $0x378] sm:$0xff]  ;;  %v601_v0 = vld [vmem:[%s6080_s10 + $0x400] sm:$0xff] }
  0x34   : > { %598 = vst [vmem:[%s6085_s11 + $0x1f0] sm:$0xff] %v597_v62  ;;  %v603_v1 = vld [vmem:[%s6080_s10 + $0x408] sm:$0xff]  ;;  %600 = vst [vmem:[%s6085_s11 + $0x1f8] sm:$0xff] %v599_v63  ;;  %v605_v2 = vld [vmem:[%s6080_s10 + $0x410] sm:$0xff] }
  0x35   : > { %602 = vst [vmem:[%s6085_s11 + $0x200] sm:$0xff] %v601_v0  ;;  %604 = vst [vmem:[%s6085_s11 + $0x208] sm:$0xff] %v603_v1  ;;  %v607_v3 = vld [vmem:[%s6080_s10 + $0x418] sm:$0xff]  ;;  %v609_v4 = vld [vmem:[%s6080_s10 + $0x420] sm:$0xff] }
  0x36   : > { %606 = vst [vmem:[%s6085_s11 + $0x210] sm:$0xff] %v605_v2  ;;  %608 = vst [vmem:[%s6085_s11 + $0x218] sm:$0xff] %v607_v3  ;;  %v611_v5 = vld [vmem:[%s6080_s10 + $0x428] sm:$0xff]  ;;  %v613_v6 = vld [vmem:[%s6080_s10 + $0x430] sm:$0xff] }
  0x37   : > { %610 = vst [vmem:[%s6085_s11 + $0x220] sm:$0xff] %v609_v4  ;;  %v615_v7 = vld [vmem:[%s6080_s10 + $0x438] sm:$0xff]  ;;  %612 = vst [vmem:[%s6085_s11 + $0x228] sm:$0xff] %v611_v5  ;;  %v617_v8 = vld [vmem:[%s6080_s10 + $0x440] sm:$0xff] }
  0x38   : > { %614 = vst [vmem:[%s6085_s11 + $0x230] sm:$0xff] %v613_v6  ;;  %616 = vst [vmem:[%s6085_s11 + $0x238] sm:$0xff] %v615_v7  ;;  %v619_v9 = vld [vmem:[%s6080_s10 + $0x448] sm:$0xff]  ;;  %v621_v10 = vld [vmem:[%s6080_s10 + $0x450] sm:$0xff] }
  0x39   : > { %618 = vst [vmem:[%s6085_s11 + $0x240] sm:$0xff] %v617_v8  ;;  %620 = vst [vmem:[%s6085_s11 + $0x248] sm:$0xff] %v619_v9  ;;  %v623_v11 = vld [vmem:[%s6080_s10 + $0x458] sm:$0xff]  ;;  %v625_v12 = vld [vmem:[%s6080_s10 + $0x460] sm:$0xff] }
  0x3a   : > { %622 = vst [vmem:[%s6085_s11 + $0x250] sm:$0xff] %v621_v10  ;;  %v627_v13 = vld [vmem:[%s6080_s10 + $0x468] sm:$0xff]  ;;  %624 = vst [vmem:[%s6085_s11 + $0x258] sm:$0xff] %v623_v11  ;;  %v629_v14 = vld [vmem:[%s6080_s10 + $0x470] sm:$0xff] }
  0x3b   : > { %626 = vst [vmem:[%s6085_s11 + $0x260] sm:$0xff] %v625_v12  ;;  %628 = vst [vmem:[%s6085_s11 + $0x268] sm:$0xff] %v627_v13  ;;  %v631_v15 = vld [vmem:[%s6080_s10 + $0x478] sm:$0xff]  ;;  %v633_v16 = vld [vmem:[%s6080_s10 + $0x500] sm:$0xff] }
  0x3c   : > { %630 = vst [vmem:[%s6085_s11 + $0x270] sm:$0xff] %v629_v14  ;;  %632 = vst [vmem:[%s6085_s11 + $0x278] sm:$0xff] %v631_v15  ;;  %v635_v17 = vld [vmem:[%s6080_s10 + $0x508] sm:$0xff]  ;;  %v637_v18 = vld [vmem:[%s6080_s10 + $0x510] sm:$0xff] }
  0x3d   : > { %634 = vst [vmem:[%s6085_s11 + $0x280] sm:$0xff] %v633_v16  ;;  %v639_v19 = vld [vmem:[%s6080_s10 + $0x518] sm:$0xff]  ;;  %636 = vst [vmem:[%s6085_s11 + $0x288] sm:$0xff] %v635_v17  ;;  %v641_v20 = vld [vmem:[%s6080_s10 + $0x520] sm:$0xff] }
  0x3e   : > { %638 = vst [vmem:[%s6085_s11 + $0x290] sm:$0xff] %v637_v18  ;;  %640 = vst [vmem:[%s6085_s11 + $0x298] sm:$0xff] %v639_v19  ;;  %v643_v21 = vld [vmem:[%s6080_s10 + $0x528] sm:$0xff]  ;;  %v645_v22 = vld [vmem:[%s6080_s10 + $0x530] sm:$0xff] }
  0x3f   : > { %642 = vst [vmem:[%s6085_s11 + $0x2a0] sm:$0xff] %v641_v20  ;;  %644 = vst [vmem:[%s6085_s11 + $0x2a8] sm:$0xff] %v643_v21  ;;  %v647_v23 = vld [vmem:[%s6080_s10 + $0x538] sm:$0xff]  ;;  %v649_v24 = vld [vmem:[%s6080_s10 + $0x540] sm:$0xff] }
  0x40   : > { %646 = vst [vmem:[%s6085_s11 + $0x2b0] sm:$0xff] %v645_v22  ;;  %v651_v25 = vld [vmem:[%s6080_s10 + $0x548] sm:$0xff]  ;;  %648 = vst [vmem:[%s6085_s11 + $0x2b8] sm:$0xff] %v647_v23  ;;  %v653_v26 = vld [vmem:[%s6080_s10 + $0x550] sm:$0xff] }
  0x41   : > { %650 = vst [vmem:[%s6085_s11 + $0x2c0] sm:$0xff] %v649_v24  ;;  %652 = vst [vmem:[%s6085_s11 + $0x2c8] sm:$0xff] %v651_v25  ;;  %v655_v27 = vld [vmem:[%s6080_s10 + $0x558] sm:$0xff]  ;;  %v657_v28 = vld [vmem:[%s6080_s10 + $0x560] sm:$0xff] }
  0x42   : > { %654 = vst [vmem:[%s6085_s11 + $0x2d0] sm:$0xff] %v653_v26  ;;  %656 = vst [vmem:[%s6085_s11 + $0x2d8] sm:$0xff] %v655_v27  ;;  %v659_v29 = vld [vmem:[%s6080_s10 + $0x568] sm:$0xff]  ;;  %v661_v30 = vld [vmem:[%s6080_s10 + $0x570] sm:$0xff] }
  0x43   : > { %658 = vst [vmem:[%s6085_s11 + $0x2e0] sm:$0xff] %v657_v28  ;;  %v663_v31 = vld [vmem:[%s6080_s10 + $0x578] sm:$0xff]  ;;  %660 = vst [vmem:[%s6085_s11 + $0x2e8] sm:$0xff] %v659_v29  ;;  %v665_v32 = vld [vmem:[%s6080_s10 + $0x600] sm:$0xff] }
  0x44   : > { %662 = vst [vmem:[%s6085_s11 + $0x2f0] sm:$0xff] %v661_v30  ;;  %664 = vst [vmem:[%s6085_s11 + $0x2f8] sm:$0xff] %v663_v31  ;;  %v667_v33 = vld [vmem:[%s6080_s10 + $0x608] sm:$0xff]  ;;  %v669_v34 = vld [vmem:[%s6080_s10 + $0x610] sm:$0xff] }
  0x45   : > { %666 = vst [vmem:[%s6085_s11 + $0x300] sm:$0xff] %v665_v32  ;;  %668 = vst [vmem:[%s6085_s11 + $0x308] sm:$0xff] %v667_v33  ;;  %v671_v35 = vld [vmem:[%s6080_s10 + $0x618] sm:$0xff]  ;;  %v673_v36 = vld [vmem:[%s6080_s10 + $0x620] sm:$0xff] }
  0x46   : > { %670 = vst [vmem:[%s6085_s11 + $0x310] sm:$0xff] %v669_v34  ;;  %v675_v37 = vld [vmem:[%s6080_s10 + $0x628] sm:$0xff]  ;;  %672 = vst [vmem:[%s6085_s11 + $0x318] sm:$0xff] %v671_v35  ;;  %v677_v38 = vld [vmem:[%s6080_s10 + $0x630] sm:$0xff] }
  0x47   : > { %674 = vst [vmem:[%s6085_s11 + $0x320] sm:$0xff] %v673_v36  ;;  %676 = vst [vmem:[%s6085_s11 + $0x328] sm:$0xff] %v675_v37  ;;  %v679_v39 = vld [vmem:[%s6080_s10 + $0x638] sm:$0xff]  ;;  %v681_v40 = vld [vmem:[%s6080_s10 + $0x640] sm:$0xff] }
  0x48   : > { %678 = vst [vmem:[%s6085_s11 + $0x330] sm:$0xff] %v677_v38  ;;  %680 = vst [vmem:[%s6085_s11 + $0x338] sm:$0xff] %v679_v39  ;;  %v683_v41 = vld [vmem:[%s6080_s10 + $0x648] sm:$0xff]  ;;  %v685_v42 = vld [vmem:[%s6080_s10 + $0x650] sm:$0xff] }
  0x49   : > { %682 = vst [vmem:[%s6085_s11 + $0x340] sm:$0xff] %v681_v40  ;;  %v687_v43 = vld [vmem:[%s6080_s10 + $0x658] sm:$0xff]  ;;  %684 = vst [vmem:[%s6085_s11 + $0x348] sm:$0xff] %v683_v41  ;;  %v689_v44 = vld [vmem:[%s6080_s10 + $0x660] sm:$0xff] }
  0x4a   : > { %686 = vst [vmem:[%s6085_s11 + $0x350] sm:$0xff] %v685_v42  ;;  %688 = vst [vmem:[%s6085_s11 + $0x358] sm:$0xff] %v687_v43  ;;  %v691_v45 = vld [vmem:[%s6080_s10 + $0x668] sm:$0xff]  ;;  %v693_v46 = vld [vmem:[%s6080_s10 + $0x670] sm:$0xff] }
  0x4b   : > { %690 = vst [vmem:[%s6085_s11 + $0x360] sm:$0xff] %v689_v44  ;;  %692 = vst [vmem:[%s6085_s11 + $0x368] sm:$0xff] %v691_v45  ;;  %v695_v47 = vld [vmem:[%s6080_s10 + $0x678] sm:$0xff]  ;;  %v697_v48 = vld [vmem:[%s6080_s10 + $0x700] sm:$0xff] }
  0x4c   : > { %694 = vst [vmem:[%s6085_s11 + $0x370] sm:$0xff] %v693_v46  ;;  %v699_v49 = vld [vmem:[%s6080_s10 + $0x708] sm:$0xff]  ;;  %696 = vst [vmem:[%s6085_s11 + $0x378] sm:$0xff] %v695_v47  ;;  %v701_v50 = vld [vmem:[%s6080_s10 + $0x710] sm:$0xff] }
  0x4d   : > { %698 = vst [vmem:[%s6085_s11 + $0x380] sm:$0xff] %v697_v48  ;;  %700 = vst [vmem:[%s6085_s11 + $0x388] sm:$0xff] %v699_v49  ;;  %v703_v51 = vld [vmem:[%s6080_s10 + $0x718] sm:$0xff]  ;;  %v705_v52 = vld [vmem:[%s6080_s10 + $0x720] sm:$0xff] }
  0x4e   : > { %702 = vst [vmem:[%s6085_s11 + $0x390] sm:$0xff] %v701_v50  ;;  %704 = vst [vmem:[%s6085_s11 + $0x398] sm:$0xff] %v703_v51  ;;  %v707_v53 = vld [vmem:[%s6080_s10 + $0x728] sm:$0xff]  ;;  %v709_v54 = vld [vmem:[%s6080_s10 + $0x730] sm:$0xff] }
  0x4f   : > { %706 = vst [vmem:[%s6085_s11 + $0x3a0] sm:$0xff] %v705_v52  ;;  %v711_v55 = vld [vmem:[%s6080_s10 + $0x738] sm:$0xff]  ;;  %708 = vst [vmem:[%s6085_s11 + $0x3a8] sm:$0xff] %v707_v53  ;;  %v713_v56 = vld [vmem:[%s6080_s10 + $0x740] sm:$0xff] }
  0x50   : > { %710 = vst [vmem:[%s6085_s11 + $0x3b0] sm:$0xff] %v709_v54  ;;  %712 = vst [vmem:[%s6085_s11 + $0x3b8] sm:$0xff] %v711_v55  ;;  %v715_v57 = vld [vmem:[%s6080_s10 + $0x748] sm:$0xff]  ;;  %v717_v58 = vld [vmem:[%s6080_s10 + $0x750] sm:$0xff] }
  0x51   : > { %714 = vst [vmem:[%s6085_s11 + $0x3c0] sm:$0xff] %v713_v56  ;;  %716 = vst [vmem:[%s6085_s11 + $0x3c8] sm:$0xff] %v715_v57  ;;  %v719_v59 = vld [vmem:[%s6080_s10 + $0x758] sm:$0xff]  ;;  %v721_v60 = vld [vmem:[%s6080_s10 + $0x760] sm:$0xff] }
  0x52   : > { %718 = vst [vmem:[%s6085_s11 + $0x3d0] sm:$0xff] %v717_v58  ;;  %v723_v61 = vld [vmem:[%s6080_s10 + $0x768] sm:$0xff]  ;;  %720 = vst [vmem:[%s6085_s11 + $0x3d8] sm:$0xff] %v719_v59  ;;  %v725_v62 = vld [vmem:[%s6080_s10 + $0x770] sm:$0xff] }
  0x53   : > { %722 = vst [vmem:[%s6085_s11 + $0x3e0] sm:$0xff] %v721_v60  ;;  %724 = vst [vmem:[%s6085_s11 + $0x3e8] sm:$0xff] %v723_v61  ;;  %v727_v63 = vld [vmem:[%s6080_s10 + $0x778] sm:$0xff] }
  0x54   : > { %726 = vst [vmem:[%s6085_s11 + $0x3f0] sm:$0xff] %v725_v62  ;;  %728 = vst [vmem:[%s6085_s11 + $0x3f8] sm:$0xff] %v727_v63 }
  0x55 PF: > { %p4486_p10 = scmp.ge.s32.totalorder %s5990_s21, 1  ;;  %p733_p11 = scmp.lt.s32.totalorder %s5990_s21, 3 }
  0x57   : > { %p734_p12 = pnand %p4486_p10, %p733_p11 }
  0x58   : > { %s6349_s16 = sand.u32 (!%p734_p12), 1, %s5982_s19   ;;  %s4753_s10 = sshll.u32 (!%p734_p12), %s4479_s22, 11 }
  0x59   : > { %737 = sbr.rel (%p734_p12) target bundleno = 2369 (0x941), region = 74  ;;  %s4487_s17 = sshll.u32 (!%p734_p12), %s6349_s16, 10 }
  0x5a   : > { %s6355_s26 = scalar_lea.vmem (!%p734_p12), [#allocation3], %s4487_s17  ;;  %s4488_s8 = sshll.u32 (!%p734_p12), %s6349_s16, 7 }
  0x5b   : > { %s7061_s9 = scalar_lea.vmem (!%p734_p12), [#allocation4], %s4488_s8  ;;  %s7097_s14 = scalar_lea.hbm (!%p734_p12), %s7150_s5, %s4753_s10 }
  0x5c   : > { %s4412_s11 = sshll.u32 (!%p734_p12), %s7061_s9, 4  ;;  %s4399_s22 = scalar_lea.sflag (!%p734_p12), [#allocation5], %s6349_s16  ;;  %s7099_s11 = int_to_ptr.vmem [resolvable:$true] %s4412_s11 }
  0x5d   : > { %s5930_s15 = scalar_lea.vmem (!%p734_p12), %s7099_s11, 2048  ;;  %s5993_s17 = smov (!%p734_p12), [#allocation4]  }
  0x5e   : > { %v900_v0 = vld [vmem:[%s7146_s1 + $0x18] sm:$0x7]  ;;  %vm1286_vm0 = vcmask 1042432   ;;  %v899_v1 = vld [vmem:[%s7146_s1 + $0x10] sm:$0xff]  ;;  %vm901_vm1 = vcmask 220160   ;;  %v898_v2 = vld [vmem:[%s7146_s1 + $0x8] sm:$0xff]  ;;  %p5931_p13 = scmp.ne.s32.totalorder %s7099_s11, %s5930_s15 }
  0x5f   : > { %5554 = vmatprep.subr.msk.mxu1 %vm1286_vm0, %v900_v0  ;;  %5066 = vmatprep.subr.msk.mxu0 %vm1286_vm0, %v900_v0  ;;  %v889_v3 = vld [vmem:[%s6355_s26 + $0x3c0] sm:$0xff]  ;;  %v890_v5 = vld [vmem:[%s6355_s26 + $0x3c8] sm:$0xff]  ;;  %v6366_v6 = vld [vmem:[%s7147_s2 + $0x18] sm:$0xff]  ;;  %v5992_v23 = vmov 0.0   ;;  %vm1995_vm2 = vcmask 261120   ;;  %s5934_s23 = sshll.u32 %s5993_s17, 4  ;;  %s5935_s23 = int_to_ptr.vmem [resolvable:$false] %s5934_s23 }
  0x60   : > { %5558 = vmatpush3.msk.msra.mxu1 %vm1286_vm0, %v900_v0  ;;  %5067 = vmatpush3.msk.msra.mxu0 %vm1286_vm0, %v900_v0  ;;  %v897_v4 = vld [vmem:[%s7146_s1] sm:$0xff]  ;;  %v891_v7 = vld [vmem:[%s6355_s26 + $0x3d0] sm:$0xff]  ;;  %v892_v10 = vld [vmem:[%s6355_s26 + $0x3d8] sm:$0xff]  ;;  %p5932_p0 = pnand %p5931_p13, %p6064_p6  ;;  %s5936_s25 = scalar_lea.vmem %s5935_s23, 4096 }
  0x61   : > { %5555 = vmatprep.subr.mxu1 %v899_v1  ;;  %5068 = vmatprep.subr.mxu0 %v899_v1  ;;  %v6372_v8 = vld [vmem:[%s7147_s2 + $0x10] sm:$0xff]  ;;  %v769_v9 = vld [vmem:[%s6355_s26] sm:$0xff]  ;;  %v770_v11 = vld [vmem:[%s6355_s26 + $0x8] sm:$0xff]  ;;  %p5937_p2 = scmp.lt.s32.totalorder %s7099_s11, %s5935_s23  ;;  %p5938_p3 = scmp.lt.s32.totalorder %s5936_s25, %s5930_s15 }
  0x62   : > { %5559 = vmatpush3.msra.mxu1 %v899_v1  ;;  %5254 = vmatprep.mubr.msk.f32.mxu1 %vm901_vm1, %v889_v3  ;;  %v893_v12 = vld [vmem:[%s6355_s26 + $0x3e0] sm:$0xff]  ;;  %v6386_v13 = vld [vmem:[%s7147_s2 + $0x8] sm:$0xff]  ;;  %v771_v14 = vld [vmem:[%s6355_s26 + $0x10] sm:$0xff]  ;;  %p5933_p1 = pneg %p5932_p0 }
  0x63   : > { %5556 = vmatprep.subr.mxu1 %v898_v2  ;;  %5069 = vmatpush3.msra.mxu0 %v899_v1  ;;  %v6396_v15 = vld [vmem:[%s7147_s2] sm:$0xff]  ;;  %v894_v16 = vld [vmem:[%s6355_s26 + $0x3e8] sm:$0xff]  ;;  %v772_v17 = vld [vmem:[%s6355_s26 + $0x18] sm:$0xff]  ;;  %p5939_p4 = por %p5938_p3, %p5937_p2 }
  0x64   : > { %5560 = vmatpush3.msra.mxu1 %v898_v2  ;;  %5070 = vmatprep.subr.mxu0 %v898_v2  ;;  %v895_v18 = vld [vmem:[%s6355_s26 + $0x3f0] sm:$0xff]  ;;  %v773_v19 = vld [vmem:[%s6355_s26 + $0x20] sm:$0xff]  ;;  %v896_v20 = vld [vmem:[%s6355_s26 + $0x3f8] sm:$0xff] }
  0x65   : > { %5557 = vmatprep.subr.mxu1 %v897_v4  ;;  %5071 = vmatpush3.msra.mxu0 %v898_v2  ;;  %v774_v21 = vld [vmem:[%s6355_s26 + $0x28] sm:$0xff]  ;;  %v775_v22 = vld [vmem:[%s6355_s26 + $0x30] sm:$0xff]  ;;  %v776_v24 = vld [vmem:[%s6355_s26 + $0x38] sm:$0xff]  ;;  %p5940_p5 = pnand %p5939_p4, %p5933_p1 }
  0x66   : > { %5561 = vmatpush3.msra.mxu1 %v897_v4  ;;  %5072 = vmatprep.subr.mxu0 %v897_v4  ;;  %v777_v25 = vld [vmem:[%s6355_s26 + $0x40] sm:$0xff]  ;;  %v778_v26 = vld [vmem:[%s6355_s26 + $0x48] sm:$0xff]  ;;  %v779_v27 = vld [vmem:[%s6355_s26 + $0x50] sm:$0xff] }
  0x67   : > { %5255 = vmatmul.mubr.msk.f32.vlgmr.msra.gmra.mxu1 %vm901_vm1, %v890_v5  ;;  %5266 = vmatprep.subr.mxu1 %v6366_v6  ;;  %v780_v28 = vld [vmem:[%s6355_s26 + $0x58] sm:$0xff]  ;;  %v781_v29 = vld [vmem:[%s6355_s26 + $0x60] sm:$0xff]  ;;  %v782_v30 = vld [vmem:[%s6355_s26 + $0x68] sm:$0xff] }
  0x68   : > { %5267 = vmatpush3.msra.mxu1 %v6366_v6  ;;  %5257 = vmatprep.mubr.msk.f32.mxu1 %vm901_vm1, %v891_v7  ;;  %v783_v31 = vld [vmem:[%s6355_s26 + $0x70] sm:$0xff]  ;;  %v784_v32 = vld [vmem:[%s6355_s26 + $0x78] sm:$0xff]  ;;  %v785_v33 = vld [vmem:[%s6355_s26 + $0x80] sm:$0xff] }
  0x69   : > { %5268 = vmatprep.subr.mxu1 %v6372_v8  ;;  %5073 = vmatpush3.msra.mxu0 %v897_v4  ;;  %v786_v34 = vld [vmem:[%s6355_s26 + $0x88] sm:$0xff]  ;;  %v787_v35 = vld [vmem:[%s6355_s26 + $0x90] sm:$0xff]  ;;  %v788_v36 = vld [vmem:[%s6355_s26 + $0x98] sm:$0xff] }
  0x6a   : > { %5269 = vmatpush3.msra.mxu1 %v6372_v8  ;;  %5074 = vmatprep.mubr.msk.f32.mxu0 %vm901_vm1, %v769_v9  ;;  %v789_v37 = vld [vmem:[%s6355_s26 + $0xa0] sm:$0xff]  ;;  %v790_v38 = vld [vmem:[%s6355_s26 + $0xa8] sm:$0xff]  ;;  %v791_v39 = vld [vmem:[%s6355_s26 + $0xb0] sm:$0xff] }
  0x6b   : > { %5258 = vmatmul.mubr.msk.f32.gmra.mxu1 %vm901_vm1, %v892_v10  ;;  %5075 = vmatmul.mubr.msk.f32.vlgmr.msra.gmra.mxu0 %vm901_vm1, %v770_v11  ;;  %v792_v40 = vld [vmem:[%s6355_s26 + $0xb8] sm:$0xff]  ;;  %v793_v41 = vld [vmem:[%s6355_s26 + $0xc0] sm:$0xff]  ;;  %v794_v42 = vld [vmem:[%s6355_s26 + $0xc8] sm:$0xff] }
  0x6c   : > { %5260 = vmatprep.mubr.msk.f32.mxu1 %vm901_vm1, %v893_v12  ;;  %5270 = vmatprep.subr.mxu1 %v6386_v13  ;;  %v795_v43 = vld [vmem:[%s6355_s26 + $0xd0] sm:$0xff]  ;;  %v796_v44 = vld [vmem:[%s6355_s26 + $0xd8] sm:$0xff]  ;;  %v797_v45 = vld [vmem:[%s6355_s26 + $0xe0] sm:$0xff] }
  0x6d   : > { %5271 = vmatpush3.msra.mxu1 %v6386_v13  ;;  %5077 = vmatprep.mubr.msk.f32.mxu0 %vm901_vm1, %v771_v14  ;;  %v798_v46 = vld [vmem:[%s6355_s26 + $0xe8] sm:$0xff]  ;;  %v799_v47 = vld [vmem:[%s6355_s26 + $0xf0] sm:$0xff]  ;;  %v800_v48 = vld [vmem:[%s6355_s26 + $0xf8] sm:$0xff] }
  0x6e   : > { %5272 = vmatprep.subr.mxu1 %v6396_v15 }
  0x6f   : > { %5261 = vmatmul.mubr.msk.f32.gmra.mxu1 %vm901_vm1, %v894_v16  ;;  %5078 = vmatmul.mubr.msk.f32.gmra.mxu0 %vm901_vm1, %v772_v17 }
  0x70   : > { %5263 = vmatprep.mubr.msk.f32.mxu1 %vm901_vm1, %v895_v18  ;;  %5273 = vmatpush3.msra.mxu1 %v6396_v15 }
  0x71   : > { %5080 = vmatprep.mubr.msk.f32.mxu0 %vm901_vm1, %v773_v19  ;;  %5298 = vmatprep.subr.mxu1 %v6366_v6 }
  0x73   : > { %5264 = vmatmul.mubr.msk.f32.gmra.mxu1 %vm901_vm1, %v896_v20  ;;  %5081 = vmatmul.mubr.msk.f32.gmra.mxu0 %vm901_vm1, %v774_v21 }
  0x74   : > { %5274 = vmatprep.mubr.f32.mxu1 %v5992_v23  ;;  %5083 = vmatprep.mubr.msk.f32.mxu0 %vm901_vm1, %v775_v22 }
  0x77   : > { %5275 = vmatmul.mubr.f32.vlgmr.msra.gmra.mxu1 %v5992_v23  ;;  %5084 = vmatmul.mubr.msk.f32.gmra.mxu0 %vm901_vm1, %v776_v24 }
  0x78   : > { %5277 = vmatprep.mubr.f32.mxu1 %v5992_v23  ;;  %5086 = vmatprep.mubr.msk.f32.mxu0 %vm901_vm1, %v777_v25 }
  0x79   : > { %5299 = vmatpush3.msra.mxu1 %v6366_v6 }
  0x7a   : > { %5300 = vmatprep.subr.mxu1 %v6372_v8 }
  0x7b   : > { %5278 = vmatmul.mubr.f32.gmra.mxu1 %v5992_v23  ;;  %5087 = vmatmul.mubr.msk.f32.gmra.mxu0 %vm901_vm1, %v778_v26 }
  0x7c   : > { %5280 = vmatprep.mubr.f32.mxu1 %v5992_v23  ;;  %5089 = vmatprep.mubr.msk.f32.mxu0 %vm901_vm1, %v779_v27 }
  0x7d   : > { %5301 = vmatpush3.msra.mxu1 %v6372_v8 }
  0x7e   : > { %5302 = vmatprep.subr.mxu1 %v6386_v13 }
  0x7f   : > { %5281 = vmatmul.mubr.f32.gmra.mxu1 %v5992_v23  ;;  %5090 = vmatmul.mubr.msk.f32.gmra.mxu0 %vm901_vm1, %v780_v28 }
  0x80   : > { %5283 = vmatprep.mubr.f32.mxu1 %v5992_v23  ;;  %5092 = vmatprep.mubr.msk.f32.mxu0 %vm901_vm1, %v781_v29 }
  0x81   : > { %5303 = vmatpush3.msra.mxu1 %v6386_v13 }
  0x82   : > { %5304 = vmatprep.subr.mxu1 %v6396_v15 }
  0x83   : > { %5284 = vmatmul.mubr.f32.gmra.mxu1 %v5992_v23  ;;  %5093 = vmatmul.mubr.msk.f32.gmra.mxu0 %vm901_vm1, %v782_v30 }
  0x84   : > { %5286 = vmatprep.mubr.f32.mxu1 %v5992_v23  ;;  %5095 = vmatprep.mubr.msk.f32.mxu0 %vm901_vm1, %v783_v31 }
  0x85   : > { %5305 = vmatpush3.msra.mxu1 %v6396_v15 }
  0x86   : > { %5330 = vmatprep.subr.mxu1 %v6366_v6 }
  0x87   : > { %5287 = vmatmul.mubr.f32.gmra.mxu1 %v5992_v23  ;;  %5096 = vmatmul.mubr.msk.f32.gmra.mxu0 %vm901_vm1, %v784_v32 }
  0x88   : > { %5289 = vmatprep.mubr.f32.mxu1 %v5992_v23  ;;  %5098 = vmatprep.mubr.msk.f32.mxu0 %vm901_vm1, %v785_v33 }
  0x8b   : > { %5290 = vmatmul.mubr.f32.gmra.mxu1 %v5992_v23  ;;  %5099 = vmatmul.mubr.msk.f32.gmra.mxu0 %vm901_vm1, %v786_v34 }
  0x8c   : > { %5292 = vmatprep.mubr.f32.mxu1 %v5992_v23  ;;  %5101 = vmatprep.mubr.msk.f32.mxu0 %vm901_vm1, %v787_v35 }
  0x8f   : > { %5293 = vmatmul.mubr.f32.gmra.mxu1 %v5992_v23  ;;  %5102 = vmatmul.mubr.msk.f32.gmra.mxu0 %vm901_vm1, %v788_v36 }
  0x90   : > { %5295 = vmatprep.mubr.f32.mxu1 %v5992_v23  ;;  %5104 = vmatprep.mubr.msk.f32.mxu0 %vm901_vm1, %v789_v37 }
  0x93   : > { %5296 = vmatmul.mubr.f32.gmra.mxu1 %v5992_v23  ;;  %5105 = vmatmul.mubr.msk.f32.gmra.mxu0 %vm901_vm1, %v790_v38 }
  0x94   : > { %5107 = vmatprep.mubr.msk.f32.mxu0 %vm901_vm1, %v791_v39 }
  0x97   : > { %5108 = vmatmul.mubr.msk.f32.gmra.mxu0 %vm901_vm1, %v792_v40 }
  0x98   : > { %5110 = vmatprep.mubr.msk.f32.mxu0 %vm901_vm1, %v793_v41 }
  0x9b   : > { %5111 = vmatmul.mubr.msk.f32.gmra.mxu0 %vm901_vm1, %v794_v42 }
  0x9c   : > { %5113 = vmatprep.mubr.msk.f32.mxu0 %vm901_vm1, %v795_v43 }
  0x9f   : > { %5114 = vmatmul.mubr.msk.f32.gmra.mxu0 %vm901_vm1, %v796_v44 }
  0xa0   : > { %5116 = vmatprep.mubr.msk.f32.mxu0 %vm901_vm1, %v797_v45 }
  0xa3   : > { %5117 = vmatmul.mubr.msk.f32.gmra.mxu0 %vm901_vm1, %v798_v46 }
  0xa4   : > { %5119 = vmatprep.mubr.msk.f32.mxu0 %vm901_vm1, %v799_v47 }
  0xa7   : > { %5120 = vmatmul.mubr.msk.f32.gmra.mxu0 %vm901_vm1, %v800_v48 }
 0x127   : > { %v5256_v49 = vpop.f32.mrf.mxu1 }
 0x128   : > { %2117 = vst.msk [vmem:[#allocation2 + $0x3c8] sm:$0xff] %vm1995_vm2, %v5256_v49 }
 0x129   : > { %v1956_v50 = vpop.f32.mrf.mxu1 }
 0x12a   : > { %2116 = vst.msk [vmem:[#allocation2 + $0x3c0] sm:$0xff] %vm1995_vm2, %v1956_v50 }
 0x12b   : > { %v5259_v51 = vpop.f32.mrf.mxu1  ;;  %v5076_v52 = vpop.f32.mrf.mxu0 }
 0x12c   : > { %2119 = vst.msk [vmem:[#allocation2 + $0x3d8] sm:$0xff] %vm1995_vm2, %v5259_v51  ;;  %1997 = vst.msk [vmem:[#allocation2 + $0x8] sm:$0xff] %vm1995_vm2, %v5076_v52 }
 0x12d   : > { %v1966_v53 = vpop.f32.mrf.mxu1  ;;  %v1356_v54 = vpop.f32.mrf.mxu0 }
 0x12e   : > { %2118 = vst.msk [vmem:[#allocation2 + $0x3d0] sm:$0xff] %vm1995_vm2, %v1966_v53  ;;  %1996 = vst.msk [vmem:[#allocation2] sm:$0xff] %vm1995_vm2, %v1356_v54 }
 0x12f   : > { %v5262_v55 = vpop.f32.mrf.mxu1  ;;  %v5079_v56 = vpop.f32.mrf.mxu0 }
 0x130   : > { %2121 = vst.msk [vmem:[#allocation2 + $0x3e8] sm:$0xff] %vm1995_vm2, %v5262_v55  ;;  %1999 = vst.msk [vmem:[#allocation2 + $0x18] sm:$0xff] %vm1995_vm2, %v5079_v56 }
 0x131   : > { %v1976_v57 = vpop.f32.mrf.mxu1  ;;  %v1366_v58 = vpop.f32.mrf.mxu0 }
 0x132   : > { %2120 = vst.msk [vmem:[#allocation2 + $0x3e0] sm:$0xff] %vm1995_vm2, %v1976_v57  ;;  %1998 = vst.msk [vmem:[#allocation2 + $0x10] sm:$0xff] %vm1995_vm2, %v1366_v58 }
 0x133   : > { %v5265_v59 = vpop.f32.mrf.mxu1  ;;  %v5082_v60 = vpop.f32.mrf.mxu0  ;;  %v2129_v63 = vld [vmem:[#allocation2 + $0x8] sm:$0xff] }
 0x134   : > { %2123 = vst.msk [vmem:[#allocation2 + $0x3f8] sm:$0xff] %vm1995_vm2, %v5265_v59  ;;  %2001 = vst.msk [vmem:[#allocation2 + $0x28] sm:$0xff] %vm1995_vm2, %v5082_v60 }
 0x135   : > { %v1986_v61 = vpop.f32.mrf.mxu1  ;;  %v1376_v62 = vpop.f32.mrf.mxu0  ;;  %v2128_v3 = vld [vmem:[#allocation2] sm:$0xff] }
 0x136   : > { %2122 = vst.msk [vmem:[#allocation2 + $0x3f0] sm:$0xff] %vm1995_vm2, %v1986_v61  ;;  %2000 = vst.msk [vmem:[#allocation2 + $0x20] sm:$0xff] %vm1995_vm2, %v1376_v62 }
 0x137   : > { %v5276_v0 = vpop.f32.mrf.mxu1  ;;  %v5085_v1 = vpop.f32.mrf.mxu0  ;;  %v2131_v9 = vld [vmem:[#allocation2 + $0x18] sm:$0xff] }
 0x138   : > { %2003 = vst.msk [vmem:[#allocation2 + $0x38] sm:$0xff] %vm1995_vm2, %v5085_v1  ;;  %v2293_v2 = vadd.f32 %v5276_v0, %v2129_v63 }
 0x139   : > { %v2213_v4 = vpop.f32.mrf.mxu1  ;;  %v1386_v5 = vpop.f32.mrf.mxu0  ;;  %v2130_v14 = vld [vmem:[#allocation2 + $0x10] sm:$0xff] }
 0x13a   : > { %v2292_v7 = vadd.f32 %v2213_v4, %v2128_v3  ;;  %2002 = vst.msk [vmem:[#allocation2 + $0x30] sm:$0xff] %vm1995_vm2, %v1386_v5 }
 0x13b   : > { %v5279_v10 = vpop.f32.mrf.mxu1  ;;  %v5088_v11 = vpop.f32.mrf.mxu0  ;;  %v2133_v17 = vld [vmem:[#allocation2 + $0x28] sm:$0xff] }
 0x13c   : > { %5604 = vtanh.f32 %v2292_v7  ;;  %2005 = vst.msk [vmem:[#allocation2 + $0x48] sm:$0xff] %vm1995_vm2, %v5088_v11  ;;  %v2295_v12 = vadd.f32 %v5279_v10, %v2131_v9 }
 0x13d   : > { %5606 = vtanh.f32 %v2293_v2  ;;  %v2223_v16 = vpop.f32.mrf.mxu1  ;;  %v1396_v18 = vpop.f32.mrf.mxu0  ;;  %v2132_v21 = vld [vmem:[#allocation2 + $0x20] sm:$0xff] }
 0x13e   : > { %v2294_v19 = vadd.f32 %v2223_v16, %v2130_v14  ;;  %2004 = vst.msk [vmem:[#allocation2 + $0x40] sm:$0xff] %vm1995_vm2, %v1396_v18 }
 0x13f   : > { %v5282_v20 = vpop.f32.mrf.mxu1  ;;  %v5091_v22 = vpop.f32.mrf.mxu0  ;;  %v2135_v25 = vld [vmem:[#allocation2 + $0x38] sm:$0xff] }
 0x140   : > { %5608 = vtanh.f32 %v2294_v19  ;;  %v2297_v23 = vadd.f32 %v5282_v20, %v2133_v17  ;;  %2007 = vst.msk [vmem:[#allocation2 + $0x58] sm:$0xff] %vm1995_vm2, %v5091_v22 }
 0x141   : > { %5610 = vtanh.f32 %v2295_v12  ;;  %v2233_v24 = vpop.f32.mrf.mxu1  ;;  %v1406_v26 = vpop.f32.mrf.mxu0  ;;  %v2134_v29 = vld [vmem:[#allocation2 + $0x30] sm:$0xff] }
 0x142   : > { %v2296_v27 = vadd.f32 %v2233_v24, %v2132_v21  ;;  %2006 = vst.msk [vmem:[#allocation2 + $0x50] sm:$0xff] %vm1995_vm2, %v1406_v26  ;;  %5612 = vtanh.f32 %v2297_v23  ;;  %v801_v26 = vld [vmem:[%s6355_s26 + $0x100] sm:$0xff] }
 0x143   : > { %v5285_v28 = vpop.f32.mrf.mxu1  ;;  %v5094_v30 = vpop.f32.mrf.mxu0  ;;  %v2137_v33 = vld [vmem:[#allocation2 + $0x48] sm:$0xff]  ;;  %5122 = vmatprep.mubr.msk.f32.mxu0 %vm901_vm1, %v801_v26 }
 0x144   : > { %5614 = vtanh.f32 %v2296_v27  ;;  %v2299_v31 = vadd.f32 %v5285_v28, %v2135_v25  ;;  %2009 = vst.msk [vmem:[#allocation2 + $0x68] sm:$0xff] %vm1995_vm2, %v5094_v30  ;;  %v802_v27 = vld [vmem:[%s6355_s26 + $0x108] sm:$0xff]  ;;  %v803_v30 = vld [vmem:[%s6355_s26 + $0x110] sm:$0xff] }
 0x145   : > { %v2243_v32 = vpop.f32.mrf.mxu1  ;;  %v1416_v34 = vpop.f32.mrf.mxu0  ;;  %v2136_v37 = vld [vmem:[#allocation2 + $0x40] sm:$0xff]  ;;  %5123 = vmatmul.mubr.msk.f32.gmra.mxu0 %vm901_vm1, %v802_v27 }
 0x146   : > { %v2298_v35 = vadd.f32 %v2243_v32, %v2134_v29  ;;  %2008 = vst.msk [vmem:[#allocation2 + $0x60] sm:$0xff] %vm1995_vm2, %v1416_v34  ;;  %5616 = vtanh.f32 %v2299_v31  ;;  %5125 = vmatprep.mubr.msk.f32.mxu0 %vm901_vm1, %v803_v30  ;;  %v804_v31 = vld [vmem:[%s6355_s26 + $0x118] sm:$0xff] }
 0x147   : > { %v5288_v36 = vpop.f32.mrf.mxu1  ;;  %v5097_v38 = vpop.f32.mrf.mxu0  ;;  %v2139_v42 = vld [vmem:[#allocation2 + $0x58] sm:$0xff] }
 0x148   : > { %5618 = vtanh.f32 %v2298_v35  ;;  %v2301_v39 = vadd.f32 %v5288_v36, %v2137_v33  ;;  %2011 = vst.msk [vmem:[#allocation2 + $0x78] sm:$0xff] %vm1995_vm2, %v5097_v38  ;;  %v805_v35 = vld [vmem:[%s6355_s26 + $0x120] sm:$0xff]  ;;  %v806_v36 = vld [vmem:[%s6355_s26 + $0x128] sm:$0xff] }
 0x149   : > { %v5605_v40 = vpop.eup %5604  ;;  %v2253_v41 = vpop.f32.mrf.mxu1  ;;  %v2138_v47 = vld [vmem:[#allocation2 + $0x50] sm:$0xff]  ;;  %5126 = vmatmul.mubr.msk.f32.gmra.mxu0 %vm901_vm1, %v804_v31 }
 0x14a   : > { %v1426_v43 = vpop.f32.mrf.mxu0  ;;  %v5607_v44 = vpop.eup %5606  ;;  %v2300_v45 = vadd.f32 %v2253_v41, %v2136_v37  ;;  %5306 = vmatprep.mubr.msk.f32.mxu1 %vm1995_vm2, %v5605_v40  ;;  %5620 = vtanh.f32 %v2301_v39  ;;  %5128 = vmatprep.mubr.msk.f32.mxu0 %vm901_vm1, %v805_v35  ;;  %v807_v39 = vld [vmem:[%s6355_s26 + $0x130] sm:$0xff]  ;;  %v808_v40 = vld [vmem:[%s6355_s26 + $0x138] sm:$0xff]  ;;  %v809_v41 = vld [vmem:[%s6355_s26 + $0x140] sm:$0xff] }
 0x14b   : > { %2010 = vst.msk [vmem:[#allocation2 + $0x70] sm:$0xff] %vm1995_vm2, %v1426_v43  ;;  %v5291_v46 = vpop.f32.mrf.mxu1  ;;  %5307 = vmatmul.mubr.msk.f32.vlgmr.msra.gmra.mxu1 %vm1995_vm2, %v5607_v44  ;;  %v2141_v51 = vld [vmem:[#allocation2 + $0x68] sm:$0xff]  ;;  %v811_v43 = vld [vmem:[%s6355_s26 + $0x150] sm:$0xff]  ;;  %v812_v44 = vld [vmem:[%s6355_s26 + $0x158] sm:$0xff] }
 0x14c   : > { %5622 = vtanh.f32 %v2300_v45  ;;  %v2303_v48 = vadd.f32 %v5291_v46, %v2139_v42  ;;  %5331 = vmatpush3.msra.mxu1 %v6366_v6  ;;  %v5100_v17 = vpop.f32.mrf.mxu0  ;;  %v810_v42 = vld [vmem:[%s6355_s26 + $0x148] sm:$0xff]  ;;  %v813_v45 = vld [vmem:[%s6355_s26 + $0x160] sm:$0xff] }
 0x14d   : > { %v5609_v49 = vpop.eup %5608  ;;  %v2263_v50 = vpop.f32.mrf.mxu1  ;;  %5332 = vmatprep.subr.mxu1 %v6372_v8  ;;  %v2140_v55 = vld [vmem:[#allocation2 + $0x60] sm:$0xff]  ;;  %2013 = vst.msk [vmem:[#allocation2 + $0x88] sm:$0xff] %vm1995_vm2, %v5100_v17  ;;  %5129 = vmatmul.mubr.msk.f32.gmra.mxu0 %vm901_vm1, %v806_v36  ;;  %v814_v46 = vld [vmem:[%s6355_s26 + $0x168] sm:$0xff] }
 0x14e   : > { %v5611_v52 = vpop.eup %5610  ;;  %v2302_v53 = vadd.f32 %v2263_v50, %v2138_v47  ;;  %5309 = vmatprep.mubr.msk.f32.mxu1 %vm1995_vm2, %v5609_v49  ;;  %5333 = vmatpush3.msra.mxu1 %v6372_v8  ;;  %5624 = vtanh.f32 %v2303_v48  ;;  %v1436_v18 = vpop.f32.mrf.mxu0  ;;  %v815_v47 = vld [vmem:[%s6355_s26 + $0x170] sm:$0xff]  ;;  %v816_v48 = vld [vmem:[%s6355_s26 + $0x178] sm:$0xff] }
 0x14f   : > { %v5294_v54 = vpop.f32.mrf.mxu1  ;;  %5310 = vmatmul.mubr.msk.f32.gmra.mxu1 %vm1995_vm2, %v5611_v52  ;;  %5334 = vmatprep.subr.mxu1 %v6386_v13  ;;  %v5613_v56 = vpop.eup %5612  ;;  %v2143_v60 = vld [vmem:[#allocation2 + $0x78] sm:$0xff]  ;;  %2012 = vst.msk [vmem:[#allocation2 + $0x80] sm:$0xff] %vm1995_vm2, %v1436_v18 }
 0x150   : > { %5626 = vtanh.f32 %v2302_v53  ;;  %v2305_v57 = vadd.f32 %v5294_v54, %v2141_v51  ;;  %5335 = vmatpush3.msra.mxu1 %v6386_v13  ;;  %v5103_v19 = vpop.f32.mrf.mxu0  ;;  %5131 = vmatprep.mubr.msk.f32.mxu0 %vm901_vm1, %v807_v39 }
 0x151   : > { %v5615_v58 = vpop.eup %5614  ;;  %v2273_v59 = vpop.f32.mrf.mxu1  ;;  %5336 = vmatprep.subr.mxu1 %v6396_v15  ;;  %2015 = vst.msk [vmem:[#allocation2 + $0x98] sm:$0xff] %vm1995_vm2, %v5103_v19  ;;  %5132 = vmatmul.mubr.msk.f32.gmra.mxu0 %vm901_vm1, %v808_v40 }
 0x152   : > { %v2304_v61 = vadd.f32 %v2273_v59, %v2140_v55  ;;  %5312 = vmatprep.mubr.msk.f32.mxu1 %vm1995_vm2, %v5615_v58  ;;  %5337 = vmatpush3.msra.mxu1 %v6396_v15  ;;  %5628 = vtanh.f32 %v2305_v57  ;;  %v2142_v63 = vld [vmem:[#allocation2 + $0x70] sm:$0xff]  ;;  %v1446_v20 = vpop.f32.mrf.mxu0 }
 0x153   : > { %v5297_v62 = vpop.f32.mrf.mxu1  ;;  %5313 = vmatmul.mubr.msk.f32.gmra.mxu1 %vm1995_vm2, %v5613_v56  ;;  %5362 = vmatprep.subr.mxu1 %v6366_v6  ;;  %v5617_v0 = vpop.eup %5616  ;;  %2014 = vst.msk [vmem:[#allocation2 + $0x90] sm:$0xff] %vm1995_vm2, %v1446_v20 }
 0x154   : > { %5630 = vtanh.f32 %v2304_v61  ;;  %v2307_v1 = vadd.f32 %v5297_v62, %v2143_v60  ;;  %v5106_v21 = vpop.f32.mrf.mxu0  ;;  %5134 = vmatprep.mubr.msk.f32.mxu0 %vm901_vm1, %v809_v41  ;;  %v2326_v49 = vld [vmem:[#allocation2 + $0x88] sm:$0xff] }
 0x155   : > { %v5619_v2 = vpop.eup %5618  ;;  %v2283_v3 = vpop.f32.mrf.mxu1  ;;  %2017 = vst.msk [vmem:[#allocation2 + $0xa8] sm:$0xff] %vm1995_vm2, %v5106_v21  ;;  %5135 = vmatmul.mubr.msk.f32.gmra.mxu0 %vm901_vm1, %v810_v42 }
 0x156   : > { %v2306_v4 = vadd.f32 %v2283_v3, %v2142_v63  ;;  %5315 = vmatprep.mubr.msk.f32.mxu1 %vm1995_vm2, %v5619_v2  ;;  %5632 = vtanh.f32 %v2307_v1  ;;  %v1456_v22 = vpop.f32.mrf.mxu0  ;;  %5137 = vmatprep.mubr.msk.f32.mxu0 %vm901_vm1, %v811_v43  ;;  %v2325_v52 = vld [vmem:[#allocation2 + $0x80] sm:$0xff] }
 0x157   : > { %5316 = vmatmul.mubr.msk.f32.gmra.mxu1 %vm1995_vm2, %v5617_v0  ;;  %v5621_v5 = vpop.eup %5620  ;;  %2016 = vst.msk [vmem:[#allocation2 + $0xa0] sm:$0xff] %vm1995_vm2, %v1456_v22 }
 0x158   : > { %5634 = vtanh.f32 %v2306_v4  ;;  %v5109_v23 = vpop.f32.mrf.mxu0  ;;  %v2328_v55 = vld [vmem:[#allocation2 + $0x98] sm:$0xff] }
 0x159   : > { %v5623_v7 = vpop.eup %5622  ;;  %2019 = vst.msk [vmem:[#allocation2 + $0xb8] sm:$0xff] %vm1995_vm2, %v5109_v23  ;;  %5138 = vmatmul.mubr.msk.f32.gmra.mxu0 %vm901_vm1, %v812_v44 }
 0x15a   : > { %5318 = vmatprep.mubr.msk.f32.mxu1 %vm1995_vm2, %v5623_v7  ;;  %v1466_v24 = vpop.f32.mrf.mxu0  ;;  %5140 = vmatprep.mubr.msk.f32.mxu0 %vm901_vm1, %v813_v45  ;;  %v2327_v58 = vld [vmem:[#allocation2 + $0x90] sm:$0xff] }
 0x15b   : > { %5319 = vmatmul.mubr.msk.f32.gmra.mxu1 %vm1995_vm2, %v5621_v5  ;;  %v5625_v9 = vpop.eup %5624  ;;  %2018 = vst.msk [vmem:[#allocation2 + $0xb0] sm:$0xff] %vm1995_vm2, %v1466_v24 }
 0x15c   : > { %v5112_v25 = vpop.f32.mrf.mxu0  ;;  %v2330_v61 = vld [vmem:[#allocation2 + $0xa8] sm:$0xff] }
 0x15d   : > { %v5627_v10 = vpop.eup %5626  ;;  %2021 = vst.msk [vmem:[#allocation2 + $0xc8] sm:$0xff] %vm1995_vm2, %v5112_v25  ;;  %5141 = vmatmul.mubr.msk.f32.gmra.mxu0 %vm901_vm1, %v814_v46 }
 0x15e   : > { %5321 = vmatprep.mubr.msk.f32.mxu1 %vm1995_vm2, %v5627_v10  ;;  %v1476_v28 = vpop.f32.mrf.mxu0  ;;  %5143 = vmatprep.mubr.msk.f32.mxu0 %vm901_vm1, %v815_v47  ;;  %v2329_v63 = vld [vmem:[#allocation2 + $0xa0] sm:$0xff] }
 0x15f   : > { %5322 = vmatmul.mubr.msk.f32.gmra.mxu1 %vm1995_vm2, %v5625_v9  ;;  %v5629_v11 = vpop.eup %5628  ;;  %2020 = vst.msk [vmem:[#allocation2 + $0xc0] sm:$0xff] %vm1995_vm2, %v1476_v28 }
 0x160   : > { %v5115_v29 = vpop.f32.mrf.mxu0  ;;  %v2332_v3 = vld [vmem:[#allocation2 + $0xb8] sm:$0xff] }
 0x161   : > { %v5631_v12 = vpop.eup %5630  ;;  %2023 = vst.msk [vmem:[#allocation2 + $0xd8] sm:$0xff] %vm1995_vm2, %v5115_v29  ;;  %5144 = vmatmul.mubr.msk.f32.gmra.mxu0 %vm901_vm1, %v816_v48 }
 0x162   : > { %5324 = vmatprep.mubr.msk.f32.mxu1 %vm1995_vm2, %v5631_v12  ;;  %v1486_v32 = vpop.f32.mrf.mxu0  ;;  %v2331_v5 = vld [vmem:[#allocation2 + $0xb0] sm:$0xff] }
 0x163   : > { %5325 = vmatmul.mubr.msk.f32.gmra.mxu1 %vm1995_vm2, %v5629_v11  ;;  %v5633_v14 = vpop.eup %5632  ;;  %2022 = vst.msk [vmem:[#allocation2 + $0xd0] sm:$0xff] %vm1995_vm2, %v1486_v32 }
 0x164   : > { %v5118_v33 = vpop.f32.mrf.mxu0  ;;  %v2334_v11 = vld [vmem:[#allocation2 + $0xc8] sm:$0xff] }
 0x165   : > { %v5635_v16 = vpop.eup %5634  ;;  %2025 = vst.msk [vmem:[#allocation2 + $0xe8] sm:$0xff] %vm1995_vm2, %v5118_v33 }
 0x166   : > { %5327 = vmatprep.mubr.msk.f32.mxu1 %vm1995_vm2, %v5635_v16  ;;  %v1496_v34 = vpop.f32.mrf.mxu0 }
 0x167   : > { %5328 = vmatmul.mubr.msk.f32.gmra.mxu1 %vm1995_vm2, %v5633_v14  ;;  %2024 = vst.msk [vmem:[#allocation2 + $0xe0] sm:$0xff] %vm1995_vm2, %v1496_v34  ;;  %v2333_v14 = vld [vmem:[#allocation2 + $0xc0] sm:$0xff] }
 0x168   : > { %v5121_v37 = vpop.f32.mrf.mxu0  ;;  %v2336_v21 = vld [vmem:[#allocation2 + $0xd8] sm:$0xff] }
 0x169   : > { %2027 = vst.msk [vmem:[#allocation2 + $0xf8] sm:$0xff] %vm1995_vm2, %v5121_v37 }
 0x16a   : > { %v1506_v38 = vpop.f32.mrf.mxu0  ;;  %v2335_v23 = vld [vmem:[#allocation2 + $0xd0] sm:$0xff] }
 0x16b   : > { %2026 = vst.msk [vmem:[#allocation2 + $0xf0] sm:$0xff] %vm1995_vm2, %v1506_v38 }
 0x16c   : > { %v2338_v29 = vld [vmem:[#allocation2 + $0xe8] sm:$0xff] }
 0x16e   : > { %v2337_v31 = vld [vmem:[#allocation2 + $0xe0] sm:$0xff] }
 0x172   : > { %v2339_v38 = vld [vmem:[#allocation2 + $0xf0] sm:$0xff] }
 0x20b   : > { %v5308_v50 = vpop.f32.mrf.mxu1 }
 0x20c   : > { %v2535_v51 = vadd.f32 %v5308_v50, %v2326_v49  ;;  %v5124_v49 = vpop.f32.mrf.mxu0 }
 0x20d   : > { %v2455_v53 = vpop.f32.mrf.mxu1  ;;  %2029 = vst.msk [vmem:[#allocation2 + $0x108] sm:$0xff] %vm1995_vm2, %v5124_v49 }
 0x20e   : > { %v2534_v54 = vadd.f32 %v2455_v53, %v2325_v52  ;;  %v1516_v50 = vpop.f32.mrf.mxu0 }
 0x20f   : > { %v5311_v56 = vpop.f32.mrf.mxu1  ;;  %2028 = vst.msk [vmem:[#allocation2 + $0x100] sm:$0xff] %vm1995_vm2, %v1516_v50 }
 0x210   : > { %5636 = vtanh.f32 %v2534_v54  ;;  %v2537_v57 = vadd.f32 %v5311_v56, %v2328_v55 }
 0x211   : > { %5638 = vtanh.f32 %v2535_v51  ;;  %v2465_v59 = vpop.f32.mrf.mxu1  ;;  %v5127_v51 = vpop.f32.mrf.mxu0 }
 0x212   : > { %v2536_v60 = vadd.f32 %v2465_v59, %v2327_v58  ;;  %2031 = vst.msk [vmem:[#allocation2 + $0x118] sm:$0xff] %vm1995_vm2, %v5127_v51  ;;  %v817_v58 = vld [vmem:[%s6355_s26 + $0x180] sm:$0xff]  ;;  %v818_v59 = vld [vmem:[%s6355_s26 + $0x188] sm:$0xff] }
 0x213   : > { %v5314_v62 = vpop.f32.mrf.mxu1  ;;  %v1526_v52 = vpop.f32.mrf.mxu0  ;;  %5146 = vmatprep.mubr.msk.f32.mxu0 %vm901_vm1, %v817_v58 }
 0x214   : > { %5640 = vtanh.f32 %v2536_v60  ;;  %v2539_v0 = vadd.f32 %v5314_v62, %v2330_v61  ;;  %2030 = vst.msk [vmem:[#allocation2 + $0x110] sm:$0xff] %vm1995_vm2, %v1526_v52  ;;  %5147 = vmatmul.mubr.msk.f32.gmra.mxu0 %vm901_vm1, %v818_v59  ;;  %v819_v62 = vld [vmem:[%s6355_s26 + $0x190] sm:$0xff]  ;;  %v6650_v52 = vld [vmem:[%s7147_s2 + $0x18] sm:$0xff] }
 0x215   : > { %5642 = vtanh.f32 %v2537_v57  ;;  %v2475_v1 = vpop.f32.mrf.mxu1  ;;  %v5130_v53 = vpop.f32.mrf.mxu0  ;;  %5149 = vmatprep.mubr.msk.f32.mxu0 %vm901_vm1, %v819_v62  ;;  %v6665_v62 = vld [vmem:[%s7147_s2 + $0x8] sm:$0xff] }
 0x216   : > { %v2538_v2 = vadd.f32 %v2475_v1, %v2329_v63  ;;  %2033 = vst.msk [vmem:[#allocation2 + $0x128] sm:$0xff] %vm1995_vm2, %v5130_v53  ;;  %v820_v63 = vld [vmem:[%s6355_s26 + $0x198] sm:$0xff] }
 0x217   : > { %v5317_v4 = vpop.f32.mrf.mxu1  ;;  %v1536_v54 = vpop.f32.mrf.mxu0 }
 0x218   : > { %5644 = vtanh.f32 %v2538_v2  ;;  %v2541_v7 = vadd.f32 %v5317_v4, %v2332_v3  ;;  %2032 = vst.msk [vmem:[#allocation2 + $0x120] sm:$0xff] %vm1995_vm2, %v1536_v54  ;;  %5150 = vmatmul.mubr.msk.f32.gmra.mxu0 %vm901_vm1, %v820_v63  ;;  %v821_v3 = vld [vmem:[%s6355_s26 + $0x1a0] sm:$0xff]  ;;  %v822_v4 = vld [vmem:[%s6355_s26 + $0x1a8] sm:$0xff] }
 0x219   : > { %5646 = vtanh.f32 %v2539_v0  ;;  %v2485_v9 = vpop.f32.mrf.mxu1  ;;  %v5133_v55 = vpop.f32.mrf.mxu0  ;;  %5152 = vmatprep.mubr.msk.f32.mxu0 %vm901_vm1, %v821_v3 }
 0x21a   : > { %v2540_v10 = vadd.f32 %v2485_v9, %v2331_v5  ;;  %2035 = vst.msk [vmem:[#allocation2 + $0x138] sm:$0xff] %vm1995_vm2, %v5133_v55  ;;  %v823_v9 = vld [vmem:[%s6355_s26 + $0x1b0] sm:$0xff] }
 0x21b   : > { %v5320_v12 = vpop.f32.mrf.mxu1  ;;  %v1546_v56 = vpop.f32.mrf.mxu0 }
 0x21c   : > { %5648 = vtanh.f32 %v2540_v10  ;;  %v2543_v17 = vadd.f32 %v5320_v12, %v2334_v11  ;;  %2034 = vst.msk [vmem:[#allocation2 + $0x130] sm:$0xff] %vm1995_vm2, %v1546_v56  ;;  %5153 = vmatmul.mubr.msk.f32.gmra.mxu0 %vm901_vm1, %v822_v4  ;;  %v824_v10 = vld [vmem:[%s6355_s26 + $0x1b8] sm:$0xff]  ;;  %v825_v11 = vld [vmem:[%s6355_s26 + $0x1c0] sm:$0xff]  ;;  %v826_v12 = vld [vmem:[%s6355_s26 + $0x1c8] sm:$0xff] }
 0x21d   : > { %v5637_v16 = vpop.eup %5636  ;;  %5650 = vtanh.f32 %v2541_v7  ;;  %v2495_v18 = vpop.f32.mrf.mxu1  ;;  %5155 = vmatprep.mubr.msk.f32.mxu0 %vm901_vm1, %v823_v9  ;;  %v6656_v56 = vld [vmem:[%s7147_s2 + $0x10] sm:$0xff] }
 0x21e   : > { %v5639_v19 = vpop.eup %5638  ;;  %v2542_v20 = vadd.f32 %v2495_v18, %v2333_v14  ;;  %5338 = vmatprep.mubr.msk.f32.mxu1 %vm1995_vm2, %v5637_v16  ;;  %v5136_v57 = vpop.f32.mrf.mxu0  ;;  %v827_v14 = vld [vmem:[%s6355_s26 + $0x1d0] sm:$0xff]  ;;  %v828_v16 = vld [vmem:[%s6355_s26 + $0x1d8] sm:$0xff]  ;;  %v830_v18 = vld [vmem:[%s6355_s26 + $0x1e8] sm:$0xff] }
 0x21f   : > { %v5323_v22 = vpop.f32.mrf.mxu1  ;;  %5339 = vmatmul.mubr.msk.f32.vlgmr.msra.gmra.mxu1 %vm1995_vm2, %v5639_v19  ;;  %2037 = vst.msk [vmem:[#allocation2 + $0x148] sm:$0xff] %vm1995_vm2, %v5136_v57  ;;  %v831_v19 = vld [vmem:[%s6355_s26 + $0x1f0] sm:$0xff] }
 0x220   : > { %5652 = vtanh.f32 %v2542_v20  ;;  %5363 = vmatpush3.msra.mxu1 %v6366_v6  ;;  %v2545_v25 = vadd.f32 %v5323_v22, %v2336_v21  ;;  %v1556_v60 = vpop.f32.mrf.mxu0  ;;  %5156 = vmatmul.mubr.msk.f32.gmra.mxu0 %vm901_vm1, %v824_v10  ;;  %v832_v20 = vld [vmem:[%s6355_s26 + $0x1f8] sm:$0xff]  ;;  %v2568_v21 = vld [vmem:[#allocation2 + $0x108] sm:$0xff] }
 0x221   : > { %v5641_v24 = vpop.eup %5640  ;;  %5654 = vtanh.f32 %v2543_v17  ;;  %v2505_v26 = vpop.f32.mrf.mxu1  ;;  %5364 = vmatprep.subr.mxu1 %v6372_v8  ;;  %2036 = vst.msk [vmem:[#allocation2 + $0x140] sm:$0xff] %vm1995_vm2, %v1556_v60  ;;  %5158 = vmatprep.mubr.msk.f32.mxu0 %vm901_vm1, %v825_v11  ;;  %v829_v17 = vld [vmem:[%s6355_s26 + $0x1e0] sm:$0xff] }
 0x222   : > { %v5643_v27 = vpop.eup %5642  ;;  %v2544_v28 = vadd.f32 %v2505_v26, %v2335_v23  ;;  %5341 = vmatprep.mubr.msk.f32.mxu1 %vm1995_vm2, %v5641_v24  ;;  %5365 = vmatpush3.msra.mxu1 %v6372_v8  ;;  %v2340_v8 = vld [vmem:[#allocation2 + $0xf8] sm:$0xff]  ;;  %v5139_v61 = vpop.f32.mrf.mxu0  ;;  %v2567_v24 = vld [vmem:[#allocation2 + $0x100] sm:$0xff] }
 0x223   : > { %v5326_v30 = vpop.f32.mrf.mxu1  ;;  %5342 = vmatmul.mubr.msk.f32.gmra.mxu1 %vm1995_vm2, %v5643_v27  ;;  %5366 = vmatprep.subr.mxu1 %v6386_v13  ;;  %2039 = vst.msk [vmem:[#allocation2 + $0x158] sm:$0xff] %vm1995_vm2, %v5139_v61  ;;  %v2570_v27 = vld [vmem:[#allocation2 + $0x118] sm:$0xff] }
 0x224   : > { %5656 = vtanh.f32 %v2544_v28  ;;  %5367 = vmatpush3.msra.mxu1 %v6386_v13  ;;  %v2547_v33 = vadd.f32 %v5326_v30, %v2338_v29  ;;  %v1566_v0 = vpop.f32.mrf.mxu0  ;;  %5159 = vmatmul.mubr.msk.f32.gmra.mxu0 %vm901_vm1, %v826_v12  ;;  %v2569_v30 = vld [vmem:[#allocation2 + $0x110] sm:$0xff] }
 0x225   : > { %v5645_v32 = vpop.eup %5644  ;;  %5658 = vtanh.f32 %v2545_v25  ;;  %v2515_v34 = vpop.f32.mrf.mxu1  ;;  %5368 = vmatprep.subr.mxu1 %v6396_v15  ;;  %2038 = vst.msk [vmem:[#allocation2 + $0x150] sm:$0xff] %vm1995_vm2, %v1566_v0  ;;  %5161 = vmatprep.mubr.msk.f32.mxu0 %vm901_vm1, %v827_v14 }
 0x226   : > { %v5647_v35 = vpop.eup %5646  ;;  %v2546_v36 = vadd.f32 %v2515_v34, %v2337_v31  ;;  %5344 = vmatprep.mubr.msk.f32.mxu1 %vm1995_vm2, %v5645_v32  ;;  %5369 = vmatpush3.msra.mxu1 %v6396_v15  ;;  %v5142_v1 = vpop.f32.mrf.mxu0 }
 0x227   : > { %v5329_v37 = vpop.f32.mrf.mxu1  ;;  %5345 = vmatmul.mubr.msk.f32.gmra.mxu1 %vm1995_vm2, %v5647_v35  ;;  %5394 = vmatprep.subr.mxu1 %v6366_v6  ;;  %2041 = vst.msk [vmem:[#allocation2 + $0x168] sm:$0xff] %vm1995_vm2, %v5142_v1  ;;  %v2571_v35 = vld [vmem:[#allocation2 + $0x120] sm:$0xff] }
 0x228   : > { %5660 = vtanh.f32 %v2546_v36  ;;  %v2549_v39 = vadd.f32 %v5329_v37, %v2340_v8  ;;  %v1576_v2 = vpop.f32.mrf.mxu0  ;;  %5162 = vmatmul.mubr.msk.f32.gmra.mxu0 %vm901_vm1, %v828_v16 }
 0x229   : > { %v5649_v13 = vpop.eup %5648  ;;  %5662 = vtanh.f32 %v2547_v33  ;;  %v2525_v40 = vpop.f32.mrf.mxu1  ;;  %2040 = vst.msk [vmem:[#allocation2 + $0x160] sm:$0xff] %vm1995_vm2, %v1576_v2  ;;  %5164 = vmatprep.mubr.msk.f32.mxu0 %vm901_vm1, %v829_v17  ;;  %v2572_v33 = vld [vmem:[#allocation2 + $0x128] sm:$0xff]  ;;  %v6672_v2 = vld [vmem:[%s7147_s2] sm:$0xff] }
 0x22a   : > { %v5651_v41 = vpop.eup %5650  ;;  %v2548_v42 = vadd.f32 %v2525_v40, %v2339_v38  ;;  %5347 = vmatprep.mubr.msk.f32.mxu1 %vm1995_vm2, %v5649_v13  ;;  %v5145_v5 = vpop.f32.mrf.mxu0  ;;  %v2574_v38 = vld [vmem:[#allocation2 + $0x138] sm:$0xff] }
 0x22b   : > { %5348 = vmatmul.mubr.msk.f32.gmra.mxu1 %vm1995_vm2, %v5651_v41  ;;  %2043 = vst.msk [vmem:[#allocation2 + $0x178] sm:$0xff] %vm1995_vm2, %v5145_v5  ;;  %v2578_v49 = vld [vmem:[#allocation2 + $0x158] sm:$0xff] }
 0x22c   : > { %5664 = vtanh.f32 %v2548_v42  ;;  %v1586_v7 = vpop.f32.mrf.mxu0  ;;  %5165 = vmatmul.mubr.msk.f32.gmra.mxu0 %vm901_vm1, %v830_v18  ;;  %v2577_v51 = vld [vmem:[#allocation2 + $0x150] sm:$0xff] }
 0x22d   : > { %v5653_v43 = vpop.eup %5652  ;;  %5666 = vtanh.f32 %v2549_v39  ;;  %2042 = vst.msk [vmem:[#allocation2 + $0x170] sm:$0xff] %vm1995_vm2, %v1586_v7  ;;  %5167 = vmatprep.mubr.msk.f32.mxu0 %vm901_vm1, %v831_v19  ;;  %v2573_v39 = vld [vmem:[#allocation2 + $0x130] sm:$0xff] }
 0x22e   : > { %v5655_v15 = vpop.eup %5654  ;;  %5350 = vmatprep.mubr.msk.f32.mxu1 %vm1995_vm2, %v5653_v43  ;;  %v2576_v43 = vld [vmem:[#allocation2 + $0x148] sm:$0xff] }
 0x22f   : > { %5351 = vmatmul.mubr.msk.f32.gmra.mxu1 %vm1995_vm2, %v5655_v15  ;;  %v2580_v59 = vld [vmem:[#allocation2 + $0x168] sm:$0xff] }
 0x230   : > { %5168 = vmatmul.mubr.msk.f32.gmra.mxu0 %vm901_vm1, %v832_v20  ;;  %v2579_v61 = vld [vmem:[#allocation2 + $0x160] sm:$0xff] }
 0x231   : > { %v5657_v6 = vpop.eup %5656 }
 0x232   : > { %v5659_v44 = vpop.eup %5658  ;;  %5353 = vmatprep.mubr.msk.f32.mxu1 %vm1995_vm2, %v5657_v6  ;;  %v2575_v6 = vld [vmem:[#allocation2 + $0x140] sm:$0xff]  ;;  %v2582_v5 = vld [vmem:[#allocation2 + $0x178] sm:$0xff] }
 0x233   : > { %5354 = vmatmul.mubr.msk.f32.gmra.mxu1 %vm1995_vm2, %v5659_v44 }
 0x234   : > { %v2581_v9 = vld [vmem:[#allocation2 + $0x170] sm:$0xff] }
 0x235   : > { %v5661_v45 = vpop.eup %5660 }
 0x236   : > { %v5663_v46 = vpop.eup %5662  ;;  %5356 = vmatprep.mubr.msk.f32.mxu1 %vm1995_vm2, %v5661_v45 }
 0x237   : > { %5357 = vmatmul.mubr.msk.f32.gmra.mxu1 %vm1995_vm2, %v5663_v46 }
 0x239   : > { %v5665_v47 = vpop.eup %5664 }
 0x23a   : > { %v5667_v48 = vpop.eup %5666  ;;  %5359 = vmatprep.mubr.msk.f32.mxu1 %vm1995_vm2, %v5665_v47 }
 0x23b   : > { %5360 = vmatmul.mubr.msk.f32.gmra.mxu1 %vm1995_vm2, %v5667_v48 }
 0x2df   : > { %v5340_v22 = vpop.f32.mrf.mxu1 }
 0x2e0   : > { %v2777_v23 = vadd.f32 %v5340_v22, %v2568_v21 }
 0x2e1   : > { %v2697_v25 = vpop.f32.mrf.mxu1 }
 0x2e2   : > { %v2776_v26 = vadd.f32 %v2697_v25, %v2567_v24  ;;  %v5148_v25 = vpop.f32.mrf.mxu0 }
 0x2e3   : > { %v5343_v28 = vpop.f32.mrf.mxu1  ;;  %2045 = vst.msk [vmem:[#allocation2 + $0x188] sm:$0xff] %vm1995_vm2, %v5148_v25 }
 0x2e4   : > { %5668 = vtanh.f32 %v2776_v26  ;;  %v2779_v29 = vadd.f32 %v5343_v28, %v2570_v27  ;;  %v1596_v26 = vpop.f32.mrf.mxu0 }
 0x2e5   : > { %5670 = vtanh.f32 %v2777_v23  ;;  %v2707_v31 = vpop.f32.mrf.mxu1  ;;  %2044 = vst.msk [vmem:[#allocation2 + $0x180] sm:$0xff] %vm1995_vm2, %v1596_v26 }
 0x2e6   : > { %v2778_v32 = vadd.f32 %v2707_v31, %v2569_v30  ;;  %v5151_v27 = vpop.f32.mrf.mxu0 }
 0x2e7   : > { %v5346_v34 = vpop.f32.mrf.mxu1  ;;  %2047 = vst.msk [vmem:[#allocation2 + $0x198] sm:$0xff] %vm1995_vm2, %v5151_v27 }
 0x2e8   : > { %5672 = vtanh.f32 %v2778_v32  ;;  %v2781_v36 = vadd.f32 %v5346_v34, %v2572_v33  ;;  %v1606_v28 = vpop.f32.mrf.mxu0  ;;  %v833_v34 = vld [vmem:[%s6355_s26 + $0x200] sm:$0xff] }
 0x2e9   : > { %5674 = vtanh.f32 %v2779_v29  ;;  %v2717_v8 = vpop.f32.mrf.mxu1  ;;  %2046 = vst.msk [vmem:[#allocation2 + $0x190] sm:$0xff] %vm1995_vm2, %v1606_v28  ;;  %5170 = vmatprep.mubr.msk.f32.mxu0 %vm901_vm1, %v833_v34 }
 0x2ea   : > { %v2780_v37 = vadd.f32 %v2717_v8, %v2571_v35  ;;  %v5154_v29 = vpop.f32.mrf.mxu0  ;;  %v834_v35 = vld [vmem:[%s6355_s26 + $0x208] sm:$0xff] }
 0x2eb   : > { %v5349_v13 = vpop.f32.mrf.mxu1  ;;  %2049 = vst.msk [vmem:[#allocation2 + $0x1a8] sm:$0xff] %vm1995_vm2, %v5154_v29  ;;  %5171 = vmatmul.mubr.msk.f32.gmra.mxu0 %vm901_vm1, %v834_v35 }
 0x2ec   : > { %5676 = vtanh.f32 %v2780_v37  ;;  %v2783_v40 = vadd.f32 %v5349_v13, %v2574_v38  ;;  %v1616_v30 = vpop.f32.mrf.mxu0  ;;  %v835_v37 = vld [vmem:[%s6355_s26 + $0x210] sm:$0xff]  ;;  %v836_v38 = vld [vmem:[%s6355_s26 + $0x218] sm:$0xff] }
 0x2ed   : > { %5678 = vtanh.f32 %v2781_v36  ;;  %v2727_v41 = vpop.f32.mrf.mxu1  ;;  %2048 = vst.msk [vmem:[#allocation2 + $0x1a0] sm:$0xff] %vm1995_vm2, %v1616_v30  ;;  %5173 = vmatprep.mubr.msk.f32.mxu0 %vm901_vm1, %v835_v37 }
 0x2ee   : > { %v2782_v42 = vadd.f32 %v2727_v41, %v2573_v39  ;;  %v5157_v31 = vpop.f32.mrf.mxu0  ;;  %v837_v41 = vld [vmem:[%s6355_s26 + $0x220] sm:$0xff] }
 0x2ef   : > { %v5352_v15 = vpop.f32.mrf.mxu1  ;;  %2051 = vst.msk [vmem:[#allocation2 + $0x1b8] sm:$0xff] %vm1995_vm2, %v5157_v31  ;;  %5174 = vmatmul.mubr.msk.f32.gmra.mxu0 %vm901_vm1, %v836_v38 }
 0x2f0   : > { %5680 = vtanh.f32 %v2782_v42  ;;  %v2785_v45 = vadd.f32 %v5352_v15, %v2576_v43  ;;  %v1626_v32 = vpop.f32.mrf.mxu0  ;;  %5176 = vmatprep.mubr.msk.f32.mxu0 %vm901_vm1, %v837_v41  ;;  %v838_v42 = vld [vmem:[%s6355_s26 + $0x228] sm:$0xff] }
 0x2f1   : > { %v5669_v44 = vpop.eup %5668  ;;  %5682 = vtanh.f32 %v2783_v40  ;;  %v2737_v46 = vpop.f32.mrf.mxu1  ;;  %2050 = vst.msk [vmem:[#allocation2 + $0x1b0] sm:$0xff] %vm1995_vm2, %v1626_v32 }
 0x2f2   : > { %v5671_v47 = vpop.eup %5670  ;;  %v2784_v48 = vadd.f32 %v2737_v46, %v2575_v6  ;;  %5370 = vmatprep.mubr.msk.f32.mxu1 %vm1995_vm2, %v5669_v44  ;;  %v5160_v33 = vpop.f32.mrf.mxu0  ;;  %v839_v6 = vld [vmem:[%s6355_s26 + $0x230] sm:$0xff]  ;;  %v840_v44 = vld [vmem:[%s6355_s26 + $0x238] sm:$0xff]  ;;  %v842_v46 = vld [vmem:[%s6355_s26 + $0x248] sm:$0xff] }
 0x2f3   : > { %v5355_v50 = vpop.f32.mrf.mxu1  ;;  %5371 = vmatmul.mubr.msk.f32.vlgmr.msra.gmra.mxu1 %vm1995_vm2, %v5671_v47  ;;  %2053 = vst.msk [vmem:[#allocation2 + $0x1c8] sm:$0xff] %vm1995_vm2, %v5160_v33  ;;  %5177 = vmatmul.mubr.msk.f32.gmra.mxu0 %vm901_vm1, %v838_v42  ;;  %v843_v47 = vld [vmem:[%s6355_s26 + $0x250] sm:$0xff] }
 0x2f4   : > { %5684 = vtanh.f32 %v2784_v48  ;;  %5395 = vmatpush3.msra.mxu1 %v6650_v52  ;;  %v2787_v54 = vadd.f32 %v5355_v50, %v2578_v49  ;;  %v1636_v36 = vpop.f32.mrf.mxu0  ;;  %5179 = vmatprep.mubr.msk.f32.mxu0 %vm901_vm1, %v839_v6  ;;  %v844_v48 = vld [vmem:[%s6355_s26 + $0x258] sm:$0xff]  ;;  %v845_v49 = vld [vmem:[%s6355_s26 + $0x260] sm:$0xff]  ;;  %v846_v50 = vld [vmem:[%s6355_s26 + $0x268] sm:$0xff] }
 0x2f5   : > { %v5673_v53 = vpop.eup %5672  ;;  %5686 = vtanh.f32 %v2785_v45  ;;  %v2747_v55 = vpop.f32.mrf.mxu1  ;;  %5396 = vmatprep.subr.mxu1 %v6656_v56  ;;  %2052 = vst.msk [vmem:[#allocation2 + $0x1c0] sm:$0xff] %vm1995_vm2, %v1636_v36  ;;  %v841_v45 = vld [vmem:[%s6355_s26 + $0x240] sm:$0xff] }
 0x2f6   : > { %v5675_v57 = vpop.eup %5674  ;;  %v2786_v58 = vadd.f32 %v2747_v55, %v2577_v51  ;;  %5373 = vmatprep.mubr.msk.f32.mxu1 %vm1995_vm2, %v5673_v53  ;;  %5397 = vmatpush3.msra.mxu1 %v6656_v56  ;;  %v5163_v8 = vpop.f32.mrf.mxu0  ;;  %v847_v51 = vld [vmem:[%s6355_s26 + $0x270] sm:$0xff]  ;;  %v848_v53 = vld [vmem:[%s6355_s26 + $0x278] sm:$0xff] }
 0x2f7   : > { %v5358_v60 = vpop.f32.mrf.mxu1  ;;  %5374 = vmatmul.mubr.msk.f32.gmra.mxu1 %vm1995_vm2, %v5675_v57  ;;  %5398 = vmatprep.subr.mxu1 %v6665_v62  ;;  %2055 = vst.msk [vmem:[#allocation2 + $0x1d8] sm:$0xff] %vm1995_vm2, %v5163_v8 }
 0x2f8   : > { %5688 = vtanh.f32 %v2786_v58  ;;  %5399 = vmatpush3.msra.mxu1 %v6665_v62  ;;  %v2789_v0 = vadd.f32 %v5358_v60, %v2580_v59  ;;  %v1646_v13 = vpop.f32.mrf.mxu0  ;;  %5180 = vmatmul.mubr.msk.f32.gmra.mxu0 %vm901_vm1, %v840_v44  ;;  %v2809_v58 = vld [vmem:[#allocation2 + $0x180] sm:$0xff] }
 0x2f9   : > { %v5677_v63 = vpop.eup %5676  ;;  %5690 = vtanh.f32 %v2787_v54  ;;  %v2757_v1 = vpop.f32.mrf.mxu1  ;;  %5400 = vmatprep.subr.mxu1 %v6672_v2  ;;  %2054 = vst.msk [vmem:[#allocation2 + $0x1d0] sm:$0xff] %vm1995_vm2, %v1646_v13  ;;  %5182 = vmatprep.mubr.msk.f32.mxu0 %vm901_vm1, %v841_v45  ;;  %v2810_v54 = vld [vmem:[#allocation2 + $0x188] sm:$0xff] }
 0x2fa   : > { %v5679_v3 = vpop.eup %5678  ;;  %v2788_v4 = vadd.f32 %v2757_v1, %v2579_v61  ;;  %5376 = vmatprep.mubr.msk.f32.mxu1 %vm1995_vm2, %v5677_v63  ;;  %5401 = vmatpush3.msra.mxu1 %v6672_v2  ;;  %v5166_v39 = vpop.f32.mrf.mxu0  ;;  %v2812_v61 = vld [vmem:[#allocation2 + $0x198] sm:$0xff]  ;;  %v2811_v1 = vld [vmem:[#allocation2 + $0x190] sm:$0xff] }
 0x2fb   : > { %v5361_v7 = vpop.f32.mrf.mxu1  ;;  %5377 = vmatmul.mubr.msk.f32.gmra.mxu1 %vm1995_vm2, %v5679_v3  ;;  %5426 = vmatprep.subr.mxu1 %v6650_v52  ;;  %2057 = vst.msk [vmem:[#allocation2 + $0x1e8] sm:$0xff] %vm1995_vm2, %v5166_v39 }
 0x2fc   : > { %5692 = vtanh.f32 %v2788_v4  ;;  %v2791_v11 = vadd.f32 %v5361_v7, %v2582_v5  ;;  %v1656_v40 = vpop.f32.mrf.mxu0  ;;  %5183 = vmatmul.mubr.msk.f32.gmra.mxu0 %vm901_vm1, %v842_v46  ;;  %v2814_v5 = vld [vmem:[#allocation2 + $0x1a8] sm:$0xff] }
 0x2fd   : > { %v5681_v10 = vpop.eup %5680  ;;  %5694 = vtanh.f32 %v2789_v0  ;;  %v2767_v12 = vpop.f32.mrf.mxu1  ;;  %2056 = vst.msk [vmem:[#allocation2 + $0x1e0] sm:$0xff] %vm1995_vm2, %v1656_v40  ;;  %5185 = vmatprep.mubr.msk.f32.mxu0 %vm901_vm1, %v843_v47 }
 0x2fe   : > { %v5683_v14 = vpop.eup %5682  ;;  %v2790_v16 = vadd.f32 %v2767_v12, %v2581_v9  ;;  %5379 = vmatprep.mubr.msk.f32.mxu1 %vm1995_vm2, %v5681_v10  ;;  %v5169_v43 = vpop.f32.mrf.mxu0  ;;  %v2813_v9 = vld [vmem:[#allocation2 + $0x1a0] sm:$0xff]  ;;  %v2820_v29 = vld [vmem:[#allocation2 + $0x1d8] sm:$0xff] }
 0x2ff   : > { %5380 = vmatmul.mubr.msk.f32.gmra.mxu1 %vm1995_vm2, %v5683_v14  ;;  %2059 = vst.msk [vmem:[#allocation2 + $0x1f8] sm:$0xff] %vm1995_vm2, %v5169_v43  ;;  %v2816_v14 = vld [vmem:[#allocation2 + $0x1b8] sm:$0xff] }
 0x300   : > { %5696 = vtanh.f32 %v2790_v16  ;;  %v1666_v15 = vpop.f32.mrf.mxu0  ;;  %5186 = vmatmul.mubr.msk.f32.gmra.mxu0 %vm901_vm1, %v844_v48  ;;  %v2819_v31 = vld [vmem:[#allocation2 + $0x1d0] sm:$0xff] }
 0x301   : > { %v5685_v17 = vpop.eup %5684  ;;  %5698 = vtanh.f32 %v2791_v11  ;;  %2058 = vst.msk [vmem:[#allocation2 + $0x1f0] sm:$0xff] %vm1995_vm2, %v1666_v15  ;;  %5188 = vmatprep.mubr.msk.f32.mxu0 %vm901_vm1, %v845_v49 }
 0x302   : > { %v5687_v18 = vpop.eup %5686  ;;  %5382 = vmatprep.mubr.msk.f32.mxu1 %vm1995_vm2, %v5685_v17  ;;  %v2815_v17 = vld [vmem:[#allocation2 + $0x1b0] sm:$0xff]  ;;  %v2822_v8 = vld [vmem:[#allocation2 + $0x1e8] sm:$0xff] }
 0x303   : > { %5383 = vmatmul.mubr.msk.f32.gmra.mxu1 %vm1995_vm2, %v5687_v18 }
 0x304   : > { %5189 = vmatmul.mubr.msk.f32.gmra.mxu0 %vm901_vm1, %v846_v50  ;;  %v2821_v38 = vld [vmem:[#allocation2 + $0x1e0] sm:$0xff] }
 0x305   : > { %v5689_v19 = vpop.eup %5688  ;;  %5191 = vmatprep.mubr.msk.f32.mxu0 %vm901_vm1, %v847_v51 }
 0x306   : > { %v5691_v20 = vpop.eup %5690  ;;  %5385 = vmatprep.mubr.msk.f32.mxu1 %vm1995_vm2, %v5689_v19  ;;  %v2824_v43 = vld [vmem:[#allocation2 + $0x1f8] sm:$0xff] }
 0x307   : > { %5386 = vmatmul.mubr.msk.f32.gmra.mxu1 %vm1995_vm2, %v5691_v20 }
 0x308   : > { %5192 = vmatmul.mubr.msk.f32.gmra.mxu0 %vm901_vm1, %v848_v53  ;;  %v2823_v6 = vld [vmem:[#allocation2 + $0x1f0] sm:$0xff] }
 0x309   : > { %v5693_v21 = vpop.eup %5692 }
 0x30a   : > { %v5695_v22 = vpop.eup %5694  ;;  %5388 = vmatprep.mubr.msk.f32.mxu1 %vm1995_vm2, %v5693_v21  ;;  %v2818_v21 = vld [vmem:[#allocation2 + $0x1c8] sm:$0xff] }
 0x30b   : > { %5389 = vmatmul.mubr.msk.f32.gmra.mxu1 %vm1995_vm2, %v5695_v22 }
 0x30d   : > { %v5697_v23 = vpop.eup %5696 }
 0x30e   : > { %v5699_v24 = vpop.eup %5698  ;;  %5391 = vmatprep.mubr.msk.f32.mxu1 %vm1995_vm2, %v5697_v23  ;;  %v2817_v23 = vld [vmem:[#allocation2 + $0x1c0] sm:$0xff] }
 0x30f   : > { %5392 = vmatmul.mubr.msk.f32.gmra.mxu1 %vm1995_vm2, %v5699_v24 }
 0x3b3   : > { %v5372_v55 = vpop.f32.mrf.mxu1 }
 0x3b4   : > { %v3019_v57 = vadd.f32 %v5372_v55, %v2810_v54 }
 0x3b5   : > { %v2939_v59 = vpop.f32.mrf.mxu1 }
 0x3b6   : > { %v3018_v60 = vadd.f32 %v2939_v59, %v2809_v58  ;;  %v5172_v59 = vpop.f32.mrf.mxu0 }
 0x3b7   : > { %v5375_v63 = vpop.f32.mrf.mxu1  ;;  %2061 = vst.msk [vmem:[#allocation2 + $0x208] sm:$0xff] %vm1995_vm2, %v5172_v59 }
 0x3b8   : > { %5700 = vtanh.f32 %v3018_v60  ;;  %v3021_v0 = vadd.f32 %v5375_v63, %v2812_v61  ;;  %v1676_v60 = vpop.f32.mrf.mxu0 }
 0x3b9   : > { %5702 = vtanh.f32 %v3019_v57  ;;  %v2949_v3 = vpop.f32.mrf.mxu1  ;;  %2060 = vst.msk [vmem:[#allocation2 + $0x200] sm:$0xff] %vm1995_vm2, %v1676_v60 }
 0x3ba   : > { %v3020_v4 = vadd.f32 %v2949_v3, %v2811_v1  ;;  %v5175_v61 = vpop.f32.mrf.mxu0 }
 0x3bb   : > { %v5378_v7 = vpop.f32.mrf.mxu1  ;;  %2063 = vst.msk [vmem:[#allocation2 + $0x218] sm:$0xff] %vm1995_vm2, %v5175_v61 }
 0x3bc   : > { %5704 = vtanh.f32 %v3020_v4  ;;  %v3023_v10 = vadd.f32 %v5378_v7, %v2814_v5  ;;  %v1686_v63 = vpop.f32.mrf.mxu0  ;;  %v849_v7 = vld [vmem:[%s6355_s26 + $0x280] sm:$0xff] }
 0x3bd   : > { %5706 = vtanh.f32 %v3021_v0  ;;  %v2959_v11 = vpop.f32.mrf.mxu1  ;;  %2062 = vst.msk [vmem:[#allocation2 + $0x210] sm:$0xff] %vm1995_vm2, %v1686_v63  ;;  %5194 = vmatprep.mubr.msk.f32.mxu0 %vm901_vm1, %v849_v7 }
 0x3be   : > { %v3022_v12 = vadd.f32 %v2959_v11, %v2813_v9  ;;  %v5178_v0 = vpop.f32.mrf.mxu0  ;;  %v850_v9 = vld [vmem:[%s6355_s26 + $0x288] sm:$0xff] }
 0x3bf   : > { %v5381_v16 = vpop.f32.mrf.mxu1  ;;  %2065 = vst.msk [vmem:[#allocation2 + $0x228] sm:$0xff] %vm1995_vm2, %v5178_v0  ;;  %5195 = vmatmul.mubr.msk.f32.gmra.mxu0 %vm901_vm1, %v850_v9 }
 0x3c0   : > { %5708 = vtanh.f32 %v3022_v12  ;;  %v3025_v18 = vadd.f32 %v5381_v16, %v2816_v14  ;;  %v1696_v1 = vpop.f32.mrf.mxu0  ;;  %v851_v12 = vld [vmem:[%s6355_s26 + $0x290] sm:$0xff]  ;;  %v852_v14 = vld [vmem:[%s6355_s26 + $0x298] sm:$0xff] }
 0x3c1   : > { %5710 = vtanh.f32 %v3023_v10  ;;  %v2969_v19 = vpop.f32.mrf.mxu1  ;;  %2064 = vst.msk [vmem:[#allocation2 + $0x220] sm:$0xff] %vm1995_vm2, %v1696_v1  ;;  %5197 = vmatprep.mubr.msk.f32.mxu0 %vm901_vm1, %v851_v12 }
 0x3c2   : > { %v3024_v20 = vadd.f32 %v2969_v19, %v2815_v17  ;;  %v5181_v3 = vpop.f32.mrf.mxu0  ;;  %v853_v19 = vld [vmem:[%s6355_s26 + $0x2a0] sm:$0xff] }
 0x3c3   : > { %v5384_v22 = vpop.f32.mrf.mxu1  ;;  %2067 = vst.msk [vmem:[#allocation2 + $0x238] sm:$0xff] %vm1995_vm2, %v5181_v3  ;;  %5198 = vmatmul.mubr.msk.f32.gmra.mxu0 %vm901_vm1, %v852_v14 }
 0x3c4   : > { %5712 = vtanh.f32 %v3024_v20  ;;  %v3027_v25 = vadd.f32 %v5384_v22, %v2818_v21  ;;  %v1706_v4 = vpop.f32.mrf.mxu0  ;;  %5200 = vmatprep.mubr.msk.f32.mxu0 %vm901_vm1, %v853_v19  ;;  %v854_v20 = vld [vmem:[%s6355_s26 + $0x2a8] sm:$0xff] }
 0x3c5   : > { %v5701_v24 = vpop.eup %5700  ;;  %5714 = vtanh.f32 %v3025_v18  ;;  %v2979_v26 = vpop.f32.mrf.mxu1  ;;  %2066 = vst.msk [vmem:[#allocation2 + $0x230] sm:$0xff] %vm1995_vm2, %v1706_v4 }
 0x3c6   : > { %v5703_v27 = vpop.eup %5702  ;;  %v3026_v28 = vadd.f32 %v2979_v26, %v2817_v23  ;;  %5402 = vmatprep.mubr.msk.f32.mxu1 %vm1995_vm2, %v5701_v24  ;;  %v5184_v5 = vpop.f32.mrf.mxu0  ;;  %v855_v23 = vld [vmem:[%s6355_s26 + $0x2b0] sm:$0xff]  ;;  %v856_v24 = vld [vmem:[%s6355_s26 + $0x2b8] sm:$0xff]  ;;  %v858_v26 = vld [vmem:[%s6355_s26 + $0x2c8] sm:$0xff] }
 0x3c7   : > { %v5387_v30 = vpop.f32.mrf.mxu1  ;;  %5403 = vmatmul.mubr.msk.f32.vlgmr.msra.gmra.mxu1 %vm1995_vm2, %v5703_v27  ;;  %2069 = vst.msk [vmem:[#allocation2 + $0x248] sm:$0xff] %vm1995_vm2, %v5184_v5  ;;  %5201 = vmatmul.mubr.msk.f32.gmra.mxu0 %vm901_vm1, %v854_v20  ;;  %v859_v27 = vld [vmem:[%s6355_s26 + $0x2d0] sm:$0xff] }
 0x3c8   : > { %5716 = vtanh.f32 %v3026_v28  ;;  %5427 = vmatpush3.msra.mxu1 %v6650_v52  ;;  %v3029_v33 = vadd.f32 %v5387_v30, %v2820_v29  ;;  %v1716_v10 = vpop.f32.mrf.mxu0  ;;  %5203 = vmatprep.mubr.msk.f32.mxu0 %vm901_vm1, %v855_v23  ;;  %v860_v28 = vld [vmem:[%s6355_s26 + $0x2d8] sm:$0xff]  ;;  %v861_v29 = vld [vmem:[%s6355_s26 + $0x2e0] sm:$0xff]  ;;  %v862_v30 = vld [vmem:[%s6355_s26 + $0x2e8] sm:$0xff] }
 0x3c9   : > { %v5705_v32 = vpop.eup %5704  ;;  %5718 = vtanh.f32 %v3027_v25  ;;  %v2989_v34 = vpop.f32.mrf.mxu1  ;;  %5428 = vmatprep.subr.mxu1 %v6656_v56  ;;  %2068 = vst.msk [vmem:[#allocation2 + $0x240] sm:$0xff] %vm1995_vm2, %v1716_v10  ;;  %v857_v25 = vld [vmem:[%s6355_s26 + $0x2c0] sm:$0xff] }
 0x3ca   : > { %v5707_v35 = vpop.eup %5706  ;;  %v3028_v36 = vadd.f32 %v2989_v34, %v2819_v31  ;;  %5405 = vmatprep.mubr.msk.f32.mxu1 %vm1995_vm2, %v5705_v32  ;;  %5429 = vmatpush3.msra.mxu1 %v6656_v56  ;;  %v5187_v11 = vpop.f32.mrf.mxu0  ;;  %v863_v31 = vld [vmem:[%s6355_s26 + $0x2f0] sm:$0xff]  ;;  %v864_v32 = vld [vmem:[%s6355_s26 + $0x2f8] sm:$0xff] }
 0x3cb   : > { %v5390_v37 = vpop.f32.mrf.mxu1  ;;  %5406 = vmatmul.mubr.msk.f32.gmra.mxu1 %vm1995_vm2, %v5707_v35  ;;  %5430 = vmatprep.subr.mxu1 %v6665_v62  ;;  %2071 = vst.msk [vmem:[#allocation2 + $0x258] sm:$0xff] %vm1995_vm2, %v5187_v11 }
 0x3cc   : > { %5720 = vtanh.f32 %v3028_v36  ;;  %5431 = vmatpush3.msra.mxu1 %v6665_v62  ;;  %v3031_v39 = vadd.f32 %v5390_v37, %v2822_v8  ;;  %v1726_v16 = vpop.f32.mrf.mxu0  ;;  %5204 = vmatmul.mubr.msk.f32.gmra.mxu0 %vm901_vm1, %v856_v24  ;;  %v3051_v36 = vld [vmem:[#allocation2 + $0x200] sm:$0xff] }
 0x3cd   : > { %v5709_v13 = vpop.eup %5708  ;;  %5722 = vtanh.f32 %v3029_v33  ;;  %v2999_v40 = vpop.f32.mrf.mxu1  ;;  %5432 = vmatprep.subr.mxu1 %v6672_v2  ;;  %2070 = vst.msk [vmem:[#allocation2 + $0x250] sm:$0xff] %vm1995_vm2, %v1726_v16  ;;  %5206 = vmatprep.mubr.msk.f32.mxu0 %vm901_vm1, %v857_v25  ;;  %v3052_v33 = vld [vmem:[#allocation2 + $0x208] sm:$0xff] }
 0x3ce   : > { %v5711_v41 = vpop.eup %5710  ;;  %v3030_v42 = vadd.f32 %v2999_v40, %v2821_v38  ;;  %5408 = vmatprep.mubr.msk.f32.mxu1 %vm1995_vm2, %v5709_v13  ;;  %5433 = vmatpush3.msra.mxu1 %v6672_v2  ;;  %v5190_v17 = vpop.f32.mrf.mxu0  ;;  %v3054_v38 = vld [vmem:[#allocation2 + $0x218] sm:$0xff]  ;;  %v3053_v40 = vld [vmem:[#allocation2 + $0x210] sm:$0xff] }
 0x3cf   : > { %v5393_v15 = vpop.f32.mrf.mxu1  ;;  %5409 = vmatmul.mubr.msk.f32.gmra.mxu1 %vm1995_vm2, %v5711_v41  ;;  %5458 = vmatprep.subr.mxu1 %v6650_v52  ;;  %2073 = vst.msk [vmem:[#allocation2 + $0x268] sm:$0xff] %vm1995_vm2, %v5190_v17 }
 0x3d0   : > { %5724 = vtanh.f32 %v3030_v42  ;;  %v3033_v45 = vadd.f32 %v5393_v15, %v2824_v43  ;;  %v1736_v18 = vpop.f32.mrf.mxu0  ;;  %5207 = vmatmul.mubr.msk.f32.gmra.mxu0 %vm901_vm1, %v858_v26  ;;  %v3056_v43 = vld [vmem:[#allocation2 + $0x228] sm:$0xff] }
 0x3d1   : > { %v5713_v44 = vpop.eup %5712  ;;  %5726 = vtanh.f32 %v3031_v39  ;;  %v3009_v46 = vpop.f32.mrf.mxu1  ;;  %2072 = vst.msk [vmem:[#allocation2 + $0x260] sm:$0xff] %vm1995_vm2, %v1736_v18  ;;  %5209 = vmatprep.mubr.msk.f32.mxu0 %vm901_vm1, %v859_v27 }
 0x3d2   : > { %v5715_v47 = vpop.eup %5714  ;;  %v3032_v48 = vadd.f32 %v3009_v46, %v2823_v6  ;;  %5411 = vmatprep.mubr.msk.f32.mxu1 %vm1995_vm2, %v5713_v44  ;;  %v5193_v21 = vpop.f32.mrf.mxu0  ;;  %v3055_v6 = vld [vmem:[#allocation2 + $0x220] sm:$0xff]  ;;  %v3062_v0 = vld [vmem:[#allocation2 + $0x258] sm:$0xff] }
 0x3d3   : > { %5412 = vmatmul.mubr.msk.f32.gmra.mxu1 %vm1995_vm2, %v5715_v47  ;;  %2075 = vst.msk [vmem:[#allocation2 + $0x278] sm:$0xff] %vm1995_vm2, %v5193_v21  ;;  %v3058_v47 = vld [vmem:[#allocation2 + $0x238] sm:$0xff] }
 0x3d4   : > { %5728 = vtanh.f32 %v3032_v48  ;;  %v1746_v22 = vpop.f32.mrf.mxu0  ;;  %5210 = vmatmul.mubr.msk.f32.gmra.mxu0 %vm901_vm1, %v860_v28  ;;  %v3061_v3 = vld [vmem:[#allocation2 + $0x250] sm:$0xff] }
 0x3d5   : > { %v5717_v49 = vpop.eup %5716  ;;  %5730 = vtanh.f32 %v3033_v45  ;;  %2074 = vst.msk [vmem:[#allocation2 + $0x270] sm:$0xff] %vm1995_vm2, %v1746_v22  ;;  %5212 = vmatprep.mubr.msk.f32.mxu0 %vm901_vm1, %v861_v29 }
 0x3d6   : > { %v5719_v50 = vpop.eup %5718  ;;  %5414 = vmatprep.mubr.msk.f32.mxu1 %vm1995_vm2, %v5717_v49  ;;  %v3057_v49 = vld [vmem:[#allocation2 + $0x230] sm:$0xff]  ;;  %v3064_v11 = vld [vmem:[#allocation2 + $0x268] sm:$0xff] }
 0x3d7   : > { %5415 = vmatmul.mubr.msk.f32.gmra.mxu1 %vm1995_vm2, %v5719_v50 }
 0x3d8   : > { %5213 = vmatmul.mubr.msk.f32.gmra.mxu0 %vm901_vm1, %v862_v30  ;;  %v3063_v14 = vld [vmem:[#allocation2 + $0x260] sm:$0xff] }
 0x3d9   : > { %v5721_v51 = vpop.eup %5720  ;;  %5215 = vmatprep.mubr.msk.f32.mxu0 %vm901_vm1, %v863_v31 }
 0x3da   : > { %v5723_v53 = vpop.eup %5722  ;;  %5417 = vmatprep.mubr.msk.f32.mxu1 %vm1995_vm2, %v5721_v51  ;;  %v3066_v21 = vld [vmem:[#allocation2 + $0x278] sm:$0xff] }
 0x3db   : > { %5418 = vmatmul.mubr.msk.f32.gmra.mxu1 %vm1995_vm2, %v5723_v53 }
 0x3dc   : > { %5216 = vmatmul.mubr.msk.f32.gmra.mxu0 %vm901_vm1, %v864_v32  ;;  %v3065_v23 = vld [vmem:[#allocation2 + $0x270] sm:$0xff] }
 0x3dd   : > { %v5725_v54 = vpop.eup %5724 }
 0x3de   : > { %v5727_v55 = vpop.eup %5726  ;;  %5420 = vmatprep.mubr.msk.f32.mxu1 %vm1995_vm2, %v5725_v54  ;;  %v3060_v54 = vld [vmem:[#allocation2 + $0x248] sm:$0xff] }
 0x3df   : > { %5421 = vmatmul.mubr.msk.f32.gmra.mxu1 %vm1995_vm2, %v5727_v55 }
 0x3e1   : > { %v5729_v57 = vpop.eup %5728 }
 0x3e2   : > { %v5731_v58 = vpop.eup %5730  ;;  %5423 = vmatprep.mubr.msk.f32.mxu1 %vm1995_vm2, %v5729_v57  ;;  %v3059_v57 = vld [vmem:[#allocation2 + $0x240] sm:$0xff] }
 0x3e3   : > { %5424 = vmatmul.mubr.msk.f32.gmra.mxu1 %vm1995_vm2, %v5731_v58 }
 0x487   : > { %v5404_v34 = vpop.f32.mrf.mxu1 }
 0x488   : > { %v3261_v35 = vadd.f32 %v5404_v34, %v3052_v33 }
 0x489   : > { %v3181_v8 = vpop.f32.mrf.mxu1 }
 0x48a   : > { %v3260_v37 = vadd.f32 %v3181_v8, %v3051_v36  ;;  %v5196_v8 = vpop.f32.mrf.mxu0 }
 0x48b   : > { %v5407_v13 = vpop.f32.mrf.mxu1  ;;  %2077 = vst.msk [vmem:[#allocation2 + $0x288] sm:$0xff] %vm1995_vm2, %v5196_v8 }
 0x48c   : > { %5732 = vtanh.f32 %v3260_v37  ;;  %v3263_v39 = vadd.f32 %v5407_v13, %v3054_v38  ;;  %v1756_v37 = vpop.f32.mrf.mxu0 }
 0x48d   : > { %5734 = vtanh.f32 %v3261_v35  ;;  %v3191_v41 = vpop.f32.mrf.mxu1  ;;  %2076 = vst.msk [vmem:[#allocation2 + $0x280] sm:$0xff] %vm1995_vm2, %v1756_v37 }
 0x48e   : > { %v3262_v42 = vadd.f32 %v3191_v41, %v3053_v40  ;;  %v5199_v38 = vpop.f32.mrf.mxu0 }
 0x48f   : > { %v5410_v15 = vpop.f32.mrf.mxu1  ;;  %2079 = vst.msk [vmem:[#allocation2 + $0x298] sm:$0xff] %vm1995_vm2, %v5199_v38 }
 0x490   : > { %5736 = vtanh.f32 %v3262_v42  ;;  %v3265_v44 = vadd.f32 %v5410_v15, %v3056_v43  ;;  %v1766_v13 = vpop.f32.mrf.mxu0  ;;  %v865_v15 = vld [vmem:[%s6355_s26 + $0x300] sm:$0xff] }
 0x491   : > { %5738 = vtanh.f32 %v3263_v39  ;;  %v3201_v45 = vpop.f32.mrf.mxu1  ;;  %2078 = vst.msk [vmem:[#allocation2 + $0x290] sm:$0xff] %vm1995_vm2, %v1766_v13  ;;  %5218 = vmatprep.mubr.msk.f32.mxu0 %vm901_vm1, %v865_v15 }
 0x492   : > { %v3264_v46 = vadd.f32 %v3201_v45, %v3055_v6  ;;  %v5202_v39 = vpop.f32.mrf.mxu0  ;;  %v866_v6 = vld [vmem:[%s6355_s26 + $0x308] sm:$0xff] }
 0x493   : > { %v5413_v48 = vpop.f32.mrf.mxu1  ;;  %2081 = vst.msk [vmem:[#allocation2 + $0x2a8] sm:$0xff] %vm1995_vm2, %v5202_v39  ;;  %5219 = vmatmul.mubr.msk.f32.gmra.mxu0 %vm901_vm1, %v866_v6 }
 0x494   : > { %5740 = vtanh.f32 %v3264_v46  ;;  %v3267_v50 = vadd.f32 %v5413_v48, %v3058_v47  ;;  %v1776_v40 = vpop.f32.mrf.mxu0  ;;  %v867_v46 = vld [vmem:[%s6355_s26 + $0x310] sm:$0xff]  ;;  %v868_v47 = vld [vmem:[%s6355_s26 + $0x318] sm:$0xff] }
 0x495   : > { %5742 = vtanh.f32 %v3265_v44  ;;  %v3211_v51 = vpop.f32.mrf.mxu1  ;;  %2080 = vst.msk [vmem:[#allocation2 + $0x2a0] sm:$0xff] %vm1995_vm2, %v1776_v40  ;;  %5221 = vmatprep.mubr.msk.f32.mxu0 %vm901_vm1, %v867_v46 }
 0x496   : > { %v3266_v53 = vadd.f32 %v3211_v51, %v3057_v49  ;;  %v5205_v41 = vpop.f32.mrf.mxu0  ;;  %v869_v51 = vld [vmem:[%s6355_s26 + $0x320] sm:$0xff] }
 0x497   : > { %v5416_v55 = vpop.f32.mrf.mxu1  ;;  %2083 = vst.msk [vmem:[#allocation2 + $0x2b8] sm:$0xff] %vm1995_vm2, %v5205_v41  ;;  %5222 = vmatmul.mubr.msk.f32.gmra.mxu0 %vm901_vm1, %v868_v47  ;;  %v5928_v47 = vld [vmem:[%s7147_s2 + $0x10] sm:$0xff] }
 0x498   : > { %5744 = vtanh.f32 %v3266_v53  ;;  %v3269_v59 = vadd.f32 %v5416_v55, %v3060_v54  ;;  %v1786_v42 = vpop.f32.mrf.mxu0  ;;  %5224 = vmatprep.mubr.msk.f32.mxu0 %vm901_vm1, %v869_v51  ;;  %v870_v53 = vld [vmem:[%s6355_s26 + $0x328] sm:$0xff] }
 0x499   : > { %v5733_v58 = vpop.eup %5732  ;;  %5746 = vtanh.f32 %v3267_v50  ;;  %v3221_v60 = vpop.f32.mrf.mxu1  ;;  %2082 = vst.msk [vmem:[#allocation2 + $0x2b0] sm:$0xff] %vm1995_vm2, %v1786_v42 }
 0x49a   : > { %v5735_v61 = vpop.eup %5734  ;;  %v3268_v63 = vadd.f32 %v3221_v60, %v3059_v57  ;;  %5434 = vmatprep.mubr.msk.f32.mxu1 %vm1995_vm2, %v5733_v58  ;;  %v5208_v43 = vpop.f32.mrf.mxu0  ;;  %v871_v57 = vld [vmem:[%s6355_s26 + $0x330] sm:$0xff]  ;;  %v872_v58 = vld [vmem:[%s6355_s26 + $0x338] sm:$0xff]  ;;  %v874_v60 = vld [vmem:[%s6355_s26 + $0x348] sm:$0xff] }
 0x49b   : > { %v5419_v1 = vpop.f32.mrf.mxu1  ;;  %5435 = vmatmul.mubr.msk.f32.vlgmr.msra.gmra.mxu1 %vm1995_vm2, %v5735_v61  ;;  %2085 = vst.msk [vmem:[#allocation2 + $0x2c8] sm:$0xff] %vm1995_vm2, %v5208_v43  ;;  %5225 = vmatmul.mubr.msk.f32.gmra.mxu0 %vm901_vm1, %v870_v53  ;;  %v875_v61 = vld [vmem:[%s6355_s26 + $0x350] sm:$0xff] }
 0x49c   : > { %5748 = vtanh.f32 %v3268_v63  ;;  %5459 = vmatpush3.msra.mxu1 %v6650_v52  ;;  %v3271_v5 = vadd.f32 %v5419_v1, %v3062_v0  ;;  %v1796_v44 = vpop.f32.mrf.mxu0  ;;  %5227 = vmatprep.mubr.msk.f32.mxu0 %vm901_vm1, %v871_v57  ;;  %v876_v63 = vld [vmem:[%s6355_s26 + $0x358] sm:$0xff]  ;;  %v877_v0 = vld [vmem:[%s6355_s26 + $0x360] sm:$0xff]  ;;  %v878_v1 = vld [vmem:[%s6355_s26 + $0x368] sm:$0xff] }
 0x49d   : > { %v5737_v4 = vpop.eup %5736  ;;  %5750 = vtanh.f32 %v3269_v59  ;;  %v3231_v7 = vpop.f32.mrf.mxu1  ;;  %5460 = vmatprep.subr.mxu1 %v6656_v56  ;;  %2084 = vst.msk [vmem:[#allocation2 + $0x2c0] sm:$0xff] %vm1995_vm2, %v1796_v44  ;;  %v873_v59 = vld [vmem:[%s6355_s26 + $0x340] sm:$0xff] }
 0x49e   : > { %v5739_v9 = vpop.eup %5738  ;;  %v3270_v10 = vadd.f32 %v3231_v7, %v3061_v3  ;;  %5437 = vmatprep.mubr.msk.f32.mxu1 %vm1995_vm2, %v5737_v4  ;;  %5461 = vmatpush3.msra.mxu1 %v6656_v56  ;;  %v5211_v45 = vpop.f32.mrf.mxu0  ;;  %v879_v3 = vld [vmem:[%s6355_s26 + $0x370] sm:$0xff]  ;;  %v880_v4 = vld [vmem:[%s6355_s26 + $0x378] sm:$0xff]  ;;  %v3294_v7 = vld [vmem:[#allocation2 + $0x288] sm:$0xff] }
 0x49f   : > { %v5422_v12 = vpop.f32.mrf.mxu1  ;;  %5438 = vmatmul.mubr.msk.f32.gmra.mxu1 %vm1995_vm2, %v5739_v9  ;;  %5462 = vmatprep.subr.mxu1 %v6665_v62  ;;  %2087 = vst.msk [vmem:[#allocation2 + $0x2d8] sm:$0xff] %vm1995_vm2, %v5211_v45 }
 0x4a0   : > { %5752 = vtanh.f32 %v3270_v10  ;;  %5463 = vmatpush3.msra.mxu1 %v6665_v62  ;;  %v3273_v17 = vadd.f32 %v5422_v12, %v3064_v11  ;;  %v1806_v48 = vpop.f32.mrf.mxu0  ;;  %5228 = vmatmul.mubr.msk.f32.gmra.mxu0 %vm901_vm1, %v872_v58  ;;  %v3293_v11 = vld [vmem:[#allocation2 + $0x280] sm:$0xff] }
 0x4a1   : > { %v5741_v16 = vpop.eup %5740  ;;  %5754 = vtanh.f32 %v3271_v5  ;;  %v3241_v18 = vpop.f32.mrf.mxu1  ;;  %5464 = vmatprep.subr.mxu1 %v6672_v2  ;;  %2086 = vst.msk [vmem:[#allocation2 + $0x2d0] sm:$0xff] %vm1995_vm2, %v1806_v48  ;;  %5230 = vmatprep.mubr.msk.f32.mxu0 %vm901_vm1, %v873_v59  ;;  %v4021_v5 = vld [vmem:[%s7148_s3 + $0x18] sm:$0xff] }
 0x4a2   : > { %v5743_v19 = vpop.eup %5742  ;;  %v3272_v20 = vadd.f32 %v3241_v18, %v3063_v14  ;;  %5440 = vmatprep.mubr.msk.f32.mxu1 %vm1995_vm2, %v5741_v16  ;;  %5465 = vmatpush3.msra.mxu1 %v6672_v2  ;;  %v5214_v49 = vpop.f32.mrf.mxu0  ;;  %v3296_v16 = vld [vmem:[#allocation2 + $0x298] sm:$0xff] }
 0x4a3   : > { %v5425_v22 = vpop.f32.mrf.mxu1  ;;  %5441 = vmatmul.mubr.msk.f32.gmra.mxu1 %vm1995_vm2, %v5743_v19  ;;  %5490 = vmatprep.subr.mxu1 %v6650_v52  ;;  %2089 = vst.msk [vmem:[#allocation2 + $0x2e8] sm:$0xff] %vm1995_vm2, %v5214_v49  ;;  %v3295_v19 = vld [vmem:[#allocation2 + $0x290] sm:$0xff] }
 0x4a4   : > { %5756 = vtanh.f32 %v3272_v20  ;;  %v3275_v25 = vadd.f32 %v5425_v22, %v3066_v21  ;;  %v1816_v50 = vpop.f32.mrf.mxu0  ;;  %5231 = vmatmul.mubr.msk.f32.gmra.mxu0 %vm901_vm1, %v874_v60  ;;  %5522 = vmatprep.subr.mxu0 %v4021_v5  ;;  %v3298_v22 = vld [vmem:[#allocation2 + $0x2a8] sm:$0xff] }
 0x4a5   : > { %v5745_v24 = vpop.eup %5744  ;;  %5758 = vtanh.f32 %v3273_v17  ;;  %v3251_v26 = vpop.f32.mrf.mxu1  ;;  %2088 = vst.msk [vmem:[#allocation2 + $0x2e0] sm:$0xff] %vm1995_vm2, %v1816_v50  ;;  %5233 = vmatprep.mubr.msk.f32.mxu0 %vm901_vm1, %v875_v61  ;;  %5523 = vmatpush3.msra.mxu0 %v4021_v5 }
 0x4a6   : > { %v5747_v27 = vpop.eup %5746  ;;  %v3274_v28 = vadd.f32 %v3251_v26, %v3065_v23  ;;  %5443 = vmatprep.mubr.msk.f32.mxu1 %vm1995_vm2, %v5745_v24  ;;  %v5217_v54 = vpop.f32.mrf.mxu0  ;;  %v3297_v24 = vld [vmem:[#allocation2 + $0x2a0] sm:$0xff]  ;;  %v3304_v40 = vld [vmem:[#allocation2 + $0x2d8] sm:$0xff] }
 0x4a7   : > { %5444 = vmatmul.mubr.msk.f32.gmra.mxu1 %vm1995_vm2, %v5747_v27  ;;  %2091 = vst.msk [vmem:[#allocation2 + $0x2f8] sm:$0xff] %vm1995_vm2, %v5217_v54 }
 0x4a8   : > { %5760 = vtanh.f32 %v3274_v28  ;;  %v1826_v55 = vpop.f32.mrf.mxu0  ;;  %5234 = vmatmul.mubr.msk.f32.gmra.mxu0 %vm901_vm1, %v876_v63  ;;  %v3300_v28 = vld [vmem:[#allocation2 + $0x2b8] sm:$0xff]  ;;  %v3303_v42 = vld [vmem:[#allocation2 + $0x2d0] sm:$0xff] }
 0x4a9   : > { %v5749_v29 = vpop.eup %5748  ;;  %5762 = vtanh.f32 %v3275_v25  ;;  %2090 = vst.msk [vmem:[#allocation2 + $0x2f0] sm:$0xff] %vm1995_vm2, %v1826_v55  ;;  %5236 = vmatprep.mubr.msk.f32.mxu0 %vm901_vm1, %v877_v0  ;;  %v5929_v55 = vld [vmem:[%s7147_s2] sm:$0xff] }
 0x4aa   : > { %v5751_v30 = vpop.eup %5750  ;;  %5446 = vmatprep.mubr.msk.f32.mxu1 %vm1995_vm2, %v5749_v29  ;;  %v3306_v46 = vld [vmem:[#allocation2 + $0x2e8] sm:$0xff] }
 0x4ab   : > { %5447 = vmatmul.mubr.msk.f32.gmra.mxu1 %vm1995_vm2, %v5751_v30  ;;  %v3299_v30 = vld [vmem:[#allocation2 + $0x2b0] sm:$0xff] }
 0x4ac   : > { %5237 = vmatmul.mubr.msk.f32.gmra.mxu0 %vm901_vm1, %v878_v1 }
 0x4ad   : > { %v5753_v31 = vpop.eup %5752  ;;  %5239 = vmatprep.mubr.msk.f32.mxu0 %vm901_vm1, %v879_v3 }
 0x4ae   : > { %v5755_v32 = vpop.eup %5754  ;;  %5449 = vmatprep.mubr.msk.f32.mxu1 %vm1995_vm2, %v5753_v31  ;;  %v3308_v54 = vld [vmem:[#allocation2 + $0x2f8] sm:$0xff] }
 0x4af   : > { %5450 = vmatmul.mubr.msk.f32.gmra.mxu1 %vm1995_vm2, %v5755_v32 }
 0x4b0   : > { %5240 = vmatmul.mubr.msk.f32.gmra.mxu0 %vm901_vm1, %v880_v4 }
 0x4b1   : > { %v5757_v33 = vpop.eup %5756 }
 0x4b2   : > { %v5759_v34 = vpop.eup %5758  ;;  %5452 = vmatprep.mubr.msk.f32.mxu1 %vm1995_vm2, %v5757_v33 }
 0x4b3   : > { %5453 = vmatmul.mubr.msk.f32.gmra.mxu1 %vm1995_vm2, %v5759_v34  ;;  %v3302_v34 = vld [vmem:[#allocation2 + $0x2c8] sm:$0xff] }
 0x4b5   : > { %v5761_v35 = vpop.eup %5760 }
 0x4b6   : > { %v5763_v36 = vpop.eup %5762  ;;  %5455 = vmatprep.mubr.msk.f32.mxu1 %vm1995_vm2, %v5761_v35 }
 0x4b7   : > { %5456 = vmatmul.mubr.msk.f32.gmra.mxu1 %vm1995_vm2, %v5763_v36  ;;  %v3301_v36 = vld [vmem:[#allocation2 + $0x2c0] sm:$0xff] }
 0x55b   : > { %v5436_v9 = vpop.f32.mrf.mxu1 }
 0x55c   : > { %v3503_v10 = vadd.f32 %v5436_v9, %v3294_v7 }
 0x55d   : > { %v3423_v12 = vpop.f32.mrf.mxu1 }
 0x55e   : > { %v3502_v14 = vadd.f32 %v3423_v12, %v3293_v11 }
 0x55f   : > { %v5439_v17 = vpop.f32.mrf.mxu1 }
 0x560   : > { %5764 = vtanh.f32 %v3502_v14  ;;  %v3505_v18 = vadd.f32 %v5439_v17, %v3296_v16 }
 0x561   : > { %5766 = vtanh.f32 %v3503_v10  ;;  %v3433_v20 = vpop.f32.mrf.mxu1  ;;  %v5220_v10 = vpop.f32.mrf.mxu0 }
 0x562   : > { %v3504_v21 = vadd.f32 %v3433_v20, %v3295_v19  ;;  %2093 = vst.msk [vmem:[#allocation2 + $0x308] sm:$0xff] %vm1995_vm2, %v5220_v10 }
 0x563   : > { %v5442_v23 = vpop.f32.mrf.mxu1  ;;  %v1836_v11 = vpop.f32.mrf.mxu0 }
 0x564   : > { %5768 = vtanh.f32 %v3504_v21  ;;  %v3507_v25 = vadd.f32 %v5442_v23, %v3298_v22  ;;  %2092 = vst.msk [vmem:[#allocation2 + $0x300] sm:$0xff] %vm1995_vm2, %v1836_v11  ;;  %v881_v21 = vld [vmem:[%s6355_s26 + $0x380] sm:$0xff]  ;;  %v882_v22 = vld [vmem:[%s6355_s26 + $0x388] sm:$0xff] }
 0x565   : > { %5770 = vtanh.f32 %v3505_v18  ;;  %v3443_v26 = vpop.f32.mrf.mxu1  ;;  %v5223_v12 = vpop.f32.mrf.mxu0  ;;  %5242 = vmatprep.mubr.msk.f32.mxu0 %vm901_vm1, %v881_v21 }
 0x566   : > { %v3506_v27 = vadd.f32 %v3443_v26, %v3297_v24  ;;  %2095 = vst.msk [vmem:[#allocation2 + $0x318] sm:$0xff] %vm1995_vm2, %v5223_v12  ;;  %5243 = vmatmul.mubr.msk.f32.gmra.mxu0 %vm901_vm1, %v882_v22  ;;  %v884_v26 = vld [vmem:[%s6355_s26 + $0x398] sm:$0xff] }
 0x567   : > { %v5445_v29 = vpop.f32.mrf.mxu1  ;;  %v1846_v14 = vpop.f32.mrf.mxu0 }
 0x568   : > { %5772 = vtanh.f32 %v3506_v27  ;;  %v3509_v31 = vadd.f32 %v5445_v29, %v3300_v28  ;;  %2094 = vst.msk [vmem:[#allocation2 + $0x310] sm:$0xff] %vm1995_vm2, %v1846_v14 }
 0x569   : > { %5774 = vtanh.f32 %v3507_v25  ;;  %v3453_v32 = vpop.f32.mrf.mxu1  ;;  %v5226_v16 = vpop.f32.mrf.mxu0  ;;  %v883_v25 = vld [vmem:[%s6355_s26 + $0x390] sm:$0xff] }
 0x56a   : > { %v3508_v33 = vadd.f32 %v3453_v32, %v3299_v30  ;;  %2097 = vst.msk [vmem:[#allocation2 + $0x328] sm:$0xff] %vm1995_vm2, %v5226_v16  ;;  %5245 = vmatprep.mubr.msk.f32.mxu0 %vm901_vm1, %v883_v25  ;;  %v885_v30 = vld [vmem:[%s6355_s26 + $0x3a0] sm:$0xff] }
 0x56b   : > { %v5448_v35 = vpop.f32.mrf.mxu1  ;;  %v1856_v17 = vpop.f32.mrf.mxu0  ;;  %5246 = vmatmul.mubr.msk.f32.gmra.mxu0 %vm901_vm1, %v884_v26 }
 0x56c   : > { %5776 = vtanh.f32 %v3508_v33  ;;  %v3511_v37 = vadd.f32 %v5448_v35, %v3302_v34  ;;  %2096 = vst.msk [vmem:[#allocation2 + $0x320] sm:$0xff] %vm1995_vm2, %v1856_v17  ;;  %5248 = vmatprep.mubr.msk.f32.mxu0 %vm901_vm1, %v885_v30  ;;  %v887_v34 = vld [vmem:[%s6355_s26 + $0x3b0] sm:$0xff]  ;;  %v888_v35 = vld [vmem:[%s6355_s26 + $0x3b8] sm:$0xff] }
 0x56d   : > { %v5765_v8 = vpop.eup %5764  ;;  %5778 = vtanh.f32 %v3509_v31  ;;  %v3463_v38 = vpop.f32.mrf.mxu1  ;;  %v886_v31 = vld [vmem:[%s6355_s26 + $0x3a8] sm:$0xff] }
 0x56e   : > { %v5767_v13 = vpop.eup %5766  ;;  %v3510_v39 = vadd.f32 %v3463_v38, %v3301_v36  ;;  %5466 = vmatprep.mubr.msk.f32.mxu1 %vm1995_vm2, %v5765_v8  ;;  %v5229_v18 = vpop.f32.mrf.mxu0  ;;  %v4020_v36 = vld [vmem:[%s7148_s3 + $0x10] sm:$0xff]  ;;  %v4019_v8 = vld [vmem:[%s7148_s3 + $0x8] sm:$0xff] }
 0x56f   : > { %v5451_v41 = vpop.f32.mrf.mxu1  ;;  %5467 = vmatmul.mubr.msk.f32.vlgmr.msra.gmra.mxu1 %vm1995_vm2, %v5767_v13  ;;  %2099 = vst.msk [vmem:[#allocation2 + $0x338] sm:$0xff] %vm1995_vm2, %v5229_v18  ;;  %5249 = vmatmul.mubr.msk.f32.gmra.mxu0 %vm901_vm1, %v886_v31  ;;  %v3536_v38 = vld [vmem:[#allocation2 + $0x308] sm:$0xff] }
 0x570   : > { %5780 = vtanh.f32 %v3510_v39  ;;  %5491 = vmatpush3.msra.mxu1 %v6650_v52  ;;  %v3513_v15 = vadd.f32 %v5451_v41, %v3304_v40  ;;  %v3305_v52 = vld [vmem:[#allocation2 + $0x2e0] sm:$0xff]  ;;  %v1866_v19 = vpop.f32.mrf.mxu0  ;;  %5251 = vmatprep.mubr.msk.f32.mxu0 %vm901_vm1, %v887_v34 }
 0x571   : > { %v5769_v43 = vpop.eup %5768  ;;  %5782 = vtanh.f32 %v3511_v37  ;;  %v3473_v6 = vpop.f32.mrf.mxu1  ;;  %5492 = vmatprep.subr.mxu1 %v6656_v56  ;;  %2098 = vst.msk [vmem:[#allocation2 + $0x330] sm:$0xff] %vm1995_vm2, %v1866_v19  ;;  %5524 = vmatprep.subr.mxu0 %v4020_v36  ;;  %v4018_v37 = vld [vmem:[%s7148_s3] sm:$0xff] }
 0x572   : > { %v5771_v44 = vpop.eup %5770  ;;  %v3512_v45 = vadd.f32 %v3473_v6, %v3303_v42  ;;  %5469 = vmatprep.mubr.msk.f32.mxu1 %vm1995_vm2, %v5769_v43  ;;  %5493 = vmatpush3.msra.mxu1 %v5928_v47  ;;  %v5232_v20 = vpop.f32.mrf.mxu0  ;;  %v3535_v40 = vld [vmem:[#allocation2 + $0x300] sm:$0xff]  ;;  %v3538_v43 = vld [vmem:[#allocation2 + $0x318] sm:$0xff]  ;;  %v3540_v47 = vld [vmem:[#allocation2 + $0x328] sm:$0xff] }
 0x573   : > { %v5454_v48 = vpop.f32.mrf.mxu1  ;;  %5470 = vmatmul.mubr.msk.f32.gmra.mxu1 %vm1995_vm2, %v5771_v44  ;;  %5494 = vmatprep.subr.mxu1 %v6665_v62  ;;  %2101 = vst.msk [vmem:[#allocation2 + $0x348] sm:$0xff] %vm1995_vm2, %v5232_v20  ;;  %v3537_v44 = vld [vmem:[#allocation2 + $0x310] sm:$0xff] }
 0x574   : > { %5784 = vtanh.f32 %v3512_v45  ;;  %5495 = vmatpush3.msra.mxu1 %v6665_v62  ;;  %v3515_v49 = vadd.f32 %v5454_v48, %v3306_v46  ;;  %v3307_v62 = vld [vmem:[#allocation2 + $0x2f0] sm:$0xff]  ;;  %v1876_v23 = vpop.f32.mrf.mxu0  ;;  %5252 = vmatmul.mubr.msk.f32.gmra.mxu0 %vm901_vm1, %v888_v35 }
 0x575   : > { %v5773_v56 = vpop.eup %5772  ;;  %5786 = vtanh.f32 %v3513_v15  ;;  %v3483_v50 = vpop.f32.mrf.mxu1  ;;  %5496 = vmatprep.subr.mxu1 %v6672_v2  ;;  %2100 = vst.msk [vmem:[#allocation2 + $0x340] sm:$0xff] %vm1995_vm2, %v1876_v23  ;;  %5525 = vmatpush3.msra.mxu0 %v4020_v36 }
 0x576   : > { %v5775_v51 = vpop.eup %5774  ;;  %v3514_v53 = vadd.f32 %v3483_v50, %v3305_v52  ;;  %5472 = vmatprep.mubr.msk.f32.mxu1 %vm1995_vm2, %v5773_v56  ;;  %5497 = vmatpush3.msra.mxu1 %v5929_v55  ;;  %v5235_v24 = vpop.f32.mrf.mxu0  ;;  %v3539_v52 = vld [vmem:[#allocation2 + $0x320] sm:$0xff] }
 0x577   : > { %v5457_v57 = vpop.f32.mrf.mxu1  ;;  %5473 = vmatmul.mubr.msk.f32.gmra.mxu1 %vm1995_vm2, %v5775_v51  ;;  %2103 = vst.msk [vmem:[#allocation2 + $0x358] sm:$0xff] %vm1995_vm2, %v5235_v24  ;;  %5526 = vmatprep.subr.mxu0 %v4019_v8  ;;  %v3542_v51 = vld [vmem:[#allocation2 + $0x338] sm:$0xff] }
 0x578   : > { %5788 = vtanh.f32 %v3514_v53  ;;  %v3517_v59 = vadd.f32 %v5457_v57, %v3308_v54  ;;  %v1886_v27 = vpop.f32.mrf.mxu0  ;;  %5527 = vmatpush3.msra.mxu0 %v4019_v8  ;;  %v3541_v54 = vld [vmem:[#allocation2 + $0x330] sm:$0xff] }
 0x579   : > { %v5777_v58 = vpop.eup %5776  ;;  %5790 = vtanh.f32 %v3515_v49  ;;  %v3493_v60 = vpop.f32.mrf.mxu1  ;;  %2102 = vst.msk [vmem:[#allocation2 + $0x350] sm:$0xff] %vm1995_vm2, %v1886_v27  ;;  %5528 = vmatprep.subr.mxu0 %v4018_v37 }
 0x57a   : > { %v5779_v2 = vpop.eup %5778  ;;  %v3516_v61 = vadd.f32 %v3493_v60, %v3307_v62  ;;  %5475 = vmatprep.mubr.msk.f32.mxu1 %vm1995_vm2, %v5777_v58  ;;  %v5238_v28 = vpop.f32.mrf.mxu0  ;;  %5529 = vmatpush3.msra.mxu0 %v4018_v37  ;;  %v3544_v58 = vld [vmem:[#allocation2 + $0x348] sm:$0xff] }
 0x57b   : > { %5476 = vmatmul.mubr.msk.f32.gmra.mxu1 %vm1995_vm2, %v5779_v2  ;;  %2105 = vst.msk [vmem:[#allocation2 + $0x368] sm:$0xff] %vm1995_vm2, %v5238_v28 }
 0x57c   : > { %5792 = vtanh.f32 %v3516_v61  ;;  %v1896_v29 = vpop.f32.mrf.mxu0  ;;  %v3543_v60 = vld [vmem:[#allocation2 + $0x340] sm:$0xff] }
 0x57d   : > { %v5781_v63 = vpop.eup %5780  ;;  %5794 = vtanh.f32 %v3517_v59  ;;  %2104 = vst.msk [vmem:[#allocation2 + $0x360] sm:$0xff] %vm1995_vm2, %v1896_v29 }
 0x57e   : > { %v5783_v0 = vpop.eup %5782  ;;  %5478 = vmatprep.mubr.msk.f32.mxu1 %vm1995_vm2, %v5781_v63  ;;  %v5241_v32 = vpop.f32.mrf.mxu0 }
 0x57f   : > { %5479 = vmatmul.mubr.msk.f32.gmra.mxu1 %vm1995_vm2, %v5783_v0  ;;  %2107 = vst.msk [vmem:[#allocation2 + $0x378] sm:$0xff] %vm1995_vm2, %v5241_v32 }
 0x580   : > { %v1906_v33 = vpop.f32.mrf.mxu0 }
 0x581   : > { %v5785_v1 = vpop.eup %5784  ;;  %2106 = vst.msk [vmem:[#allocation2 + $0x370] sm:$0xff] %vm1995_vm2, %v1906_v33 }
 0x582   : > { %v5787_v3 = vpop.eup %5786  ;;  %5481 = vmatprep.mubr.msk.f32.mxu1 %vm1995_vm2, %v5785_v1  ;;  %v3548_v14 = vld [vmem:[#allocation2 + $0x368] sm:$0xff] }
 0x583   : > { %5482 = vmatmul.mubr.msk.f32.gmra.mxu1 %vm1995_vm2, %v5787_v3  ;;  %v3546_v3 = vld [vmem:[#allocation2 + $0x358] sm:$0xff] }
 0x584   : > { %v3547_v17 = vld [vmem:[#allocation2 + $0x360] sm:$0xff] }
 0x585   : > { %v5789_v4 = vpop.eup %5788 }
 0x586   : > { %v5791_v5 = vpop.eup %5790  ;;  %5484 = vmatprep.mubr.msk.f32.mxu1 %vm1995_vm2, %v5789_v4  ;;  %v3550_v23 = vld [vmem:[#allocation2 + $0x378] sm:$0xff] }
 0x587   : > { %5485 = vmatmul.mubr.msk.f32.gmra.mxu1 %vm1995_vm2, %v5791_v5  ;;  %v3545_v5 = vld [vmem:[#allocation2 + $0x350] sm:$0xff] }
 0x588   : > { %v3549_v25 = vld [vmem:[#allocation2 + $0x370] sm:$0xff] }
 0x589   : > { %v5793_v7 = vpop.eup %5792 }
 0x58a   : > { %v5795_v9 = vpop.eup %5794  ;;  %5487 = vmatprep.mubr.msk.f32.mxu1 %vm1995_vm2, %v5793_v7 }
 0x58b   : > { %5488 = vmatmul.mubr.msk.f32.gmra.mxu1 %vm1995_vm2, %v5795_v9 }
 0x62f   : > { %v5468_v13 = vpop.f32.mrf.mxu1 }
 0x630   : > { %v3745_v39 = vadd.f32 %v5468_v13, %v3536_v38  ;;  %v5244_v38 = vpop.f32.mrf.mxu0 }
 0x631   : > { %v3665_v41 = vpop.f32.mrf.mxu1  ;;  %2109 = vst.msk [vmem:[#allocation2 + $0x388] sm:$0xff] %vm1995_vm2, %v5244_v38 }
 0x632   : > { %v3744_v42 = vadd.f32 %v3665_v41, %v3535_v40  ;;  %v1916_v13 = vpop.f32.mrf.mxu0 }
 0x633   : > { %v5471_v15 = vpop.f32.mrf.mxu1  ;;  %2108 = vst.msk [vmem:[#allocation2 + $0x380] sm:$0xff] %vm1995_vm2, %v1916_v13 }
 0x634   : > { %5796 = vtanh.f32 %v3744_v42  ;;  %v3747_v6 = vadd.f32 %v5471_v15, %v3538_v43 }
 0x635   : > { %5798 = vtanh.f32 %v3745_v39  ;;  %v3675_v45 = vpop.f32.mrf.mxu1  ;;  %v5247_v39 = vpop.f32.mrf.mxu0 }
 0x636   : > { %v3746_v46 = vadd.f32 %v3675_v45, %v3537_v44  ;;  %2111 = vst.msk [vmem:[#allocation2 + $0x398] sm:$0xff] %vm1995_vm2, %v5247_v39 }
 0x637   : > { %v5474_v48 = vpop.f32.mrf.mxu1  ;;  %v1926_v40 = vpop.f32.mrf.mxu0 }
 0x638   : > { %5800 = vtanh.f32 %v3746_v46  ;;  %v3749_v56 = vadd.f32 %v5474_v48, %v3540_v47  ;;  %2110 = vst.msk [vmem:[#allocation2 + $0x390] sm:$0xff] %vm1995_vm2, %v1926_v40 }
 0x639   : > { %5802 = vtanh.f32 %v3747_v6  ;;  %v3685_v49 = vpop.f32.mrf.mxu1  ;;  %v5250_v41 = vpop.f32.mrf.mxu0  ;;  %v3778_v6 = vld [vmem:[#allocation2 + $0x388] sm:$0xff] }
 0x63a   : > { %v3748_v50 = vadd.f32 %v3685_v49, %v3539_v52  ;;  %2113 = vst.msk [vmem:[#allocation2 + $0x3a8] sm:$0xff] %vm1995_vm2, %v5250_v41  ;;  %v3777_v46 = vld [vmem:[#allocation2 + $0x380] sm:$0xff] }
 0x63b   : > { %v5477_v53 = vpop.f32.mrf.mxu1  ;;  %v1936_v42 = vpop.f32.mrf.mxu0 }
 0x63c   : > { %5804 = vtanh.f32 %v3748_v50  ;;  %v3751_v55 = vadd.f32 %v5477_v53, %v3542_v51  ;;  %2112 = vst.msk [vmem:[#allocation2 + $0x3a0] sm:$0xff] %vm1995_vm2, %v1936_v42 }
 0x63d   : > { %5806 = vtanh.f32 %v3749_v56  ;;  %v3695_v57 = vpop.f32.mrf.mxu1  ;;  %v5253_v43 = vpop.f32.mrf.mxu0  ;;  %v3780_v52 = vld [vmem:[#allocation2 + $0x398] sm:$0xff] }
 0x63e   : > { %v3750_v62 = vadd.f32 %v3695_v57, %v3541_v54  ;;  %2115 = vst.msk [vmem:[#allocation2 + $0x3b8] sm:$0xff] %vm1995_vm2, %v5253_v43 }
 0x63f   : > { %v5480_v59 = vpop.f32.mrf.mxu1  ;;  %v1946_v15 = vpop.f32.mrf.mxu0  ;;  %v3779_v50 = vld [vmem:[#allocation2 + $0x390] sm:$0xff] }
 0x640   : > { %5808 = vtanh.f32 %v3750_v62  ;;  %v3753_v61 = vadd.f32 %v5480_v59, %v3544_v58  ;;  %2114 = vst.msk [vmem:[#allocation2 + $0x3b0] sm:$0xff] %vm1995_vm2, %v1946_v15 }
 0x641   : > { %v5797_v2 = vpop.eup %5796  ;;  %5810 = vtanh.f32 %v3751_v55  ;;  %v3705_v63 = vpop.f32.mrf.mxu1  ;;  %v3782_v54 = vld [vmem:[#allocation2 + $0x3a8] sm:$0xff] }
 0x642   : > { %v5799_v0 = vpop.eup %5798  ;;  %v3752_v1 = vadd.f32 %v3705_v63, %v3543_v60  ;;  %5498 = vmatprep.mubr.msk.f32.mxu1 %vm1995_vm2, %v5797_v2 }
 0x643   : > { %v5483_v4 = vpop.f32.mrf.mxu1  ;;  %5499 = vmatmul.mubr.msk.f32.vlgmr.msra.gmra.mxu1 %vm1995_vm2, %v5799_v0  ;;  %v3781_v57 = vld [vmem:[#allocation2 + $0x3a0] sm:$0xff] }
 0x644   : > { %5812 = vtanh.f32 %v3752_v1  ;;  %v3755_v9 = vadd.f32 %v5483_v4, %v3546_v3  ;;  %v3786_v4 = vld [vmem:[#allocation2 + $0x3c8] sm:$0xff] }
 0x645   : > { %v5801_v7 = vpop.eup %5800  ;;  %5814 = vtanh.f32 %v3753_v61  ;;  %v3715_v10 = vpop.f32.mrf.mxu1  ;;  %v3784_v60 = vld [vmem:[#allocation2 + $0x3b8] sm:$0xff] }
 0x646   : > { %v5803_v11 = vpop.eup %5802  ;;  %v3754_v12 = vadd.f32 %v3715_v10, %v3545_v5  ;;  %5501 = vmatprep.mubr.msk.f32.mxu1 %vm1995_vm2, %v5801_v7 }
 0x647   : > { %v5486_v16 = vpop.f32.mrf.mxu1  ;;  %5502 = vmatmul.mubr.msk.f32.gmra.mxu1 %vm1995_vm2, %v5803_v11  ;;  %v3783_v61 = vld [vmem:[#allocation2 + $0x3b0] sm:$0xff] }
 0x648   : > { %5816 = vtanh.f32 %v3754_v12  ;;  %v3757_v19 = vadd.f32 %v5486_v16, %v3548_v14  ;;  %v3788_v16 = vld [vmem:[#allocation2 + $0x3d8] sm:$0xff] }
 0x649   : > { %v5805_v18 = vpop.eup %5804  ;;  %5818 = vtanh.f32 %v3755_v9  ;;  %v3725_v20 = vpop.f32.mrf.mxu1  ;;  %v3785_v9 = vld [vmem:[#allocation2 + $0x3c0] sm:$0xff] }
 0x64a   : > { %v5807_v21 = vpop.eup %5806  ;;  %v3756_v22 = vadd.f32 %v3725_v20, %v3547_v17  ;;  %5504 = vmatprep.mubr.msk.f32.mxu1 %vm1995_vm2, %v5805_v18 }
 0x64b   : > { %v5489_v24 = vpop.f32.mrf.mxu1  ;;  %5505 = vmatmul.mubr.msk.f32.gmra.mxu1 %vm1995_vm2, %v5807_v21 }
 0x64c   : > { %5820 = vtanh.f32 %v3756_v22  ;;  %v3759_v27 = vadd.f32 %v5489_v24, %v3550_v23  ;;  %v3790_v24 = vld [vmem:[#allocation2 + $0x3e8] sm:$0xff] }
 0x64d   : > { %v5809_v26 = vpop.eup %5808  ;;  %5822 = vtanh.f32 %v3757_v19  ;;  %v3735_v28 = vpop.f32.mrf.mxu1  ;;  %v3787_v19 = vld [vmem:[#allocation2 + $0x3d0] sm:$0xff] }
 0x64e   : > { %v5811_v29 = vpop.eup %5810  ;;  %v3758_v30 = vadd.f32 %v3735_v28, %v3549_v25  ;;  %5507 = vmatprep.mubr.msk.f32.mxu1 %vm1995_vm2, %v5809_v26 }
 0x64f   : > { %5508 = vmatmul.mubr.msk.f32.gmra.mxu1 %vm1995_vm2, %v5811_v29 }
 0x650   : > { %5824 = vtanh.f32 %v3758_v30 }
 0x651   : > { %v5813_v31 = vpop.eup %5812  ;;  %5826 = vtanh.f32 %v3759_v27  ;;  %v3789_v27 = vld [vmem:[#allocation2 + $0x3e0] sm:$0xff] }
 0x652   : > { %v5815_v32 = vpop.eup %5814  ;;  %5510 = vmatprep.mubr.msk.f32.mxu1 %vm1995_vm2, %v5813_v31 }
 0x653   : > { %5511 = vmatmul.mubr.msk.f32.gmra.mxu1 %vm1995_vm2, %v5815_v32  ;;  %v3792_v32 = vld [vmem:[#allocation2 + $0x3f8] sm:$0xff] }
 0x655   : > { %v5817_v33 = vpop.eup %5816 }
 0x656   : > { %v5819_v34 = vpop.eup %5818  ;;  %5513 = vmatprep.mubr.msk.f32.mxu1 %vm1995_vm2, %v5817_v33 }
 0x657   : > { %5514 = vmatmul.mubr.msk.f32.gmra.mxu1 %vm1995_vm2, %v5819_v34 }
 0x659   : > { %v5821_v35 = vpop.eup %5820 }
 0x65a   : > { %v5823_v36 = vpop.eup %5822  ;;  %5516 = vmatprep.mubr.msk.f32.mxu1 %vm1995_vm2, %v5821_v35  ;;  %v3791_v35 = vld [vmem:[#allocation2 + $0x3f0] sm:$0xff] }
 0x65b   : > { %5517 = vmatmul.mubr.msk.f32.gmra.mxu1 %vm1995_vm2, %v5823_v36 }
 0x65d   : > { %v5825_v8 = vpop.eup %5824 }
 0x65e   : > { %v5827_v37 = vpop.eup %5826  ;;  %5519 = vmatprep.mubr.msk.f32.mxu1 %vm1995_vm2, %v5825_v8 }
 0x65f   : > { %5520 = vmatmul.mubr.msk.f32.gmra.mxu1 %vm1995_vm2, %v5827_v37 }
 0x703   : > { %v5500_v44 = vpop.f32.mrf.mxu1 }
 0x704   : > { %v3987_v45 = vadd.f32 %v5500_v44, %v3778_v6  ;;  %v4730_v6 = vld [vmem:[%s7149_s4] ss:$0 sm:$0xff] }
 0x705   : > { %v3907_v47 = vpop.f32.mrf.mxu1 }
 0x706   : > { %v3986_v48 = vadd.f32 %v3907_v47, %v3777_v46 }
 0x707   : > { %v5503_v56 = vpop.f32.mrf.mxu1 }
 0x708   : > { %5828 = vtanh.f32 %v3986_v48  ;;  %v3989_v49 = vadd.f32 %v5503_v56, %v3780_v52 }
 0x709   : > { %5830 = vtanh.f32 %v3987_v45  ;;  %v3917_v51 = vpop.f32.mrf.mxu1 }
 0x70a   : > { %v3988_v53 = vadd.f32 %v3917_v51, %v3779_v50 }
 0x70b   : > { %v5506_v55 = vpop.f32.mrf.mxu1 }
 0x70c   : > { %5832 = vtanh.f32 %v3988_v53  ;;  %v3991_v62 = vadd.f32 %v5506_v55, %v3782_v54 }
 0x70d   : > { %5834 = vtanh.f32 %v3989_v49  ;;  %v3927_v58 = vpop.f32.mrf.mxu1 }
 0x70e   : > { %v3990_v59 = vadd.f32 %v3927_v58, %v3781_v57 }
 0x70f   : > { %v5509_v2 = vpop.f32.mrf.mxu1 }
 0x710   : > { %5836 = vtanh.f32 %v3990_v59  ;;  %v3993_v63 = vadd.f32 %v5509_v2, %v3784_v60 }
 0x711   : > { %5838 = vtanh.f32 %v3991_v62  ;;  %v3937_v0 = vpop.f32.mrf.mxu1 }
 0x712   : > { %v3992_v1 = vadd.f32 %v3937_v0, %v3783_v61 }
 0x713   : > { %v5512_v3 = vpop.f32.mrf.mxu1 }
 0x714   : > { %5840 = vtanh.f32 %v3992_v1  ;;  %v3995_v7 = vadd.f32 %v5512_v3, %v3786_v4 }
 0x715   : > { %v5829_v5 = vpop.eup %5828  ;;  %5842 = vtanh.f32 %v3993_v63  ;;  %v3947_v10 = vpop.f32.mrf.mxu1 }
 0x716   : > { %v5831_v11 = vpop.eup %5830  ;;  %v3994_v12 = vadd.f32 %v3947_v10, %v3785_v9  ;;  %5530 = vmatprep.mubr.msk.f32.mxu0 %vm1995_vm2, %v5829_v5 }
 0x717   : > { %v5515_v14 = vpop.f32.mrf.mxu1  ;;  %5531 = vmatmul.mubr.msk.f32.vlgmr.msra.gmra.mxu0 %vm1995_vm2, %v5831_v11 }
 0x718   : > { %5844 = vtanh.f32 %v3994_v12  ;;  %v3997_v18 = vadd.f32 %v5515_v14, %v3788_v16 }
 0x719   : > { %v5833_v17 = vpop.eup %5832  ;;  %5846 = vtanh.f32 %v3995_v7  ;;  %v3957_v20 = vpop.f32.mrf.mxu1 }
 0x71a   : > { %v5835_v21 = vpop.eup %5834  ;;  %v3996_v22 = vadd.f32 %v3957_v20, %v3787_v19  ;;  %5533 = vmatprep.mubr.msk.f32.mxu0 %vm1995_vm2, %v5833_v17 }
 0x71b   : > { %v5518_v23 = vpop.f32.mrf.mxu1  ;;  %5534 = vmatmul.mubr.msk.f32.gmra.mxu0 %vm1995_vm2, %v5835_v21 }
 0x71c   : > { %5848 = vtanh.f32 %v3996_v22  ;;  %v3999_v26 = vadd.f32 %v5518_v23, %v3790_v24 }
 0x71d   : > { %v5837_v25 = vpop.eup %5836  ;;  %5850 = vtanh.f32 %v3997_v18  ;;  %v3967_v28 = vpop.f32.mrf.mxu1 }
 0x71e   : > { %v5839_v29 = vpop.eup %5838  ;;  %v3998_v30 = vadd.f32 %v3967_v28, %v3789_v27  ;;  %5536 = vmatprep.mubr.msk.f32.mxu0 %vm1995_vm2, %v5837_v25 }
 0x71f   : > { %v5521_v31 = vpop.f32.mrf.mxu1  ;;  %5537 = vmatmul.mubr.msk.f32.gmra.mxu0 %vm1995_vm2, %v5839_v29 }
 0x720   : > { %5852 = vtanh.f32 %v3998_v30  ;;  %v4001_v34 = vadd.f32 %v5521_v31, %v3792_v32 }
 0x721   : > { %v5841_v33 = vpop.eup %5840  ;;  %5854 = vtanh.f32 %v3999_v26  ;;  %v3977_v36 = vpop.f32.mrf.mxu1 }
 0x722   : > { %v5843_v8 = vpop.eup %5842  ;;  %v4000_v37 = vadd.f32 %v3977_v36, %v3791_v35  ;;  %5539 = vmatprep.mubr.msk.f32.mxu0 %vm1995_vm2, %v5841_v33 }
 0x723   : > { %5540 = vmatmul.mubr.msk.f32.gmra.mxu0 %vm1995_vm2, %v5843_v8 }
 0x724   : > { %5856 = vtanh.f32 %v4000_v37 }
 0x725   : > { %v5845_v38 = vpop.eup %5844  ;;  %5858 = vtanh.f32 %v4001_v34 }
 0x726   : > { %v5847_v13 = vpop.eup %5846  ;;  %5542 = vmatprep.mubr.msk.f32.mxu0 %vm1995_vm2, %v5845_v38 }
 0x727   : > { %5543 = vmatmul.mubr.msk.f32.gmra.mxu0 %vm1995_vm2, %v5847_v13 }
 0x729   : > { %v5849_v39 = vpop.eup %5848 }
 0x72a   : > { %v5851_v40 = vpop.eup %5850  ;;  %5545 = vmatprep.mubr.msk.f32.mxu0 %vm1995_vm2, %v5849_v39 }
 0x72b   : > { %5546 = vmatmul.mubr.msk.f32.gmra.mxu0 %vm1995_vm2, %v5851_v40 }
 0x72d   : > { %v5853_v41 = vpop.eup %5852 }
 0x72e   : > { %v5855_v42 = vpop.eup %5854  ;;  %5548 = vmatprep.mubr.msk.f32.mxu0 %vm1995_vm2, %v5853_v41 }
 0x72f   : > { %5549 = vmatmul.mubr.msk.f32.gmra.mxu0 %vm1995_vm2, %v5855_v42 }
 0x731   : > { %v5857_v43 = vpop.eup %5856 }
 0x732   : > { %v5859_v15 = vpop.eup %5858  ;;  %5551 = vmatprep.mubr.msk.f32.mxu0 %vm1995_vm2, %v5857_v43 }
 0x733   : > { %5552 = vmatmul.mubr.msk.f32.gmra.mxu0 %vm1995_vm2, %v5859_v15 }
 0x7d7   : > { %v5532_v44 = vpop.f32.mrf.mxu0 }
 0x7d8   : > { %v4149_v45 = vadd.f32 %v5532_v44, %v4730_v6 }
 0x7d9   : > { %v4143_v46 = vpop.f32.mrf.mxu0 }
 0x7da   : > { %4224 = vmax.xlane.f32.xlu0 %v4149_v45  ;;  %v4144_v48 = vadd.f32 %v4730_v6, %v4143_v46 }
 0x7db   : > { %v5535_v47 = vpop.f32.mrf.mxu0 }
 0x7dc   : > { %v4159_v52 = vadd.f32 %v5535_v47, %v4730_v6 }
 0x7dd   : > { %v4153_v56 = vpop.f32.mrf.mxu0 }
 0x7de   : > { %4228 = vmax.xlane.f32.xlu1 %v4159_v52  ;;  %4222 = vmax.xlane.f32.xlu0 %v4144_v48  ;;  %v4154_v50 = vadd.f32 %v4730_v6, %v4153_v56 }
 0x7df   : > { %v5538_v49 = vpop.f32.mrf.mxu0 }
 0x7e0   : > { %v4169_v55 = vadd.f32 %v5538_v49, %v4730_v6 }
 0x7e1   : > { %v4163_v51 = vpop.f32.mrf.mxu0 }
 0x7e2   : > { %v4164_v53 = vadd.f32 %v4730_v6, %v4163_v51  ;;  %4226 = vmax.xlane.f32.xlu1 %v4154_v50 }
 0x7e3   : > { %v5541_v54 = vpop.f32.mrf.mxu0 }
 0x7e4   : > { %4230 = vmax.xlane.f32.xlu0 %v4164_v53  ;;  %v4179_v59 = vadd.f32 %v5541_v54, %v4730_v6 }
 0x7e5   : > { %v4173_v57 = vpop.f32.mrf.mxu0 }
 0x7e6   : > { %v4174_v62 = vadd.f32 %v4730_v6, %v4173_v57  ;;  %4232 = vmax.xlane.f32.xlu1 %v4169_v55 }
 0x7e7   : > { %v5544_v58 = vpop.f32.mrf.mxu0 }
 0x7e8   : > { %4234 = vmax.xlane.f32.xlu0 %v4174_v62  ;;  %v4189_v63 = vadd.f32 %v5544_v58, %v4730_v6 }
 0x7e9   : > { %v4183_v60 = vpop.f32.mrf.mxu0 }
 0x7ea   : > { %v4184_v2 = vadd.f32 %v4730_v6, %v4183_v60  ;;  %4236 = vmax.xlane.f32.xlu1 %v4179_v59 }
 0x7eb   : > { %v5547_v61 = vpop.f32.mrf.mxu0 }
 0x7ec   : > { %4238 = vmax.xlane.f32.xlu0 %v4184_v2  ;;  %v4199_v4 = vadd.f32 %v5547_v61, %v4730_v6 }
 0x7ed   : > { %v4193_v0 = vpop.f32.mrf.mxu0 }
 0x7ee   : > { %v4194_v1 = vadd.f32 %v4730_v6, %v4193_v0  ;;  %4240 = vmax.xlane.f32.xlu1 %v4189_v63 }
 0x7ef   : > { %v5550_v3 = vpop.f32.mrf.mxu0 }
 0x7f0   : > { %4242 = vmax.xlane.f32.xlu0 %v4194_v1  ;;  %v6997_v10 = vadd.f32 %v5550_v3, %v4730_v6 }
 0x7f1   : > { %v4203_v5 = vpop.f32.mrf.mxu0 }
 0x7f2   : > { %v6995_v7 = vadd.f32 %v4730_v6, %v4203_v5  ;;  %4244 = vmax.xlane.f32.xlu1 %v4199_v4 }
 0x7f3   : > { %v5553_v9 = vpop.f32.mrf.mxu0 }
 0x7f4   : > { %4246 = vmax.xlane.f32.xlu0 %v6995_v7  ;;  %v7003_v14 = vadd.f32 %v5553_v9, %v4730_v6 }
 0x7f5   : > { %v4213_v11 = vpop.f32.mrf.mxu0 }
 0x7f6   : > { %v7000_v12 = vadd.f32 %v4730_v6, %v4213_v11  ;;  %4248 = vmax.xlane.f32.xlu1 %v6997_v10 }
 0x7f8   : > { %4250 = vmax.xlane.f32.xlu0 %v7000_v12 }
 0x7fa   : > { %4252 = vmax.xlane.f32.xlu1 %v7003_v14 }
 0x863   : > { %v4225_v16 = vpop.xlane.xlu0 %4224 }
 0x864   : > { %v7007_v17 = vsub.f32 %v4149_v45, %v4225_v16 }
 0x866   : > { %v4272_v18 = vmul.f32 1.442695, %v7007_v17 }
 0x867   : > { %v4229_v19 = vpop.xlane.xlu1 %4228  ;;  %v4223_v20 = vpop.xlane.xlu0 %4222 }
 0x868   : > { %5860 = vpow2.f32 %v4272_v18  ;;  %v7010_v21 = vsub.f32 %v4159_v52, %v4229_v19  ;;  %v7012_v22 = vsub.f32 %v4144_v48, %v4223_v20 }
 0x86a   : > { %v4276_v23 = vmul.f32 1.442695, %v7010_v21  ;;  %v4270_v24 = vmul.f32 1.442695, %v7012_v22 }
 0x86b   : > { %v4227_v25 = vpop.xlane.xlu1 %4226 }
 0x86c   : > { %5862 = vpow2.f32 %v4276_v23  ;;  %v7016_v26 = vsub.f32 %v4154_v50, %v4227_v25 }
 0x86d   : > { %5864 = vpow2.f32 %v4270_v24  ;;  %v4231_v27 = vpop.xlane.xlu0 %4230 }
 0x86e   : > { %v4274_v28 = vmul.f32 1.442695, %v7016_v26  ;;  %v7019_v29 = vsub.f32 %v4164_v53, %v4231_v27 }
 0x86f   : > { %v4233_v30 = vpop.xlane.xlu1 %4232 }
 0x870   : > { %5866 = vpow2.f32 %v4274_v28  ;;  %v7021_v31 = vsub.f32 %v4169_v55, %v4233_v30  ;;  %v4278_v32 = vmul.f32 1.442695, %v7019_v29 }
 0x871   : > { %v4235_v33 = vpop.xlane.xlu0 %4234 }
 0x872   : > { %v4280_v34 = vmul.f32 1.442695, %v7021_v31  ;;  %v7025_v35 = vsub.f32 %v4174_v62, %v4235_v33 }
 0x873   : > { %v4237_v36 = vpop.xlane.xlu1 %4236 }
 0x874   : > { %5868 = vpow2.f32 %v4280_v34  ;;  %v7027_v8 = vsub.f32 %v4179_v59, %v4237_v36  ;;  %v4282_v38 = vmul.f32 1.442695, %v7025_v35 }
 0x875   : > { %v5861_v37 = vpop.eup %5860  ;;  %5870 = vpow2.f32 %v4278_v32  ;;  %v4239_v13 = vpop.xlane.xlu0 %4238 }
 0x876   : > { %v4284_v39 = vmul.f32 1.442695, %v7027_v8  ;;  %v7031_v40 = vsub.f32 %v4184_v2, %v4239_v13  ;;  %4304 = vadd.xlane.f32.xlu1 %v5861_v37 }
 0x877   : > { %v4241_v41 = vpop.xlane.xlu1 %4240 }
 0x878   : > { %5872 = vpow2.f32 %v4284_v39  ;;  %v7033_v42 = vsub.f32 %v4189_v63, %v4241_v41  ;;  %v4286_v15 = vmul.f32 1.442695, %v7031_v40 }
 0x879   : > { %v5863_v43 = vpop.eup %5862  ;;  %5874 = vpow2.f32 %v4282_v38  ;;  %v4243_v6 = vpop.xlane.xlu0 %4242 }
 0x87a   : > { %v5865_v44 = vpop.eup %5864  ;;  %v4288_v45 = vmul.f32 1.442695, %v7033_v42  ;;  %v7037_v46 = vsub.f32 %v4194_v1, %v4243_v6  ;;  %4308 = vadd.xlane.f32.xlu1 %v5863_v43 }
 0x87b   : > { %4302 = vadd.xlane.f32.xlu0 %v5865_v44  ;;  %v4245_v47 = vpop.xlane.xlu1 %4244 }
 0x87c   : > { %5876 = vpow2.f32 %v4288_v45  ;;  %v7039_v48 = vsub.f32 %v4199_v4, %v4245_v47  ;;  %v4290_v56 = vmul.f32 1.442695, %v7037_v46 }
 0x87d   : > { %v5867_v52 = vpop.eup %5866  ;;  %5878 = vpow2.f32 %v4286_v15  ;;  %v4247_v49 = vpop.xlane.xlu0 %4246 }
 0x87e   : > { %v4292_v50 = vmul.f32 1.442695, %v7039_v48  ;;  %v7044_v51 = vsub.f32 %v6995_v7, %v4247_v49 }
 0x87f   : > { %4306 = vadd.xlane.f32.xlu0 %v5867_v52  ;;  %v4249_v53 = vpop.xlane.xlu1 %4248 }
 0x880   : > { %5880 = vpow2.f32 %v4292_v50  ;;  %v7047_v54 = vsub.f32 %v6997_v10, %v4249_v53  ;;  %v4294_v57 = vmul.f32 1.442695, %v7044_v51 }
 0x881   : > { %v5869_v55 = vpop.eup %5868  ;;  %5882 = vpow2.f32 %v4290_v56  ;;  %v4251_v62 = vpop.xlane.xlu0 %4250 }
 0x882   : > { %v5871_v58 = vpop.eup %5870  ;;  %v4296_v59 = vmul.f32 1.442695, %v7047_v54  ;;  %v7052_v60 = vsub.f32 %v7000_v12, %v4251_v62  ;;  %4312 = vadd.xlane.f32.xlu1 %v5869_v55 }
 0x883   : > { %4310 = vadd.xlane.f32.xlu0 %v5871_v58  ;;  %v4253_v2 = vpop.xlane.xlu1 %4252 }
 0x884   : > { %5884 = vpow2.f32 %v4296_v59  ;;  %v7055_v61 = vsub.f32 %v7003_v14, %v4253_v2  ;;  %v4298_v0 = vmul.f32 1.442695, %v7052_v60 }
 0x885   : > { %v5873_v63 = vpop.eup %5872  ;;  %5886 = vpow2.f32 %v4294_v57 }
 0x886   : > { %v5875_v1 = vpop.eup %5874  ;;  %v4300_v3 = vmul.f32 1.442695, %v7055_v61  ;;  %4316 = vadd.xlane.f32.xlu1 %v5873_v63 }
 0x887   : > { %4314 = vadd.xlane.f32.xlu0 %v5875_v1 }
 0x888   : > { %5888 = vpow2.f32 %v4300_v3 }
 0x889   : > { %v5877_v4 = vpop.eup %5876  ;;  %5890 = vpow2.f32 %v4298_v0 }
 0x88a   : > { %v5879_v5 = vpop.eup %5878  ;;  %4320 = vadd.xlane.f32.xlu1 %v5877_v4 }
 0x88b   : > { %4318 = vadd.xlane.f32.xlu0 %v5879_v5 }
 0x88d   : > { %v5881_v7 = vpop.eup %5880 }
 0x88e   : > { %v5883_v9 = vpop.eup %5882  ;;  %4324 = vadd.xlane.f32.xlu1 %v5881_v7 }
 0x88f   : > { %4322 = vadd.xlane.f32.xlu0 %v5883_v9 }
 0x891   : > { %v5885_v10 = vpop.eup %5884 }
 0x892   : > { %v5887_v11 = vpop.eup %5886  ;;  %4328 = vadd.xlane.f32.xlu1 %v5885_v10 }
 0x893   : > { %4326 = vadd.xlane.f32.xlu0 %v5887_v11 }
 0x895   : > { %v5889_v12 = vpop.eup %5888 }
 0x896   : > { %v5891_v14 = vpop.eup %5890  ;;  %4332 = vadd.xlane.f32.xlu1 %v5889_v12 }
 0x897   : > { %4330 = vadd.xlane.f32.xlu0 %v5891_v14 }
 0x8ff   : > { %v4305_v16 = vpop.xlane.xlu1 %4304 }
 0x900   : > { %5892 = vlog2.f32 %v4305_v16 }
 0x903   : > { %v4309_v18 = vpop.xlane.xlu1 %4308 }
 0x904   : > { %5894 = vlog2.f32 %v4309_v18  ;;  %v4303_v19 = vpop.xlane.xlu0 %4302 }
 0x905   : > { %5896 = vlog2.f32 %v4303_v19 }
 0x908   : > { %v4307_v20 = vpop.xlane.xlu0 %4306 }
 0x909   : > { %5898 = vlog2.f32 %v4307_v20 }
 0x90b   : > { %v4313_v23 = vpop.xlane.xlu1 %4312 }
 0x90c   : > { %5900 = vlog2.f32 %v4313_v23  ;;  %v4311_v24 = vpop.xlane.xlu0 %4310 }
 0x90d   : > { %v5893_v25 = vpop.eup %5892  ;;  %5902 = vlog2.f32 %v4311_v24 }
 0x90e   : > { %v4337_v27 = vmul.f32 0.6931472, %v5893_v25 }
 0x90f   : > { %v4317_v28 = vpop.xlane.xlu1 %4316 }
 0x910   : > { %v4367_v30 = vsub.f32 %v7007_v17, %v4337_v27  ;;  %5904 = vlog2.f32 %v4317_v28  ;;  %v4315_v32 = vpop.xlane.xlu0 %4314 }
 0x911   : > { %v5895_v33 = vpop.eup %5894  ;;  %5906 = vlog2.f32 %v4315_v32 }
 0x912   : > { %v5897_v34 = vpop.eup %5896  ;;  %4383 = vst [vmem:[%s7061_s9 + $0x8] sm:$0xff] %v4367_v30  ;;  %v4341_v36 = vmul.f32 0.6931472, %v5895_v33 }
 0x913   : > { %v4335_v37 = vmul.f32 0.6931472, %v5897_v34  ;;  %v4321_v38 = vpop.xlane.xlu1 %4320 }
 0x914   : > { %v4369_v13 = vsub.f32 %v7010_v21, %v4341_v36  ;;  %5908 = vlog2.f32 %v4321_v38  ;;  %v4319_v39 = vpop.xlane.xlu0 %4318 }
 0x915   : > { %v4366_v17 = vsub.f32 %v7012_v22, %v4335_v37  ;;  %5910 = vlog2.f32 %v4319_v39 }
 0x916   : > { %v5899_v41 = vpop.eup %5898  ;;  %4385 = vst [vmem:[%s7061_s9 + $0x18] sm:$0xff] %v4369_v13 }
 0x917   : > { %4382 = vst [vmem:[%s7061_s9] sm:$0xff] %v4366_v17  ;;  %v4339_v43 = vmul.f32 0.6931472, %v5899_v41  ;;  %v4325_v15 = vpop.xlane.xlu1 %4324 }
 0x918   : > { %5912 = vlog2.f32 %v4325_v15  ;;  %v4323_v6 = vpop.xlane.xlu0 %4322 }
 0x919   : > { %v5901_v44 = vpop.eup %5900  ;;  %v4368_v45 = vsub.f32 %v7016_v26, %v4339_v43  ;;  %5914 = vlog2.f32 %v4323_v6 }
 0x91a   : > { %v5903_v21 = vpop.eup %5902  ;;  %v4345_v47 = vmul.f32 0.6931472, %v5901_v44 }
 0x91b   : > { %4384 = vst [vmem:[%s7061_s9 + $0x10] sm:$0xff] %v4368_v45  ;;  %v4343_v52 = vmul.f32 0.6931472, %v5903_v21  ;;  %v4329_v56 = vpop.xlane.xlu1 %4328 }
 0x91c   : > { %v4371_v22 = vsub.f32 %v7021_v31, %v4345_v47  ;;  %5916 = vlog2.f32 %v4329_v56  ;;  %v4327_v49 = vpop.xlane.xlu0 %4326 }
 0x91d   : > { %v5905_v50 = vpop.eup %5904  ;;  %v4370_v53 = vsub.f32 %v7019_v29, %v4343_v52  ;;  %5918 = vlog2.f32 %v4327_v49 }
 0x91e   : > { %v5907_v55 = vpop.eup %5906  ;;  %4387 = vst [vmem:[%s7061_s9 + $0x28] sm:$0xff] %v4371_v22  ;;  %v4349_v26 = vmul.f32 0.6931472, %v5905_v50 }
 0x91f   : > { %4386 = vst [vmem:[%s7061_s9 + $0x20] sm:$0xff] %v4370_v53  ;;  %v4347_v57 = vmul.f32 0.6931472, %v5907_v55  ;;  %v4333_v62 = vpop.xlane.xlu1 %4332 }
 0x920   : > { %v4373_v58 = vsub.f32 %v7027_v8, %v4349_v26  ;;  %5920 = vlog2.f32 %v4333_v62  ;;  %v4331_v31 = vpop.xlane.xlu0 %4330 }
 0x921   : > { %v5909_v59 = vpop.eup %5908  ;;  %v4372_v2 = vsub.f32 %v7025_v35, %v4347_v57  ;;  %5922 = vlog2.f32 %v4331_v31 }
 0x922   : > { %v5911_v63 = vpop.eup %5910  ;;  %4389 = vst [vmem:[%s7061_s9 + $0x38] sm:$0xff] %v4373_v58  ;;  %v4353_v29 = vmul.f32 0.6931472, %v5909_v59 }
 0x923   : > { %4388 = vst [vmem:[%s7061_s9 + $0x30] sm:$0xff] %v4372_v2  ;;  %v4351_v0 = vmul.f32 0.6931472, %v5911_v63 }
 0x924   : > { %v4375_v1 = vsub.f32 %v7033_v42, %v4353_v29 }
 0x925   : > { %v5913_v3 = vpop.eup %5912  ;;  %v4374_v4 = vsub.f32 %v7031_v40, %v4351_v0 }
 0x926   : > { %v5915_v8 = vpop.eup %5914  ;;  %4391 = vst [vmem:[%s7061_s9 + $0x48] sm:$0xff] %v4375_v1  ;;  %v4357_v5 = vmul.f32 0.6931472, %v5913_v3 }
 0x927   : > { %4390 = vst [vmem:[%s7061_s9 + $0x40] sm:$0xff] %v4374_v4  ;;  %v4355_v35 = vmul.f32 0.6931472, %v5915_v8 }
 0x928   : > { %v4377_v7 = vsub.f32 %v7039_v48, %v4357_v5 }
 0x929   : > { %v5917_v9 = vpop.eup %5916  ;;  %v4376_v10 = vsub.f32 %v7037_v46, %v4355_v35 }
 0x92a   : > { %v5919_v11 = vpop.eup %5918  ;;  %4393 = vst [vmem:[%s7061_s9 + $0x58] sm:$0xff] %v4377_v7  ;;  %v4361_v42 = vmul.f32 0.6931472, %v5917_v9 }
 0x92b   : > { %4392 = vst [vmem:[%s7061_s9 + $0x50] sm:$0xff] %v4376_v10  ;;  %v4359_v40 = vmul.f32 0.6931472, %v5919_v11 }
 0x92c   : > { %v4379_v12 = vsub.f32 %v7047_v54, %v4361_v42 }
 0x92d   : > { %v5921_v14 = vpop.eup %5920  ;;  %v4378_v16 = vsub.f32 %v7044_v51, %v4359_v40 }
 0x92e   : > { %v5923_v48 = vpop.eup %5922  ;;  %4395 = vst [vmem:[%s7061_s9 + $0x68] sm:$0xff] %v4379_v12  ;;  %v4365_v46 = vmul.f32 0.6931472, %v5921_v14 }
 0x92f   : > { %4394 = vst [vmem:[%s7061_s9 + $0x60] sm:$0xff] %v4378_v16  ;;  %v4363_v18 = vmul.f32 0.6931472, %v5923_v48 }
 0x930   : > { %v4381_v19 = vsub.f32 %v7055_v61, %v4365_v46 }
 0x931   : > { %v4380_v51 = vsub.f32 %v7052_v60, %v4363_v18 }
 0x932   : > { %4397 = vst [vmem:[%s7061_s9 + $0x78] sm:$0xff] %v4381_v19 }
 0x933   : > { %4396 = vst [vmem:[%s7061_s9 + $0x70] sm:$0xff] %v4380_v51 }
 0x934   : > { %5943 = shalt.err (!%p5940_p5)
}
 0x935   : > { %s5944_s30 = scalar_lea.hbm %s7097_s14, 2048  ;;  %s5948_s7 = scalar_lea.hbm %s7150_s5, 4096 }
 0x936   : > { %p5945_p7 = scmp.ne.s32.totalorder %s7097_s14, %s5944_s30  ;;  %p5949_p12 = scmp.lt.s32.totalorder %s7097_s14, %s7150_s5 }
 0x937   : > { %p5950_p13 = scmp.lt.s32.totalorder %s5948_s7, %s5944_s30 }
 0x938   : > { %p5946_p10 = pnand %p5945_p7, %p6064_p6 }
 0x939   : > { %p5951_p0 = por %p5950_p13, %p5949_p12 }
 0x93a   : > { %p5947_p11 = pneg %p5946_p10 }
 0x93c   : > { %p5952_p1 = pnand %p5951_p0, %p5947_p11 }
 0x93e   : > { %5955 = shalt.err (!%p5952_p1)
}
 0x93f   : > { %s5994_s10 = smov 128   ;;  %s5995_s12 = smov 8  }
 0x940   : > { %5562 = dma.vmem_to_hbm [thread:$0]  (%p6064_p6), %s7099_s11, 2048, %s7097_s14, %s4399_s22, %s5994_s10, %s5994_s10, %s5995_s12  }
 0x941 PF: > { %s4427_s13 = sand.u32 1, %s5978_s18   ;;  %p5565_p2 = pnand %p4482_p9, %p6068_p8 }
 0x942   : > { %s4428_s15 = scalar_lea.sflag [#allocation5], %s4427_s13 }
 0x943   : > { %p5566_p3 = pneg %p5565_p2 }
 0x945   : > { %5973 = dma.done.wait (%p5566_p3), %s4428_s15, 2048  }
 0x946   : > { %5975 = vsyncadd (%p5566_p3), %s4428_s15, 4294965248  ;;  %p15_p4 = scmp.ge.s32.totalorder %s6049_s24, 4   ;;  %s7153_s18 = smov %s5982_s19 }
 0x947   : > { %s7154_s19 = smov %s5986_s20  ;;  %s7155_s20 = smov %s6062_s27 }
 0x948   : > { %s7156_s21 = smov %s6049_s24  ;;  %17 = sbr.rel (!%p15_p4) target bundleno = 3 (0x3), region = 125 }
 0x94d   :  { %4433 = vsyncpa [#allocation5], 1 }
 0x94e   :  { %4435 = vsyncpa [#allocation5 + $0x1], 1 }

</bundles_post_ra>
